<compile_context>
chip_gen: v7x
topology: tpu7x:2x2x1
jax: 0.10.0
libtpu: 0.0.40
codegen_flags: <defaults>
</compile_context>

<pallas_src>
import jax
import jax.numpy as jnp
from jax import lax
from jax.experimental import pallas as pl
from jax.experimental.pallas import tpu as pltpu


def _make_kernel(nhead: int, dim: int, bb: int, ns: int, nt: int,
                 mxu_dtype, eps_attn: float = 1e-6, eps_ln: float = 1e-5):
    """Per-grid-step kernel body; one step = `bb` batch elements."""
    C = nhead * dim
    f32 = jnp.float32

    def kernel(sf_ref, tf_ref, xyz_ref,
               w_pos1_ref, b_pos1_ref, w_pos2v_ref, b_pos2v_ref,
               w_tf_ref, w_sf_ref, w_merge_ref, mask_ref,
               g1_ref, be1_ref, w_mlp1b_ref, w_mlp2_ref, g2_ref, be2_ref,
               out_ref):
        # Inputs arrive channels-first exactly as stored in HBM; the tiny
        # channels-last transposes run on the XLU (idle here) instead of
        # costing whole-array HBM passes in the wrapper.
        sf_cf = sf_ref[...]                                    # (bb, C, Ns) f32
        tf_cf = tf_ref[...]                                    # (bb, C, Nt) f32
        sf = jnp.transpose(sf_cf, (0, 2, 1)).reshape(bb * ns, C)
        tf = jnp.transpose(tf_cf, (0, 2, 1)).reshape(bb * nt, C)
        xyz = xyz_ref[...].reshape(bb * nt, 8)                 # (bb*Nt, 8) f32

        def mm(a, w_ref):
            # activation x weight on the MXU: mxu_dtype inputs, f32 accumulate
            return jnp.dot(a.astype(mxu_dtype), w_ref[...],
                           preferred_element_type=f32)

        # positional MLP, second layer folded through the value projection:
        #   v = tf @ Wv + relu(xyz @ Wp1 + b1) @ (Wp2 @ Wv) + b2 @ Wv
        pos_h = jnp.maximum(mm(xyz, w_pos1_ref) + b_pos1_ref[...], 0.0)

        # fused same-LHS projections (wider MXU N dimension):
        #   sf @ [Wq | Wmlp1a]  -> q and the first-half FF partial product
        #   tf @ [Wk | Wv]      -> k and the template part of v
        q_a = mm(sf, w_sf_ref)                                 # (bb*Ns, 3C)
        q = q_a[:, :C]
        sf_mlp1a = q_a[:, C:]                                  # held for FF
        k_v = mm(tf, w_tf_ref)                                 # (bb*Nt, 2C)
        k = k_v[:, :C]
        v = k_v[:, C:] + mm(pos_h, w_pos2v_ref) + b_pos2v_ref[...]

        def elu_plus_one(x):                                   # f32 VPU/EUP
            return jnp.where(x > 0, x + 1.0, jnp.exp(x))

        Qe = elu_plus_one(q)                                   # (bb*Ns, C) f32
        Ke = elu_plus_one(k)                                   # (bb*Nt, C) f32
        mask = mask_ref[...]                                   # (C, C) f32

        # Linear attention via block-diagonal masking, batched over the bb
        # block; numerator and denominator share one fused (C, 2C) matmul.
        # TODO(synk): verify with pl.lower_as_mlir that no extra vxpose is
        # materialized for the batched contractions at production Nt.
        Ke3t = jnp.transpose(Ke.reshape(bb, nt, C), (0, 2, 1))  # (bb, C, Nt)
        V3 = v.reshape(bb, nt, C).astype(mxu_dtype)             # (bb, Nt, C)
        KV = jnp.einsum("bck,bkd->bcd", Ke3t.astype(mxu_dtype), V3,
                        preferred_element_type=f32)             # (bb, C, C)
        Ksum = jnp.sum(Ke3t, axis=2)                             # (bb, C) f32
        rhs = jnp.concatenate(
            [KV * mask, Ksum[:, :, None] * mask],
            axis=-1).astype(mxu_dtype)                           # (bb, C, 2C)
        nd = jnp.einsum("bqc,bcd->bqd",
                        Qe.reshape(bb, ns, C).astype(mxu_dtype), rhs,
                        preferred_element_type=f32)              # (bb, Ns, 2C)
        numer = nd[..., :C]
        denom = nd[..., C:]
        message = (numer * (1.0 / (denom + eps_attn))).reshape(bb * ns, C)

        # merge projection
        message = mm(message, w_merge_ref)

        def layernorm(x, g, b):                                  # f32
            mu = jnp.mean(x, axis=-1, keepdims=True)
            var = jnp.mean((x - mu) ** 2, axis=-1, keepdims=True)
            return (x - mu) * lax.rsqrt(var + eps_ln) * g + b

        message = layernorm(message, g1_ref[...], be1_ref[...])

        # feed-forward: concat([sf, message]) @ W1 == sf@W1a + message@W1b,
        # with sf@W1a already produced by the fused q_a matmul above.
        hid = jnp.maximum(sf_mlp1a + mm(message, w_mlp1b_ref), 0.0)
        message = mm(hid, w_mlp2_ref)
        message = layernorm(message, g2_ref[...], be2_ref[...])

        # channels-first, lane-dense output (last dim = Ns); residual added in
        # the native input layout.
        out_ref[...] = sf_cf + jnp.transpose(message.reshape(bb, ns, C),
                                             (0, 2, 1))

    return kernel


def _num_tensorcores() -> int:
    """TensorCores one Pallas 'parallel' grid axis can shard across."""
    try:
        kind = jax.devices()[0].device_kind.lower().replace(" ", "")
    except Exception:
        return 1
    if "v4" in kind or "v5p" in kind or "7" in kind:   # megacore / v7x
        return 2
    return 1


def _vmem_limit_bytes() -> int:
    """Raise the scoped-VMEM limit (v5e default is 16 MiB) with headroom,
    capped so it stays legal on v7x's 64 MiB physical VMEM."""
    try:
        cap = int(pltpu.get_tpu_info().vmem_capacity_bytes)
    except Exception:
        cap = 64 * 1024 * 1024
    return min(96 * 1024 * 1024, (cap * 3) // 4)


def _pick_batch_block(B: int, Ns: int, num_cores: int,
                      max_rows: int = 4096) -> int:
    """Fold batch elements per grid step (taller MXU LHS, fewer ~0.35us step
    overheads).  On 2-TensorCore chips keep the parallel grid axis evenly
    divisible across cores; on 1-core chips fold as much as VMEM allows."""
    best = 1
    for bb in range(1, B + 1):
        if B % bb != 0 or bb * Ns > max_rows:
            continue
        nb = B // bb
        if num_cores > 1 and nb % num_cores != 0:
            continue
        best = bb
    return best


def corss_attention_pallas(params, search_feat, search_xyz,
                           template_feat, template_xyz, nhead,
                           mxu_dtype=jnp.bfloat16, batch_block=None):
    """search_feat: [B, C, Ns], template_feat: [B, C, Nt],
    template_xyz: [B, Nt, 3].  Returns [B, C, Ns] (same as PyTorch)."""
    del search_xyz  # unused by the module's forward
    B, C, Ns = search_feat.shape
    Nt = template_feat.shape[2]
    dim = C // nhead
    f32 = jnp.float32

    num_cores = _num_tensorcores()
    bb = batch_block if batch_block is not None else _pick_batch_block(
        B, Ns, num_cores)
    assert B % bb == 0
    nb = B // bb

    # Activations are DMA'd straight from their native [B, C, N] layout (no
    # wrapper transpose / cast HBM passes).  template_xyz is padded 3 -> 8
    # lanes with zeros (matched by zero rows of w_pos1), which is exact.
    sf = search_feat.astype(f32)
    tf = template_feat.astype(f32)
    xyz = jnp.pad(template_xyz.astype(f32), ((0, 0), (0, 0), (0, 5)))

    wd = mxu_dtype
    w_q, w_k, w_v = params["w_q"], params["w_k"], params["w_v"]
    w_pos1 = jnp.pad(params["w_pos1"], ((0, 5), (0, 0))).astype(wd)   # [8, C]
    b_pos1 = params["b_pos1"].astype(f32)
    # fold the pos-MLP second layer through the value projection (trace-time
    # constant folding on tiny weights; pos is only ever consumed by v_proj)
    w_pos2v = (params["w_pos2"] @ w_v).astype(wd)                     # [C, C]
    b_pos2v = (params["b_pos2"] @ w_v).astype(f32)                    # [1, C]
    # fused same-LHS weights
    w_tf = jnp.concatenate([w_k, w_v], axis=1).astype(wd)             # [C, 2C]
    w_sf = jnp.concatenate([w_q, params["w_mlp1"][:C]],
                           axis=1).astype(wd)                         # [C, 3C]
    w_merge = params["w_merge"].astype(wd)
    w_mlp1b = params["w_mlp1"][C:].astype(wd)                         # [C, 2C]
    w_mlp2 = params["w_mlp2"].astype(wd)                              # [2C, C]

    # block-diagonal head mask (constant, hoisted)
    heads = jnp.arange(C) // dim
    head_mask = (heads[:, None] == heads[None, :]).astype(f32)        # [C, C]

    g1 = params["g1"].astype(f32)
    be1 = params["be1"].astype(f32)
    g2 = params["g2"].astype(f32)
    be2 = params["be2"].astype(f32)

    weight_args = (w_pos1, b_pos1, w_pos2v, b_pos2v, w_tf, w_sf,
                   w_merge, head_mask, g1, be1, w_mlp1b, w_mlp2, g2, be2)

    kernel = _make_kernel(nhead, dim, bb, Ns, Nt, mxu_dtype)

    def batched_spec(d1, d2):
        return pl.BlockSpec((bb, d1, d2), lambda b: (b, 0, 0))

    def weight_spec(shape, single_buffer):
        idx_map = lambda b: (0,) * len(shape)
        if single_buffer:
            # constant block index -> one resident VMEM buffer suffices
            # (halves weight VMEM; matters most on v7x's 64 MiB VMEM)
            return pl.BlockSpec(shape, idx_map, pipeline_mode=pl.Buffered(1))
        return pl.BlockSpec(shape, idx_map)

    # advisory cost estimate so XLA schedules neighbours sensibly
    flops = 2 * B * (
        Nt * 8 * C + Nt * C * C            # pos-MLP (layer2 folded into Wv)
        + Ns * C * 3 * C                   # sf @ [Wq | Wmlp1a]
        + Nt * C * 2 * C                   # tf @ [Wk | Wv]
        + Nt * C * C                       # KV = Ke^T V
        + Ns * C * 2 * C                   # fused numerator / denominator
        + Ns * C * C                       # merge
        + Ns * C * 2 * C + Ns * 2 * C * C  # FF-MLP (second half + output)
    )
    transcendentals = B * (Ns * C + Nt * C)
    bytes_accessed = 4 * (int(sf.size) + int(tf.size) + int(xyz.size)
                          + B * C * Ns) + sum(
        int(w.size) * w.dtype.itemsize for w in weight_args)

    def run(single_buffer_weights):
        return pl.pallas_call(
            kernel,
            out_shape=jax.ShapeDtypeStruct((B, C, Ns), f32),
            grid_spec=pltpu.PrefetchScalarGridSpec(
                num_scalar_prefetch=0,
                grid=(nb,),
                in_specs=[
                    batched_spec(C, Ns),       # search_feat   [B, C, Ns]
                    batched_spec(C, Nt),       # template_feat [B, C, Nt]
                    batched_spec(Nt, 8),       # template_xyz  [B, Nt, 8]
                ] + [weight_spec(w.shape, single_buffer_weights)
                     for w in weight_args],
                out_specs=batched_spec(C, Ns),
            ),
            compiler_params=pltpu.CompilerParams(
                dimension_semantics=("parallel",),
                vmem_limit_bytes=_vmem_limit_bytes()),
            cost_estimate=pl.CostEstimate(
                flops=int(flops), transcendentals=int(transcendentals),
                bytes_accessed=int(bytes_accessed)),
        )(sf, tf, xyz, *weight_args)

    try:
        return run(True)
    except Exception:
        # pipeline_mode=pl.Buffered(1) unsupported by this jax/libtpu combo:
        # fall back to the default double-buffered weight blocks.
        return run(False)


def corss_attention_reference(params, search_feat, search_xyz,
                              template_feat, template_xyz, nhead):
    """Pure-JAX f32 mirror of the PyTorch forward, for verification."""
    del search_xyz
    sf = jnp.transpose(search_feat, (0, 2, 1))
    tf = jnp.transpose(template_feat, (0, 2, 1))
    pos = jnp.maximum(template_xyz @ params["w_pos1"] + params["b_pos1"], 0.0)
    pos = pos @ params["w_pos2"] + params["b_pos2"]
    tfp = tf + pos
    q = sf @ params["w_q"]
    k = tf @ params["w_k"]
    v = tfp @ params["w_v"]
    B, Ns, C = q.shape
    Nt = k.shape[1]
    H, D = nhead, C // nhead
    qh = q.reshape(B, Ns, H, D)
    kh = k.reshape(B, Nt, H, D)
    vh = v.reshape(B, Nt, H, D)
    Q = jax.nn.elu(qh) + 1.0
    K = jax.nn.elu(kh) + 1.0
    vv = vh / Nt
    KV = jnp.einsum("nshd,nshv->nhdv", K, vv)
    Z = 1.0 / (jnp.einsum("nlhd,nhd->nlh", Q, K.sum(axis=1)) + 1e-6)
    msg = jnp.einsum("nlhd,nhdv,nlh->nlhv", Q, KV, Z) * Nt
    msg = msg.reshape(B, Ns, C) @ params["w_merge"]

    def ln(x, g, b, eps=1e-5):
        mu = jnp.mean(x, axis=-1, keepdims=True)
        var = jnp.mean((x - mu) ** 2, axis=-1, keepdims=True)
        return (x - mu) / jnp.sqrt(var + eps) * g + b

    msg = ln(msg, params["g1"], params["be1"])
    msg = jnp.maximum(jnp.concatenate([sf, msg], axis=-1) @ params["w_mlp1"], 0.0)
    msg = msg @ params["w_mlp2"]
    msg = ln(msg, params["g2"], params["be2"])
    return jnp.transpose(sf + msg, (0, 2, 1))


def init_params(key, d_model):
    """Deterministic synthetic parameters (weights stored as [in, out])."""
    ks = jax.random.split(key, 12)
    s = 0.1
    return {
        "w_pos1": s * jax.random.normal(ks[0], (3, d_model), jnp.float32),
        "b_pos1": s * jax.random.normal(ks[1], (1, d_model), jnp.float32),
        "w_pos2": s * jax.random.normal(ks[2], (d_model, d_model), jnp.float32),
        "b_pos2": s * jax.random.normal(ks[3], (1, d_model), jnp.float32),
        "w_q": s * jax.random.normal(ks[4], (d_model, d_model), jnp.float32),
        "w_k": s * jax.random.normal(ks[5], (d_model, d_model), jnp.float32),
        "w_v": s * jax.random.normal(ks[6], (d_model, d_model), jnp.float32),
        "w_merge": s * jax.random.normal(ks[7], (d_model, d_model), jnp.float32),
        "g1": jnp.ones((1, d_model), jnp.float32),
        "be1": jnp.zeros((1, d_model), jnp.float32),
        "w_mlp1": s * jax.random.normal(ks[8], (2 * d_model, 2 * d_model), jnp.float32),
        "w_mlp2": s * jax.random.normal(ks[9], (2 * d_model, d_model), jnp.float32),
        "g2": jnp.ones((1, d_model), jnp.float32),
        "be2": jnp.zeros((1, d_model), jnp.float32),
    }


if __name__ == "__main__":
    B, d_model, nhead = 2, 32, 4
    Ns, Nt = 64, 32

    key = jax.random.PRNGKey(0)
    k_sf, k_sx, k_tf, k_tx, k_par = jax.random.split(key, 5)

    search_feat = jax.random.normal(k_sf, (B, d_model, Ns), jnp.float32)
    search_xyz = jax.random.normal(k_sx, (B, Ns, 3), jnp.float32)
    template_feat = jax.random.normal(k_tf, (B, d_model, Nt), jnp.float32)
    template_xyz = jax.random.normal(k_tx, (B, Nt, 3), jnp.float32)
    params = init_params(k_par, d_model)

    ref = jax.block_until_ready(corss_attention_reference(
        params, search_feat, search_xyz, template_feat, template_xyz, nhead))

    # strict correctness check: exact-math path (f32 MXU inputs)
    out_f32 = jax.block_until_ready(corss_attention_pallas(
        params, search_feat, search_xyz, template_feat, template_xyz, nhead,
        mxu_dtype=jnp.float32))
    assert out_f32.shape == (B, d_model, Ns), out_f32.shape
    assert jnp.allclose(out_f32, ref, atol=1e-3, rtol=1e-3), (
        "f32 path max err", float(jnp.max(jnp.abs(out_f32 - ref))))

    # fast path: bf16 MXU inputs, f32 accumulation / elementwise (default)
    out_bf16 = jax.block_until_ready(corss_attention_pallas(
        params, search_feat, search_xyz, template_feat, template_xyz, nhead))
    assert out_bf16.shape == (B, d_model, Ns), out_bf16.shape
    assert jnp.allclose(out_bf16, ref, atol=1e-1, rtol=1e-1), (
        "bf16 path max err", float(jnp.max(jnp.abs(out_bf16 - ref))))

    print("KERNEL_OK")
</pallas_src>

<mosaic_0001>
module attributes {stable_mosaic.version = 11 : i64} {
  func.func @kernel(%arg0: i32, %arg1: memref<2x32x64xf32, #tpu.memory_space<vmem>>, %arg2: memref<2x32x32xf32, #tpu.memory_space<vmem>>, %arg3: memref<2x32x8xf32, #tpu.memory_space<vmem>>, %arg4: memref<8x32xf32, #tpu.memory_space<vmem>>, %arg5: memref<1x32xf32, #tpu.memory_space<vmem>>, %arg6: memref<32x32xf32, #tpu.memory_space<vmem>>, %arg7: memref<1x32xf32, #tpu.memory_space<vmem>>, %arg8: memref<32x64xf32, #tpu.memory_space<vmem>>, %arg9: memref<32x96xf32, #tpu.memory_space<vmem>>, %arg10: memref<32x32xf32, #tpu.memory_space<vmem>>, %arg11: memref<32x32xf32, #tpu.memory_space<vmem>>, %arg12: memref<1x32xf32, #tpu.memory_space<vmem>>, %arg13: memref<1x32xf32, #tpu.memory_space<vmem>>, %arg14: memref<32x64xf32, #tpu.memory_space<vmem>>, %arg15: memref<64x32xf32, #tpu.memory_space<vmem>>, %arg16: memref<1x32xf32, #tpu.memory_space<vmem>>, %arg17: memref<1x32xf32, #tpu.memory_space<vmem>>, %arg18: memref<2x32x64xf32, #tpu.memory_space<vmem>>) attributes {dimension_semantics = [#tpu.dimension_semantics<parallel>], iteration_bounds = array<i64: 1>, scalar_prefetch = 0 : i64, scratch_operands = 0 : i64, tpu.core_type = #tpu.core_type<tc>, window_params = [{transform_indices = @transform_0, window_bounds = array<i64: 2, 32, 64>}, {transform_indices = @transform_1, window_bounds = array<i64: 2, 32, 32>}, {transform_indices = @transform_2, window_bounds = array<i64: 2, 32, 8>}, {pipeline_mode = #tpu.pipeline_mode<synchronous>, transform_indices = @transform_3, window_bounds = array<i64: 8, 32>}, {pipeline_mode = #tpu.pipeline_mode<synchronous>, transform_indices = @transform_4, window_bounds = array<i64: 1, 32>}, {pipeline_mode = #tpu.pipeline_mode<synchronous>, transform_indices = @transform_5, window_bounds = array<i64: 32, 32>}, {pipeline_mode = #tpu.pipeline_mode<synchronous>, transform_indices = @transform_6, window_bounds = array<i64: 1, 32>}, {pipeline_mode = #tpu.pipeline_mode<synchronous>, transform_indices = @transform_7, window_bounds = array<i64: 32, 64>}, {pipeline_mode = #tpu.pipeline_mode<synchronous>, transform_indices = @transform_8, window_bounds = array<i64: 32, 96>}, {pipeline_mode = #tpu.pipeline_mode<synchronous>, transform_indices = @transform_9, window_bounds = array<i64: 32, 32>}, {pipeline_mode = #tpu.pipeline_mode<synchronous>, transform_indices = @transform_10, window_bounds = array<i64: 32, 32>}, {pipeline_mode = #tpu.pipeline_mode<synchronous>, transform_indices = @transform_11, window_bounds = array<i64: 1, 32>}, {pipeline_mode = #tpu.pipeline_mode<synchronous>, transform_indices = @transform_12, window_bounds = array<i64: 1, 32>}, {pipeline_mode = #tpu.pipeline_mode<synchronous>, transform_indices = @transform_13, window_bounds = array<i64: 32, 64>}, {pipeline_mode = #tpu.pipeline_mode<synchronous>, transform_indices = @transform_14, window_bounds = array<i64: 64, 32>}, {pipeline_mode = #tpu.pipeline_mode<synchronous>, transform_indices = @transform_15, window_bounds = array<i64: 1, 32>}, {pipeline_mode = #tpu.pipeline_mode<synchronous>, transform_indices = @transform_16, window_bounds = array<i64: 1, 32>}, {transform_indices = @transform_17, window_bounds = array<i64: 2, 32, 64>}]} {
    %c0 = arith.constant 0 : index
    %c0_0 = arith.constant 0 : index
    %c0_1 = arith.constant 0 : index
    %0 = vector.load %arg1[%c0, %c0_0, %c0_1] : memref<2x32x64xf32, #tpu.memory_space<vmem>>, vector<2x32x64xf32>
    %c0_2 = arith.constant 0 : index
    %c0_3 = arith.constant 0 : index
    %c0_4 = arith.constant 0 : index
    %1 = vector.load %arg2[%c0_2, %c0_3, %c0_4] : memref<2x32x32xf32, #tpu.memory_space<vmem>>, vector<2x32x32xf32>
    %2 = tpu.transpose %0, [0, 2, 1] : vector<2x32x64xf32> -> vector<2x64x32xf32>
    %3 = vector.shape_cast %2 : vector<2x64x32xf32> to vector<128x32xf32>
    %4 = tpu.transpose %1, [0, 2, 1] : vector<2x32x32xf32> -> vector<2x32x32xf32>
    %5 = vector.shape_cast %4 : vector<2x32x32xf32> to vector<64x32xf32>
    %c0_5 = arith.constant 0 : index
    %c0_6 = arith.constant 0 : index
    %c0_7 = arith.constant 0 : index
    %6 = vector.load %arg3[%c0_5, %c0_6, %c0_7] : memref<2x32x8xf32, #tpu.memory_space<vmem>>, vector<2x32x8xf32>
    %7 = vector.shape_cast %6 : vector<2x32x8xf32> to vector<64x8xf32>
    %c0_8 = arith.constant 0 : index
    %c0_9 = arith.constant 0 : index
    %8 = vector.load %arg4[%c0_8, %c0_9] : memref<8x32xf32, #tpu.memory_space<vmem>>, vector<8x32xf32>
    %cst = arith.constant dense<0.000000e+00> : vector<64x32xf32>
    %9 = tpu.matmul %7, %8, %cst {dimension_numbers = #tpu.dot_dimension_numbers<[1], [0], [0], [1], [0, 0, 1, 1], [], []>} : vector<64x8xf32>, vector<8x32xf32>, vector<64x32xf32> -> vector<64x32xf32>
    %c0_10 = arith.constant 0 : index
    %c0_11 = arith.constant 0 : index
    %10 = vector.load %arg5[%c0_10, %c0_11] : memref<1x32xf32, #tpu.memory_space<vmem>>, vector<1x32xf32>
    %11 = vector.broadcast %10 : vector<1x32xf32> to vector<64x32xf32>
    %12 = arith.addf %9, %11 : vector<64x32xf32>
    %cst_12 = arith.constant 0.000000e+00 : f32
    %13 = vector.broadcast %cst_12 : f32 to vector<64x32xf32>
    %14 = arith.maximumf %12, %13 : vector<64x32xf32>
    %c0_13 = arith.constant 0 : index
    %c0_14 = arith.constant 0 : index
    %15 = vector.load %arg9[%c0_13, %c0_14] : memref<32x96xf32, #tpu.memory_space<vmem>>, vector<32x96xf32>
    %cst_15 = arith.constant dense<0.000000e+00> : vector<128x96xf32>
    %16 = tpu.matmul %3, %15, %cst_15 {dimension_numbers = #tpu.dot_dimension_numbers<[1], [0], [0], [1], [0, 0, 1, 1], [], []>} : vector<128x32xf32>, vector<32x96xf32>, vector<128x96xf32> -> vector<128x96xf32>
    %17 = vector.extract_strided_slice %16 {offsets = [0, 0], sizes = [128, 32], strides = [1, 1]} : vector<128x96xf32> to vector<128x32xf32>
    %18 = vector.extract_strided_slice %16 {offsets = [0, 32], sizes = [128, 64], strides = [1, 1]} : vector<128x96xf32> to vector<128x64xf32>
    %c0_16 = arith.constant 0 : index
    %c0_17 = arith.constant 0 : index
    %19 = vector.load %arg8[%c0_16, %c0_17] : memref<32x64xf32, #tpu.memory_space<vmem>>, vector<32x64xf32>
    %cst_18 = arith.constant dense<0.000000e+00> : vector<64x64xf32>
    %20 = tpu.matmul %5, %19, %cst_18 {dimension_numbers = #tpu.dot_dimension_numbers<[1], [0], [0], [1], [0, 0, 1, 1], [], []>} : vector<64x32xf32>, vector<32x64xf32>, vector<64x64xf32> -> vector<64x64xf32>
    %21 = vector.extract_strided_slice %20 {offsets = [0, 0], sizes = [64, 32], strides = [1, 1]} : vector<64x64xf32> to vector<64x32xf32>
    %22 = vector.extract_strided_slice %20 {offsets = [0, 32], sizes = [64, 32], strides = [1, 1]} : vector<64x64xf32> to vector<64x32xf32>
    %c0_19 = arith.constant 0 : index
    %c0_20 = arith.constant 0 : index
    %23 = vector.load %arg6[%c0_19, %c0_20] : memref<32x32xf32, #tpu.memory_space<vmem>>, vector<32x32xf32>
    %cst_21 = arith.constant dense<0.000000e+00> : vector<64x32xf32>
    %24 = tpu.matmul %14, %23, %cst_21 {dimension_numbers = #tpu.dot_dimension_numbers<[1], [0], [0], [1], [0, 0, 1, 1], [], []>} : vector<64x32xf32>, vector<32x32xf32>, vector<64x32xf32> -> vector<64x32xf32>
    %25 = arith.addf %22, %24 : vector<64x32xf32>
    %c0_22 = arith.constant 0 : index
    %c0_23 = arith.constant 0 : index
    %26 = vector.load %arg7[%c0_22, %c0_23] : memref<1x32xf32, #tpu.memory_space<vmem>>, vector<1x32xf32>
    %27 = vector.broadcast %26 : vector<1x32xf32> to vector<64x32xf32>
    %28 = arith.addf %25, %27 : vector<64x32xf32>
    %cst_24 = arith.constant 0.000000e+00 : f32
    %29 = vector.broadcast %cst_24 : f32 to vector<128x32xf32>
    %30 = arith.cmpf ogt, %17, %29 : vector<128x32xf32>
    %cst_25 = arith.constant 1.000000e+00 : f32
    %31 = vector.broadcast %cst_25 : f32 to vector<128x32xf32>
    %32 = arith.addf %17, %31 : vector<128x32xf32>
    %33 = math.exp %17 : vector<128x32xf32>
    %34 = arith.select %30, %32, %33 : vector<128x32xi1>, vector<128x32xf32>
    %cst_26 = arith.constant 0.000000e+00 : f32
    %35 = vector.broadcast %cst_26 : f32 to vector<64x32xf32>
    %36 = arith.cmpf ogt, %21, %35 : vector<64x32xf32>
    %cst_27 = arith.constant 1.000000e+00 : f32
    %37 = vector.broadcast %cst_27 : f32 to vector<64x32xf32>
    %38 = arith.addf %21, %37 : vector<64x32xf32>
    %39 = math.exp %21 : vector<64x32xf32>
    %40 = arith.select %36, %38, %39 : vector<64x32xi1>, vector<64x32xf32>
    %c0_28 = arith.constant 0 : index
    %c0_29 = arith.constant 0 : index
    %41 = vector.load %arg11[%c0_28, %c0_29] : memref<32x32xf32, #tpu.memory_space<vmem>>, vector<32x32xf32>
    %42 = vector.shape_cast %40 : vector<64x32xf32> to vector<2x32x32xf32>
    %43 = tpu.transpose %42, [0, 2, 1] : vector<2x32x32xf32> -> vector<2x32x32xf32>
    %44 = vector.shape_cast %28 : vector<64x32xf32> to vector<2x32x32xf32>
    "tpu.trace_start"() <{level = 10 : i32, message = "bck,bkd->bcd"}> : () -> ()
    %cst_30 = arith.constant dense<0.000000e+00> : vector<2x32x32xf32>
    %45 = tpu.matmul %43, %44, %cst_30 {dimension_numbers = #tpu.dot_dimension_numbers<[2], [1], [1], [2], [0, 0, 0, 1, 1, 2], [0], [0]>} : vector<2x32x32xf32>, vector<2x32x32xf32>, vector<2x32x32xf32> -> vector<2x32x32xf32>
    "tpu.trace_stop"() : () -> ()
    %cst_31 = arith.constant dense<0.000000e+00> : vector<2x32xf32>
    %46 = vector.multi_reduction <add>, %43, %cst_31 [2] : vector<2x32x32xf32> to vector<2x32xf32>
    %47 = vector.shape_cast %41 : vector<32x32xf32> to vector<1x32x32xf32>
    %48 = vector.broadcast %47 : vector<1x32x32xf32> to vector<2x32x32xf32>
    %49 = arith.mulf %45, %48 : vector<2x32x32xf32>
    %50 = vector.shape_cast %46 : vector<2x32xf32> to vector<2x32x1xf32>
    %51 = vector.shape_cast %41 : vector<32x32xf32> to vector<1x32x32xf32>
    %52 = vector.broadcast %50 : vector<2x32x1xf32> to vector<2x32x32xf32>
    %53 = vector.broadcast %51 : vector<1x32x32xf32> to vector<2x32x32xf32>
    %54 = arith.mulf %52, %53 : vector<2x32x32xf32>
    %55 = tpu.concatenate %49, %54 in 2 : vector<2x32x32xf32>, vector<2x32x32xf32> -> vector<2x32x64xf32>
    %56 = vector.shape_cast %34 : vector<128x32xf32> to vector<2x64x32xf32>
    "tpu.trace_start"() <{level = 10 : i32, message = "bqc,bcd->bqd"}> : () -> ()
    %cst_32 = arith.constant dense<0.000000e+00> : vector<2x64x64xf32>
    %57 = tpu.matmul %56, %55, %cst_32 {dimension_numbers = #tpu.dot_dimension_numbers<[2], [1], [1], [2], [0, 0, 0, 1, 1, 2], [0], [0]>} : vector<2x64x32xf32>, vector<2x32x64xf32>, vector<2x64x64xf32> -> vector<2x64x64xf32>
    "tpu.trace_stop"() : () -> ()
    %58 = vector.extract_strided_slice %57 {offsets = [0, 0, 0], sizes = [2, 64, 32], strides = [1, 1, 1]} : vector<2x64x64xf32> to vector<2x64x32xf32>
    %59 = vector.extract_strided_slice %57 {offsets = [0, 0, 32], sizes = [2, 64, 32], strides = [1, 1, 1]} : vector<2x64x64xf32> to vector<2x64x32xf32>
    %cst_33 = arith.constant 9.99999997E-7 : f32
    %60 = vector.broadcast %cst_33 : f32 to vector<2x64x32xf32>
    %61 = arith.addf %59, %60 : vector<2x64x32xf32>
    %cst_34 = arith.constant 1.000000e+00 : f32
    %62 = vector.broadcast %cst_34 : f32 to vector<2x64x32xf32>
    %63 = arith.divf %62, %61 : vector<2x64x32xf32>
    %64 = arith.mulf %58, %63 : vector<2x64x32xf32>
    %65 = vector.shape_cast %64 : vector<2x64x32xf32> to vector<128x32xf32>
    %c0_35 = arith.constant 0 : index
    %c0_36 = arith.constant 0 : index
    %66 = vector.load %arg10[%c0_35, %c0_36] : memref<32x32xf32, #tpu.memory_space<vmem>>, vector<32x32xf32>
    %cst_37 = arith.constant dense<0.000000e+00> : vector<128x32xf32>
    %67 = tpu.matmul %65, %66, %cst_37 {dimension_numbers = #tpu.dot_dimension_numbers<[1], [0], [0], [1], [0, 0, 1, 1], [], []>} : vector<128x32xf32>, vector<32x32xf32>, vector<128x32xf32> -> vector<128x32xf32>
    %c0_38 = arith.constant 0 : index
    %c0_39 = arith.constant 0 : index
    %68 = vector.load %arg12[%c0_38, %c0_39] : memref<1x32xf32, #tpu.memory_space<vmem>>, vector<1x32xf32>
    %c0_40 = arith.constant 0 : index
    %c0_41 = arith.constant 0 : index
    %69 = vector.load %arg13[%c0_40, %c0_41] : memref<1x32xf32, #tpu.memory_space<vmem>>, vector<1x32xf32>
    %cst_42 = arith.constant dense<0.000000e+00> : vector<128xf32>
    %70 = vector.multi_reduction <add>, %67, %cst_42 [1] : vector<128x32xf32> to vector<128xf32>
    %71 = vector.shape_cast %70 : vector<128xf32> to vector<128x1xf32>
    %cst_43 = arith.constant 3.200000e+01 : f32
    %72 = vector.broadcast %cst_43 : f32 to vector<128x1xf32>
    %73 = arith.divf %71, %72 : vector<128x1xf32>
    %74 = vector.broadcast %73 : vector<128x1xf32> to vector<128x32xf32>
    %75 = arith.subf %67, %74 : vector<128x32xf32>
    %76 = arith.mulf %75, %75 : vector<128x32xf32>
    %cst_44 = arith.constant dense<0.000000e+00> : vector<128xf32>
    %77 = vector.multi_reduction <add>, %76, %cst_44 [1] : vector<128x32xf32> to vector<128xf32>
    %78 = vector.shape_cast %77 : vector<128xf32> to vector<128x1xf32>
    %cst_45 = arith.constant 3.200000e+01 : f32
    %79 = vector.broadcast %cst_45 : f32 to vector<128x1xf32>
    %80 = arith.divf %78, %79 : vector<128x1xf32>
    %81 = vector.broadcast %73 : vector<128x1xf32> to vector<128x32xf32>
    %82 = arith.subf %67, %81 : vector<128x32xf32>
    %cst_46 = arith.constant 9.99999974E-6 : f32
    %83 = vector.broadcast %cst_46 : f32 to vector<128x1xf32>
    %84 = arith.addf %80, %83 : vector<128x1xf32>
    %85 = math.rsqrt %84 : vector<128x1xf32>
    %86 = vector.broadcast %85 : vector<128x1xf32> to vector<128x32xf32>
    %87 = arith.mulf %82, %86 : vector<128x32xf32>
    %88 = vector.broadcast %68 : vector<1x32xf32> to vector<128x32xf32>
    %89 = arith.mulf %87, %88 : vector<128x32xf32>
    %90 = vector.broadcast %69 : vector<1x32xf32> to vector<128x32xf32>
    %91 = arith.addf %89, %90 : vector<128x32xf32>
    %c0_47 = arith.constant 0 : index
    %c0_48 = arith.constant 0 : index
    %92 = vector.load %arg14[%c0_47, %c0_48] : memref<32x64xf32, #tpu.memory_space<vmem>>, vector<32x64xf32>
    %cst_49 = arith.constant dense<0.000000e+00> : vector<128x64xf32>
    %93 = tpu.matmul %91, %92, %cst_49 {dimension_numbers = #tpu.dot_dimension_numbers<[1], [0], [0], [1], [0, 0, 1, 1], [], []>} : vector<128x32xf32>, vector<32x64xf32>, vector<128x64xf32> -> vector<128x64xf32>
    %94 = arith.addf %18, %93 : vector<128x64xf32>
    %cst_50 = arith.constant 0.000000e+00 : f32
    %95 = vector.broadcast %cst_50 : f32 to vector<128x64xf32>
    %96 = arith.maximumf %94, %95 : vector<128x64xf32>
    %c0_51 = arith.constant 0 : index
    %c0_52 = arith.constant 0 : index
    %97 = vector.load %arg15[%c0_51, %c0_52] : memref<64x32xf32, #tpu.memory_space<vmem>>, vector<64x32xf32>
    %cst_53 = arith.constant dense<0.000000e+00> : vector<128x32xf32>
    %98 = tpu.matmul %96, %97, %cst_53 {dimension_numbers = #tpu.dot_dimension_numbers<[1], [0], [0], [1], [0, 0, 1, 1], [], []>} : vector<128x64xf32>, vector<64x32xf32>, vector<128x32xf32> -> vector<128x32xf32>
    %c0_54 = arith.constant 0 : index
    %c0_55 = arith.constant 0 : index
    %99 = vector.load %arg16[%c0_54, %c0_55] : memref<1x32xf32, #tpu.memory_space<vmem>>, vector<1x32xf32>
    %c0_56 = arith.constant 0 : index
    %c0_57 = arith.constant 0 : index
    %100 = vector.load %arg17[%c0_56, %c0_57] : memref<1x32xf32, #tpu.memory_space<vmem>>, vector<1x32xf32>
    %cst_58 = arith.constant dense<0.000000e+00> : vector<128xf32>
    %101 = vector.multi_reduction <add>, %98, %cst_58 [1] : vector<128x32xf32> to vector<128xf32>
    %102 = vector.shape_cast %101 : vector<128xf32> to vector<128x1xf32>
    %cst_59 = arith.constant 3.200000e+01 : f32
    %103 = vector.broadcast %cst_59 : f32 to vector<128x1xf32>
    %104 = arith.divf %102, %103 : vector<128x1xf32>
    %105 = vector.broadcast %104 : vector<128x1xf32> to vector<128x32xf32>
    %106 = arith.subf %98, %105 : vector<128x32xf32>
    %107 = arith.mulf %106, %106 : vector<128x32xf32>
    %cst_60 = arith.constant dense<0.000000e+00> : vector<128xf32>
    %108 = vector.multi_reduction <add>, %107, %cst_60 [1] : vector<128x32xf32> to vector<128xf32>
    %109 = vector.shape_cast %108 : vector<128xf32> to vector<128x1xf32>
    %cst_61 = arith.constant 3.200000e+01 : f32
    %110 = vector.broadcast %cst_61 : f32 to vector<128x1xf32>
    %111 = arith.divf %109, %110 : vector<128x1xf32>
    %112 = vector.broadcast %104 : vector<128x1xf32> to vector<128x32xf32>
    %113 = arith.subf %98, %112 : vector<128x32xf32>
    %cst_62 = arith.constant 9.99999974E-6 : f32
    %114 = vector.broadcast %cst_62 : f32 to vector<128x1xf32>
    %115 = arith.addf %111, %114 : vector<128x1xf32>
    %116 = math.rsqrt %115 : vector<128x1xf32>
    %117 = vector.broadcast %116 : vector<128x1xf32> to vector<128x32xf32>
    %118 = arith.mulf %113, %117 : vector<128x32xf32>
    %119 = vector.broadcast %99 : vector<1x32xf32> to vector<128x32xf32>
    %120 = arith.mulf %118, %119 : vector<128x32xf32>
    %121 = vector.broadcast %100 : vector<1x32xf32> to vector<128x32xf32>
    %122 = arith.addf %120, %121 : vector<128x32xf32>
    %123 = vector.shape_cast %122 : vector<128x32xf32> to vector<2x64x32xf32>
    %124 = tpu.transpose %123, [0, 2, 1] : vector<2x64x32xf32> -> vector<2x32x64xf32>
    %125 = arith.addf %0, %124 : vector<2x32x64xf32>
    %c0_63 = arith.constant 0 : index
    %c0_64 = arith.constant 0 : index
    %c0_65 = arith.constant 0 : index
    %126 = vector.load %arg18[%c0_63, %c0_64, %c0_65] : memref<2x32x64xf32, #tpu.memory_space<vmem>>, vector<2x32x64xf32>
    tpu.vector_store %arg18[%c0_63, %c0_64, %c0_65], %125 {strides = array<i32>} : memref<2x32x64xf32, #tpu.memory_space<vmem>>, vector<2x32x64xf32>,
    return
  }
  func.func @transform_0(%arg0: i32) -> (i32, i32, i32) {
    %c0_i32 = arith.constant 0 : i32
    %c0_i32_0 = arith.constant 0 : i32
    %c0_i32_1 = arith.constant 0 : i32
    return %arg0, %c0_i32, %c0_i32_0 : i32, i32, i32
  }
  func.func @transform_1(%arg0: i32) -> (i32, i32, i32) {
    %c0_i32 = arith.constant 0 : i32
    %c0_i32_0 = arith.constant 0 : i32
    %c0_i32_1 = arith.constant 0 : i32
    return %arg0, %c0_i32, %c0_i32_0 : i32, i32, i32
  }
  func.func @transform_2(%arg0: i32) -> (i32, i32, i32) {
    %c0_i32 = arith.constant 0 : i32
    %c0_i32_0 = arith.constant 0 : i32
    %c0_i32_1 = arith.constant 0 : i32
    return %arg0, %c0_i32, %c0_i32_0 : i32, i32, i32
  }
  func.func @transform_3(%arg0: i32) -> (i32, i32) {
    %c0_i32 = arith.constant 0 : i32
    %c0_i32_0 = arith.constant 0 : i32
    %c0_i32_1 = arith.constant 0 : i32
    return %c0_i32, %c0_i32_0 : i32, i32
  }
  func.func @transform_4(%arg0: i32) -> (i32, i32) {
    %c0_i32 = arith.constant 0 : i32
    %c0_i32_0 = arith.constant 0 : i32
    %c0_i32_1 = arith.constant 0 : i32
    return %c0_i32, %c0_i32_0 : i32, i32
  }
  func.func @transform_5(%arg0: i32) -> (i32, i32) {
    %c0_i32 = arith.constant 0 : i32
    %c0_i32_0 = arith.constant 0 : i32
    %c0_i32_1 = arith.constant 0 : i32
    return %c0_i32, %c0_i32_0 : i32, i32
  }
  func.func @transform_6(%arg0: i32) -> (i32, i32) {
    %c0_i32 = arith.constant 0 : i32
    %c0_i32_0 = arith.constant 0 : i32
    %c0_i32_1 = arith.constant 0 : i32
    return %c0_i32, %c0_i32_0 : i32, i32
  }
  func.func @transform_7(%arg0: i32) -> (i32, i32) {
    %c0_i32 = arith.constant 0 : i32
    %c0_i32_0 = arith.constant 0 : i32
    %c0_i32_1 = arith.constant 0 : i32
    return %c0_i32, %c0_i32_0 : i32, i32
  }
  func.func @transform_8(%arg0: i32) -> (i32, i32) {
    %c0_i32 = arith.constant 0 : i32
    %c0_i32_0 = arith.constant 0 : i32
    %c0_i32_1 = arith.constant 0 : i32
    return %c0_i32, %c0_i32_0 : i32, i32
  }
  func.func @transform_9(%arg0: i32) -> (i32, i32) {
    %c0_i32 = arith.constant 0 : i32
    %c0_i32_0 = arith.constant 0 : i32
    %c0_i32_1 = arith.constant 0 : i32
    return %c0_i32, %c0_i32_0 : i32, i32
  }
  func.func @transform_10(%arg0: i32) -> (i32, i32) {
    %c0_i32 = arith.constant 0 : i32
    %c0_i32_0 = arith.constant 0 : i32
    %c0_i32_1 = arith.constant 0 : i32
    return %c0_i32, %c0_i32_0 : i32, i32
  }
  func.func @transform_11(%arg0: i32) -> (i32, i32) {
    %c0_i32 = arith.constant 0 : i32
    %c0_i32_0 = arith.constant 0 : i32
    %c0_i32_1 = arith.constant 0 : i32
    return %c0_i32, %c0_i32_0 : i32, i32
  }
  func.func @transform_12(%arg0: i32) -> (i32, i32) {
    %c0_i32 = arith.constant 0 : i32
    %c0_i32_0 = arith.constant 0 : i32
    %c0_i32_1 = arith.constant 0 : i32
    return %c0_i32, %c0_i32_0 : i32, i32
  }
  func.func @transform_13(%arg0: i32) -> (i32, i32) {
    %c0_i32 = arith.constant 0 : i32
    %c0_i32_0 = arith.constant 0 : i32
    %c0_i32_1 = arith.constant 0 : i32
    return %c0_i32, %c0_i32_0 : i32, i32
  }
  func.func @transform_14(%arg0: i32) -> (i32, i32) {
    %c0_i32 = arith.constant 0 : i32
    %c0_i32_0 = arith.constant 0 : i32
    %c0_i32_1 = arith.constant 0 : i32
    return %c0_i32, %c0_i32_0 : i32, i32
  }
  func.func @transform_15(%arg0: i32) -> (i32, i32) {
    %c0_i32 = arith.constant 0 : i32
    %c0_i32_0 = arith.constant 0 : i32
    %c0_i32_1 = arith.constant 0 : i32
    return %c0_i32, %c0_i32_0 : i32, i32
  }
  func.func @transform_16(%arg0: i32) -> (i32, i32) {
    %c0_i32 = arith.constant 0 : i32
    %c0_i32_0 = arith.constant 0 : i32
    %c0_i32_1 = arith.constant 0 : i32
    return %c0_i32, %c0_i32_0 : i32, i32
  }
  func.func @transform_17(%arg0: i32) -> (i32, i32, i32) {
    %c0_i32 = arith.constant 0 : i32
    %c0_i32_0 = arith.constant 0 : i32
    %c0_i32_1 = arith.constant 0 : i32
    return %arg0, %c0_i32, %c0_i32_0 : i32, i32, i32
  }
}

module attributes {stable_mosaic.version = 11 : i64} {
  func.func @kernel(%arg0: i32, %arg1: memref<2x32x64xf32, #tpu.memory_space<vmem>>, %arg2: memref<2x32x32xf32, #tpu.memory_space<vmem>>, %arg3: memref<2x32x8xf32, #tpu.memory_space<vmem>>, %arg4: memref<8x32xf32, #tpu.memory_space<vmem>>, %arg5: memref<1x32xf32, #tpu.memory_space<vmem>>, %arg6: memref<32x32xf32, #tpu.memory_space<vmem>>, %arg7: memref<1x32xf32, #tpu.memory_space<vmem>>, %arg8: memref<32x64xf32, #tpu.memory_space<vmem>>, %arg9: memref<32x96xf32, #tpu.memory_space<vmem>>, %arg10: memref<32x32xf32, #tpu.memory_space<vmem>>, %arg11: memref<32x32xf32, #tpu.memory_space<vmem>>, %arg12: memref<1x32xf32, #tpu.memory_space<vmem>>, %arg13: memref<1x32xf32, #tpu.memory_space<vmem>>, %arg14: memref<32x64xf32, #tpu.memory_space<vmem>>, %arg15: memref<64x32xf32, #tpu.memory_space<vmem>>, %arg16: memref<1x32xf32, #tpu.memory_space<vmem>>, %arg17: memref<1x32xf32, #tpu.memory_space<vmem>>, %arg18: memref<2x32x64xf32, #tpu.memory_space<vmem>>) attributes {dimension_semantics = [#tpu.dimension_semantics<parallel>], iteration_bounds = array<i64: 1>, scalar_prefetch = 0 : i64, scratch_operands = 0 : i64, tpu.core_type = #tpu.core_type<tc>, window_params = [{transform_indices = @transform_0, window_bounds = array<i64: 2, 32, 64>}, {transform_indices = @transform_1, window_bounds = array<i64: 2, 32, 32>}, {transform_indices = @transform_2, window_bounds = array<i64: 2, 32, 8>}, {pipeline_mode = #tpu.pipeline_mode<synchronous>, transform_indices = @transform_3, window_bounds = array<i64: 8, 32>}, {pipeline_mode = #tpu.pipeline_mode<synchronous>, transform_indices = @transform_4, window_bounds = array<i64: 1, 32>}, {pipeline_mode = #tpu.pipeline_mode<synchronous>, transform_indices = @transform_5, window_bounds = array<i64: 32, 32>}, {pipeline_mode = #tpu.pipeline_mode<synchronous>, transform_indices = @transform_6, window_bounds = array<i64: 1, 32>}, {pipeline_mode = #tpu.pipeline_mode<synchronous>, transform_indices = @transform_7, window_bounds = array<i64: 32, 64>}, {pipeline_mode = #tpu.pipeline_mode<synchronous>, transform_indices = @transform_8, window_bounds = array<i64: 32, 96>}, {pipeline_mode = #tpu.pipeline_mode<synchronous>, transform_indices = @transform_9, window_bounds = array<i64: 32, 32>}, {pipeline_mode = #tpu.pipeline_mode<synchronous>, transform_indices = @transform_10, window_bounds = array<i64: 32, 32>}, {pipeline_mode = #tpu.pipeline_mode<synchronous>, transform_indices = @transform_11, window_bounds = array<i64: 1, 32>}, {pipeline_mode = #tpu.pipeline_mode<synchronous>, transform_indices = @transform_12, window_bounds = array<i64: 1, 32>}, {pipeline_mode = #tpu.pipeline_mode<synchronous>, transform_indices = @transform_13, window_bounds = array<i64: 32, 64>}, {pipeline_mode = #tpu.pipeline_mode<synchronous>, transform_indices = @transform_14, window_bounds = array<i64: 64, 32>}, {pipeline_mode = #tpu.pipeline_mode<synchronous>, transform_indices = @transform_15, window_bounds = array<i64: 1, 32>}, {pipeline_mode = #tpu.pipeline_mode<synchronous>, transform_indices = @transform_16, window_bounds = array<i64: 1, 32>}, {transform_indices = @transform_17, window_bounds = array<i64: 2, 32, 64>}]} {
    %c0 = arith.constant 0 : index
    %c0_0 = arith.constant 0 : index
    %c0_1 = arith.constant 0 : index
    %0 = vector.load %arg1[%c0, %c0_0, %c0_1] : memref<2x32x64xf32, #tpu.memory_space<vmem>>, vector<2x32x64xf32>
    %c0_2 = arith.constant 0 : index
    %c0_3 = arith.constant 0 : index
    %c0_4 = arith.constant 0 : index
    %1 = vector.load %arg2[%c0_2, %c0_3, %c0_4] : memref<2x32x32xf32, #tpu.memory_space<vmem>>, vector<2x32x32xf32>
    %2 = tpu.transpose %0, [0, 2, 1] : vector<2x32x64xf32> -> vector<2x64x32xf32>
    %3 = vector.shape_cast %2 : vector<2x64x32xf32> to vector<128x32xf32>
    %4 = tpu.transpose %1, [0, 2, 1] : vector<2x32x32xf32> -> vector<2x32x32xf32>
    %5 = vector.shape_cast %4 : vector<2x32x32xf32> to vector<64x32xf32>
    %c0_5 = arith.constant 0 : index
    %c0_6 = arith.constant 0 : index
    %c0_7 = arith.constant 0 : index
    %6 = vector.load %arg3[%c0_5, %c0_6, %c0_7] : memref<2x32x8xf32, #tpu.memory_space<vmem>>, vector<2x32x8xf32>
    %7 = vector.shape_cast %6 : vector<2x32x8xf32> to vector<64x8xf32>
    %c0_8 = arith.constant 0 : index
    %c0_9 = arith.constant 0 : index
    %8 = vector.load %arg4[%c0_8, %c0_9] : memref<8x32xf32, #tpu.memory_space<vmem>>, vector<8x32xf32>
    %cst = arith.constant dense<0.000000e+00> : vector<64x32xf32>
    %9 = tpu.matmul %7, %8, %cst {dimension_numbers = #tpu.dot_dimension_numbers<[1], [0], [0], [1], [0, 0, 1, 1], [], []>} : vector<64x8xf32>, vector<8x32xf32>, vector<64x32xf32> -> vector<64x32xf32>
    %c0_10 = arith.constant 0 : index
    %c0_11 = arith.constant 0 : index
    %10 = vector.load %arg5[%c0_10, %c0_11] : memref<1x32xf32, #tpu.memory_space<vmem>>, vector<1x32xf32>
    %11 = vector.broadcast %10 : vector<1x32xf32> to vector<64x32xf32>
    %12 = arith.addf %9, %11 : vector<64x32xf32>
    %cst_12 = arith.constant 0.000000e+00 : f32
    %13 = vector.broadcast %cst_12 : f32 to vector<64x32xf32>
    %14 = arith.maximumf %12, %13 : vector<64x32xf32>
    %c0_13 = arith.constant 0 : index
    %c0_14 = arith.constant 0 : index
    %15 = vector.load %arg9[%c0_13, %c0_14] : memref<32x96xf32, #tpu.memory_space<vmem>>, vector<32x96xf32>
    %cst_15 = arith.constant dense<0.000000e+00> : vector<128x96xf32>
    %16 = tpu.matmul %3, %15, %cst_15 {dimension_numbers = #tpu.dot_dimension_numbers<[1], [0], [0], [1], [0, 0, 1, 1], [], []>} : vector<128x32xf32>, vector<32x96xf32>, vector<128x96xf32> -> vector<128x96xf32>
    %17 = vector.extract_strided_slice %16 {offsets = [0, 0], sizes = [128, 32], strides = [1, 1]} : vector<128x96xf32> to vector<128x32xf32>
    %18 = vector.extract_strided_slice %16 {offsets = [0, 32], sizes = [128, 64], strides = [1, 1]} : vector<128x96xf32> to vector<128x64xf32>
    %c0_16 = arith.constant 0 : index
    %c0_17 = arith.constant 0 : index
    %19 = vector.load %arg8[%c0_16, %c0_17] : memref<32x64xf32, #tpu.memory_space<vmem>>, vector<32x64xf32>
    %cst_18 = arith.constant dense<0.000000e+00> : vector<64x64xf32>
    %20 = tpu.matmul %5, %19, %cst_18 {dimension_numbers = #tpu.dot_dimension_numbers<[1], [0], [0], [1], [0, 0, 1, 1], [], []>} : vector<64x32xf32>, vector<32x64xf32>, vector<64x64xf32> -> vector<64x64xf32>
    %21 = vector.extract_strided_slice %20 {offsets = [0, 0], sizes = [64, 32], strides = [1, 1]} : vector<64x64xf32> to vector<64x32xf32>
    %22 = vector.extract_strided_slice %20 {offsets = [0, 32], sizes = [64, 32], strides = [1, 1]} : vector<64x64xf32> to vector<64x32xf32>
    %c0_19 = arith.constant 0 : index
    %c0_20 = arith.constant 0 : index
    %23 = vector.load %arg6[%c0_19, %c0_20] : memref<32x32xf32, #tpu.memory_space<vmem>>, vector<32x32xf32>
    %cst_21 = arith.constant dense<0.000000e+00> : vector<64x32xf32>
    %24 = tpu.matmul %14, %23, %cst_21 {dimension_numbers = #tpu.dot_dimension_numbers<[1], [0], [0], [1], [0, 0, 1, 1], [], []>} : vector<64x32xf32>, vector<32x32xf32>, vector<64x32xf32> -> vector<64x32xf32>
    %25 = arith.addf %22, %24 : vector<64x32xf32>
    %c0_22 = arith.constant 0 : index
    %c0_23 = arith.constant 0 : index
    %26 = vector.load %arg7[%c0_22, %c0_23] : memref<1x32xf32, #tpu.memory_space<vmem>>, vector<1x32xf32>
    %27 = vector.broadcast %26 : vector<1x32xf32> to vector<64x32xf32>
    %28 = arith.addf %25, %27 : vector<64x32xf32>
    %cst_24 = arith.constant 0.000000e+00 : f32
    %29 = vector.broadcast %cst_24 : f32 to vector<128x32xf32>
    %30 = arith.cmpf ogt, %17, %29 : vector<128x32xf32>
    %cst_25 = arith.constant 1.000000e+00 : f32
    %31 = vector.broadcast %cst_25 : f32 to vector<128x32xf32>
    %32 = arith.addf %17, %31 : vector<128x32xf32>
    %33 = math.exp %17 : vector<128x32xf32>
    %34 = arith.select %30, %32, %33 : vector<128x32xi1>, vector<128x32xf32>
    %cst_26 = arith.constant 0.000000e+00 : f32
    %35 = vector.broadcast %cst_26 : f32 to vector<64x32xf32>
    %36 = arith.cmpf ogt, %21, %35 : vector<64x32xf32>
    %cst_27 = arith.constant 1.000000e+00 : f32
    %37 = vector.broadcast %cst_27 : f32 to vector<64x32xf32>
    %38 = arith.addf %21, %37 : vector<64x32xf32>
    %39 = math.exp %21 : vector<64x32xf32>
    %40 = arith.select %36, %38, %39 : vector<64x32xi1>, vector<64x32xf32>
    %c0_28 = arith.constant 0 : index
    %c0_29 = arith.constant 0 : index
    %41 = vector.load %arg11[%c0_28, %c0_29] : memref<32x32xf32, #tpu.memory_space<vmem>>, vector<32x32xf32>
    %42 = vector.shape_cast %40 : vector<64x32xf32> to vector<2x32x32xf32>
    %43 = tpu.transpose %42, [0, 2, 1] : vector<2x32x32xf32> -> vector<2x32x32xf32>
    %44 = vector.shape_cast %28 : vector<64x32xf32> to vector<2x32x32xf32>
    "tpu.trace_start"() <{level = 10 : i32, message = "bck,bkd->bcd"}> : () -> ()
    %cst_30 = arith.constant dense<0.000000e+00> : vector<2x32x32xf32>
    %45 = tpu.matmul %43, %44, %cst_30 {dimension_numbers = #tpu.dot_dimension_numbers<[2], [1], [1], [2], [0, 0, 0, 1, 1, 2], [0], [0]>} : vector<2x32x32xf32>, vector<2x32x32xf32>, vector<2x32x32xf32> -> vector<2x32x32xf32>
    "tpu.trace_stop"() : () -> ()
    %cst_31 = arith.constant dense<0.000000e+00> : vector<2x32xf32>
    %46 = vector.multi_reduction <add>, %43, %cst_31 [2] : vector<2x32x32xf32> to vector<2x32xf32>
    %47 = vector.shape_cast %41 : vector<32x32xf32> to vector<1x32x32xf32>
    %48 = vector.broadcast %47 : vector<1x32x32xf32> to vector<2x32x32xf32>
    %49 = arith.mulf %45, %48 : vector<2x32x32xf32>
    %50 = vector.shape_cast %46 : vector<2x32xf32> to vector<2x32x1xf32>
    %51 = vector.shape_cast %41 : vector<32x32xf32> to vector<1x32x32xf32>
    %52 = vector.broadcast %50 : vector<2x32x1xf32> to vector<2x32x32xf32>
    %53 = vector.broadcast %51 : vector<1x32x32xf32> to vector<2x32x32xf32>
    %54 = arith.mulf %52, %53 : vector<2x32x32xf32>
    %55 = tpu.concatenate %49, %54 in 2 : vector<2x32x32xf32>, vector<2x32x32xf32> -> vector<2x32x64xf32>
    %56 = vector.shape_cast %34 : vector<128x32xf32> to vector<2x64x32xf32>
    "tpu.trace_start"() <{level = 10 : i32, message = "bqc,bcd->bqd"}> : () -> ()
    %cst_32 = arith.constant dense<0.000000e+00> : vector<2x64x64xf32>
    %57 = tpu.matmul %56, %55, %cst_32 {dimension_numbers = #tpu.dot_dimension_numbers<[2], [1], [1], [2], [0, 0, 0, 1, 1, 2], [0], [0]>} : vector<2x64x32xf32>, vector<2x32x64xf32>, vector<2x64x64xf32> -> vector<2x64x64xf32>
    "tpu.trace_stop"() : () -> ()
    %58 = vector.extract_strided_slice %57 {offsets = [0, 0, 0], sizes = [2, 64, 32], strides = [1, 1, 1]} : vector<2x64x64xf32> to vector<2x64x32xf32>
    %59 = vector.extract_strided_slice %57 {offsets = [0, 0, 32], sizes = [2, 64, 32], strides = [1, 1, 1]} : vector<2x64x64xf32> to vector<2x64x32xf32>
    %cst_33 = arith.constant 9.99999997E-7 : f32
    %60 = vector.broadcast %cst_33 : f32 to vector<2x64x32xf32>
    %61 = arith.addf %59, %60 : vector<2x64x32xf32>
    %cst_34 = arith.constant 1.000000e+00 : f32
    %62 = vector.broadcast %cst_34 : f32 to vector<2x64x32xf32>
    %63 = arith.divf %62, %61 : vector<2x64x32xf32>
    %64 = arith.mulf %58, %63 : vector<2x64x32xf32>
    %65 = vector.shape_cast %64 : vector<2x64x32xf32> to vector<128x32xf32>
    %c0_35 = arith.constant 0 : index
    %c0_36 = arith.constant 0 : index
    %66 = vector.load %arg10[%c0_35, %c0_36] : memref<32x32xf32, #tpu.memory_space<vmem>>, vector<32x32xf32>
    %cst_37 = arith.constant dense<0.000000e+00> : vector<128x32xf32>
    %67 = tpu.matmul %65, %66, %cst_37 {dimension_numbers = #tpu.dot_dimension_numbers<[1], [0], [0], [1], [0, 0, 1, 1], [], []>} : vector<128x32xf32>, vector<32x32xf32>, vector<128x32xf32> -> vector<128x32xf32>
    %c0_38 = arith.constant 0 : index
    %c0_39 = arith.constant 0 : index
    %68 = vector.load %arg12[%c0_38, %c0_39] : memref<1x32xf32, #tpu.memory_space<vmem>>, vector<1x32xf32>
    %c0_40 = arith.constant 0 : index
    %c0_41 = arith.constant 0 : index
    %69 = vector.load %arg13[%c0_40, %c0_41] : memref<1x32xf32, #tpu.memory_space<vmem>>, vector<1x32xf32>
    %cst_42 = arith.constant dense<0.000000e+00> : vector<128xf32>
    %70 = vector.multi_reduction <add>, %67, %cst_42 [1] : vector<128x32xf32> to vector<128xf32>
    %71 = vector.shape_cast %70 : vector<128xf32> to vector<128x1xf32>
    %cst_43 = arith.constant 3.200000e+01 : f32
    %72 = vector.broadcast %cst_43 : f32 to vector<128x1xf32>
    %73 = arith.divf %71, %72 : vector<128x1xf32>
    %74 = vector.broadcast %73 : vector<128x1xf32> to vector<128x32xf32>
    %75 = arith.subf %67, %74 : vector<128x32xf32>
    %76 = arith.mulf %75, %75 : vector<128x32xf32>
    %cst_44 = arith.constant dense<0.000000e+00> : vector<128xf32>
    %77 = vector.multi_reduction <add>, %76, %cst_44 [1] : vector<128x32xf32> to vector<128xf32>
    %78 = vector.shape_cast %77 : vector<128xf32> to vector<128x1xf32>
    %cst_45 = arith.constant 3.200000e+01 : f32
    %79 = vector.broadcast %cst_45 : f32 to vector<128x1xf32>
    %80 = arith.divf %78, %79 : vector<128x1xf32>
    %81 = vector.broadcast %73 : vector<128x1xf32> to vector<128x32xf32>
    %82 = arith.subf %67, %81 : vector<128x32xf32>
    %cst_46 = arith.constant 9.99999974E-6 : f32
    %83 = vector.broadcast %cst_46 : f32 to vector<128x1xf32>
    %84 = arith.addf %80, %83 : vector<128x1xf32>
    %85 = math.rsqrt %84 : vector<128x1xf32>
    %86 = vector.broadcast %85 : vector<128x1xf32> to vector<128x32xf32>
    %87 = arith.mulf %82, %86 : vector<128x32xf32>
    %88 = vector.broadcast %68 : vector<1x32xf32> to vector<128x32xf32>
    %89 = arith.mulf %87, %88 : vector<128x32xf32>
    %90 = vector.broadcast %69 : vector<1x32xf32> to vector<128x32xf32>
    %91 = arith.addf %89, %90 : vector<128x32xf32>
    %c0_47 = arith.constant 0 : index
    %c0_48 = arith.constant 0 : index
    %92 = vector.load %arg14[%c0_47, %c0_48] : memref<32x64xf32, #tpu.memory_space<vmem>>, vector<32x64xf32>
    %cst_49 = arith.constant dense<0.000000e+00> : vector<128x64xf32>
    %93 = tpu.matmul %91, %92, %cst_49 {dimension_numbers = #tpu.dot_dimension_numbers<[1], [0], [0], [1], [0, 0, 1, 1], [], []>} : vector<128x32xf32>, vector<32x64xf32>, vector<128x64xf32> -> vector<128x64xf32>
    %94 = arith.addf %18, %93 : vector<128x64xf32>
    %cst_50 = arith.constant 0.000000e+00 : f32
    %95 = vector.broadcast %cst_50 : f32 to vector<128x64xf32>
    %96 = arith.maximumf %94, %95 : vector<128x64xf32>
    %c0_51 = arith.constant 0 : index
    %c0_52 = arith.constant 0 : index
    %97 = vector.load %arg15[%c0_51, %c0_52] : memref<64x32xf32, #tpu.memory_space<vmem>>, vector<64x32xf32>
    %cst_53 = arith.constant dense<0.000000e+00> : vector<128x32xf32>
    %98 = tpu.matmul %96, %97, %cst_53 {dimension_numbers = #tpu.dot_dimension_numbers<[1], [0], [0], [1], [0, 0, 1, 1], [], []>} : vector<128x64xf32>, vector<64x32xf32>, vector<128x32xf32> -> vector<128x32xf32>
    %c0_54 = arith.constant 0 : index
    %c0_55 = arith.constant 0 : index
    %99 = vector.load %arg16[%c0_54, %c0_55] : memref<1x32xf32, #tpu.memory_space<vmem>>, vector<1x32xf32>
    %c0_56 = arith.constant 0 : index
    %c0_57 = arith.constant 0 : index
    %100 = vector.load %arg17[%c0_56, %c0_57] : memref<1x32xf32, #tpu.memory_space<vmem>>, vector<1x32xf32>
    %cst_58 = arith.constant dense<0.000000e+00> : vector<128xf32>
    %101 = vector.multi_reduction <add>, %98, %cst_58 [1] : vector<128x32xf32> to vector<128xf32>
    %102 = vector.shape_cast %101 : vector<128xf32> to vector<128x1xf32>
    %cst_59 = arith.constant 3.200000e+01 : f32
    %103 = vector.broadcast %cst_59 : f32 to vector<128x1xf32>
    %104 = arith.divf %102, %103 : vector<128x1xf32>
    %105 = vector.broadcast %104 : vector<128x1xf32> to vector<128x32xf32>
    %106 = arith.subf %98, %105 : vector<128x32xf32>
    %107 = arith.mulf %106, %106 : vector<128x32xf32>
    %cst_60 = arith.constant dense<0.000000e+00> : vector<128xf32>
    %108 = vector.multi_reduction <add>, %107, %cst_60 [1] : vector<128x32xf32> to vector<128xf32>
    %109 = vector.shape_cast %108 : vector<128xf32> to vector<128x1xf32>
    %cst_61 = arith.constant 3.200000e+01 : f32
    %110 = vector.broadcast %cst_61 : f32 to vector<128x1xf32>
    %111 = arith.divf %109, %110 : vector<128x1xf32>
    %112 = vector.broadcast %104 : vector<128x1xf32> to vector<128x32xf32>
    %113 = arith.subf %98, %112 : vector<128x32xf32>
    %cst_62 = arith.constant 9.99999974E-6 : f32
    %114 = vector.broadcast %cst_62 : f32 to vector<128x1xf32>
    %115 = arith.addf %111, %114 : vector<128x1xf32>
    %116 = math.rsqrt %115 : vector<128x1xf32>
    %117 = vector.broadcast %116 : vector<128x1xf32> to vector<128x32xf32>
    %118 = arith.mulf %113, %117 : vector<128x32xf32>
    %119 = vector.broadcast %99 : vector<1x32xf32> to vector<128x32xf32>
    %120 = arith.mulf %118, %119 : vector<128x32xf32>
    %121 = vector.broadcast %100 : vector<1x32xf32> to vector<128x32xf32>
    %122 = arith.addf %120, %121 : vector<128x32xf32>
    %123 = vector.shape_cast %122 : vector<128x32xf32> to vector<2x64x32xf32>
    %124 = tpu.transpose %123, [0, 2, 1] : vector<2x64x32xf32> -> vector<2x32x64xf32>
    %125 = arith.addf %0, %124 : vector<2x32x64xf32>
    %c0_63 = arith.constant 0 : index
    %c0_64 = arith.constant 0 : index
    %c0_65 = arith.constant 0 : index
    %126 = vector.load %arg18[%c0_63, %c0_64, %c0_65] : memref<2x32x64xf32, #tpu.memory_space<vmem>>, vector<2x32x64xf32>
    tpu.vector_store %arg18[%c0_63, %c0_64, %c0_65], %125 {strides = array<i32>} : memref<2x32x64xf32, #tpu.memory_space<vmem>>, vector<2x32x64xf32>,
    return
  }
  func.func @transform_0(%arg0: i32) -> (i32, i32, i32) {
    %c0_i32 = arith.constant 0 : i32
    %c0_i32_0 = arith.constant 0 : i32
    %c0_i32_1 = arith.constant 0 : i32
    return %arg0, %c0_i32, %c0_i32_0 : i32, i32, i32
  }
  func.func @transform_1(%arg0: i32) -> (i32, i32, i32) {
    %c0_i32 = arith.constant 0 : i32
    %c0_i32_0 = arith.constant 0 : i32
    %c0_i32_1 = arith.constant 0 : i32
    return %arg0, %c0_i32, %c0_i32_0 : i32, i32, i32
  }
  func.func @transform_2(%arg0: i32) -> (i32, i32, i32) {
    %c0_i32 = arith.constant 0 : i32
    %c0_i32_0 = arith.constant 0 : i32
    %c0_i32_1 = arith.constant 0 : i32
    return %arg0, %c0_i32, %c0_i32_0 : i32, i32, i32
  }
  func.func @transform_3(%arg0: i32) -> (i32, i32) {
    %c0_i32 = arith.constant 0 : i32
    %c0_i32_0 = arith.constant 0 : i32
    %c0_i32_1 = arith.constant 0 : i32
    return %c0_i32, %c0_i32_0 : i32, i32
  }
  func.func @transform_4(%arg0: i32) -> (i32, i32) {
    %c0_i32 = arith.constant 0 : i32
    %c0_i32_0 = arith.constant 0 : i32
    %c0_i32_1 = arith.constant 0 : i32
    return %c0_i32, %c0_i32_0 : i32, i32
  }
  func.func @transform_5(%arg0: i32) -> (i32, i32) {
    %c0_i32 = arith.constant 0 : i32
    %c0_i32_0 = arith.constant 0 : i32
    %c0_i32_1 = arith.constant 0 : i32
    return %c0_i32, %c0_i32_0 : i32, i32
  }
  func.func @transform_6(%arg0: i32) -> (i32, i32) {
    %c0_i32 = arith.constant 0 : i32
    %c0_i32_0 = arith.constant 0 : i32
    %c0_i32_1 = arith.constant 0 : i32
    return %c0_i32, %c0_i32_0 : i32, i32
  }
  func.func @transform_7(%arg0: i32) -> (i32, i32) {
    %c0_i32 = arith.constant 0 : i32
    %c0_i32_0 = arith.constant 0 : i32
    %c0_i32_1 = arith.constant 0 : i32
    return %c0_i32, %c0_i32_0 : i32, i32
  }
  func.func @transform_8(%arg0: i32) -> (i32, i32) {
    %c0_i32 = arith.constant 0 : i32
    %c0_i32_0 = arith.constant 0 : i32
    %c0_i32_1 = arith.constant 0 : i32
    return %c0_i32, %c0_i32_0 : i32, i32
  }
  func.func @transform_9(%arg0: i32) -> (i32, i32) {
    %c0_i32 = arith.constant 0 : i32
    %c0_i32_0 = arith.constant 0 : i32
    %c0_i32_1 = arith.constant 0 : i32
    return %c0_i32, %c0_i32_0 : i32, i32
  }
  func.func @transform_10(%arg0: i32) -> (i32, i32) {
    %c0_i32 = arith.constant 0 : i32
    %c0_i32_0 = arith.constant 0 : i32
    %c0_i32_1 = arith.constant 0 : i32
    return %c0_i32, %c0_i32_0 : i32, i32
  }
  func.func @transform_11(%arg0: i32) -> (i32, i32) {
    %c0_i32 = arith.constant 0 : i32
    %c0_i32_0 = arith.constant 0 : i32
    %c0_i32_1 = arith.constant 0 : i32
    return %c0_i32, %c0_i32_0 : i32, i32
  }
  func.func @transform_12(%arg0: i32) -> (i32, i32) {
    %c0_i32 = arith.constant 0 : i32
    %c0_i32_0 = arith.constant 0 : i32
    %c0_i32_1 = arith.constant 0 : i32
    return %c0_i32, %c0_i32_0 : i32, i32
  }
  func.func @transform_13(%arg0: i32) -> (i32, i32) {
    %c0_i32 = arith.constant 0 : i32
    %c0_i32_0 = arith.constant 0 : i32
    %c0_i32_1 = arith.constant 0 : i32
    return %c0_i32, %c0_i32_0 : i32, i32
  }
  func.func @transform_14(%arg0: i32) -> (i32, i32) {
    %c0_i32 = arith.constant 0 : i32
    %c0_i32_0 = arith.constant 0 : i32
    %c0_i32_1 = arith.constant 0 : i32
    return %c0_i32, %c0_i32_0 : i32, i32
  }
  func.func @transform_15(%arg0: i32) -> (i32, i32) {
    %c0_i32 = arith.constant 0 : i32
    %c0_i32_0 = arith.constant 0 : i32
    %c0_i32_1 = arith.constant 0 : i32
    return %c0_i32, %c0_i32_0 : i32, i32
  }
  func.func @transform_16(%arg0: i32) -> (i32, i32) {
    %c0_i32 = arith.constant 0 : i32
    %c0_i32_0 = arith.constant 0 : i32
    %c0_i32_1 = arith.constant 0 : i32
    return %c0_i32, %c0_i32_0 : i32, i32
  }
  func.func @transform_17(%arg0: i32) -> (i32, i32, i32) {
    %c0_i32 = arith.constant 0 : i32
    %c0_i32_0 = arith.constant 0 : i32
    %c0_i32_1 = arith.constant 0 : i32
    return %arg0, %c0_i32, %c0_i32_0 : i32, i32, i32
  }
}

</mosaic_0001>

<bundles_post_ra>
// kernel: tpu_custom_call.1
= control target key start
LH: loop header
LB: loop body
LE: loop exit
PB: predicated region body
PF: predicated region fallthrough
CT: control target
= control target key end

     0   :  { %s5428_s0 = inlined_call_operand.vmem [shape: f32[2,32,64], index: 0, kind: input, shape index: {}]   ;;  %s5429_s1 = inlined_call_operand.vmem [shape: f32[2,32,32], index: 1, kind: input, shape index: {}]   ;;  %s5430_s2 = inlined_call_operand.vmem [shape: f32[2,32,8], index: 2, kind: input, shape index: {}]   ;;  %s5431_s3 = inlined_call_operand.hbm [shape: f32[8,32], index: 3, kind: input, shape index: {}]   ;;  %s5432_s4 = inlined_call_operand.vmem [shape: f32[1,32], index: 4, kind: input, shape index: {}]   ;;  %s5433_s5 = inlined_call_operand.vmem [shape: f32[32,32], index: 5, kind: input, shape index: {}]   ;;  %s5434_s6 = inlined_call_operand.hbm [shape: f32[1,32], index: 6, kind: input, shape index: {}]   ;;  %s5435_s7 = inlined_call_operand.hbm [shape: f32[32,64], index: 7, kind: input, shape index: {}]   ;;  %s5436_s8 = inlined_call_operand.hbm [shape: f32[32,96], index: 8, kind: input, shape index: {}]   ;;  %s5437_s9 = inlined_call_operand.hbm [shape: f32[32,32], index: 9, kind: input, shape index: {}]   ;;  %s5438_s10 = inlined_call_operand.hbm [shape: f32[32,32], index: 10, kind: input, shape index: {}]   ;;  %s5439_s11 = inlined_call_operand.hbm [shape: f32[1,32], index: 11, kind: input, shape index: {}]   ;;  %s5440_s12 = inlined_call_operand.hbm [shape: f32[1,32], index: 12, kind: input, shape index: {}]   ;;  %s5441_s13 = inlined_call_operand.vmem [shape: f32[32,64], index: 13, kind: input, shape index: {}]   ;;  %s5442_s14 = inlined_call_operand.vmem [shape: f32[64,32], index: 14, kind: input, shape index: {}]   ;;  %s5443_s15 = inlined_call_operand.vmem [shape: f32[1,32], index: 15, kind: input, shape index: {}]   ;;  %s5444_s16 = inlined_call_operand.vmem [shape: f32[1,32], index: 16, kind: input, shape index: {}]   ;;  %s5445_s17 = inlined_call_operand.hbm [shape: f32[2,32,64], index: 17, kind: output, shape index: {}]  }
   0x1   :  { %5448 = sst [smem:[#allocation23_spill]] %s5428_s0 }
   0x2   :  { %5449 = sst [smem:[#allocation24_spill]] %s5429_s1 }
   0x3   :  { %22 = vsyncpa [#allocation3], 0 }
   0x4   :  { %23 = vsyncpa [#allocation6], 0 }
   0x5   :  { %24 = vsyncpa [#allocation9], 0 }
   0x6   :  { %25 = vsyncpa [#allocation12], 0 }
   0x7   :  { %26 = vsyncpa [#allocation15], 0 }
   0x8   :  { %27 = vsyncpa [#allocation4], 0  ;;  %s4232_s24 = smov [#allocation5]   ;;  %s4022_s28 = scalar_lea.hbm %s5434_s6, 16 }
   0x9   :  { %s54_s25 = sshll.u32 %s4232_s24, 4  ;;  %p4023_p0 = scmp.ne.s32.totalorder %s5434_s6, %s4022_s28  ;;  %s55_s25 = int_to_ptr.vmem [resolvable:$true] %s54_s25 }
   0xa   :  { %p4026_p1 = scmp.lt.u32.totalorder %s4022_s28, %s5434_s6 }
   0xc   :  { %p4028_p2 = pnand %p4026_p1, %p4023_p0 }
   0xe   :  { %4031 = shalt.err (!%p4028_p2)
}
   0xf   :  { %s4032_s19 = scalar_lea.vmem %s55_s25, 16  ;;  %s4036_s1 = scalar_lea.vmem %s55_s25, 32 }
  0x10   :  { %p4033_p3 = scmp.ne.s32.totalorder %s55_s25, %s4032_s19  ;;  %p4037_p4 = scmp.lt.s32.totalorder %s55_s25, %s55_s25 }
  0x11   :  { %p4038_p5 = scmp.lt.s32.totalorder %s4036_s1, %s4032_s19 }
  0x13   :  { %p4039_p6 = por %p4038_p5, %p4037_p4 }
  0x15   :  { %p4040_p7 = pnand %p4039_p6, %p4033_p3 }
  0x17   :  { %4043 = shalt.err (!%p4040_p7)
}
  0x18   :  { %57 = dma.hbm_to_vmem [thread:$0]  %s5434_s6, 16, %s55_s25, [#allocation6]  }
  0x19   :  { %s4233_s22 = smov [#allocation8]   ;;  %s4234_s24 = smov [#allocation11]  }
  0x1a   :  { %s75_s23 = sshll.u32 %s4233_s22, 4  ;;  %s99_s26 = sshll.u32 %s4234_s24, 4  ;;  %s76_s23 = int_to_ptr.vmem [resolvable:$true] %s75_s23  ;;  %s100_s26 = int_to_ptr.vmem [resolvable:$true] %s99_s26 }
  0x1b   :  { %s4044_s29 = scalar_lea.hbm %s5436_s8, 512 }
  0x1c   :  { %p4045_p8 = scmp.ne.s32.totalorder %s5436_s8, %s4044_s29  ;;  %p4048_p9 = scmp.lt.u32.totalorder %s4044_s29, %s5436_s8 }
  0x1e   :  { %p4050_p10 = pnand %p4048_p9, %p4045_p8 }
  0x20   :  { %4053 = shalt.err (!%p4050_p10)
}
  0x21   :  { %s4054_s6 = scalar_lea.vmem %s76_s23, 512  ;;  %p4059_p12 = scmp.lt.s32.totalorder %s76_s23, %s76_s23 }
  0x22   :  { %p4055_p11 = scmp.ne.s32.totalorder %s76_s23, %s4054_s6  ;;  %p4060_p13 = scmp.lt.s32.totalorder %s4054_s6, %s4054_s6 }
  0x24   :  { %p4061_p0 = por %p4060_p13, %p4059_p12 }
  0x26   :  { %p4062_p1 = pnand %p4061_p0, %p4055_p11 }
  0x28   :  { %4065 = shalt.err (!%p4062_p1)
}
  0x29   :  { %s4235_s25 = smov 128   ;;  %s4236_s1 = smov 8  }
  0x2a   :  { %81 = dma.hbm_to_vmem [thread:$0]  %s5436_s8, 512, %s76_s23, [#allocation9], %s4235_s25, %s4235_s25, %s4236_s1  }
  0x2b   :  { %s4066_s27 = scalar_lea.hbm %s5438_s10, 512 }
  0x2c   :  { %p4067_p2 = scmp.ne.s32.totalorder %s5438_s10, %s4066_s27  ;;  %p4070_p3 = scmp.lt.u32.totalorder %s4066_s27, %s5438_s10 }
  0x2e   :  { %p4072_p4 = pnand %p4070_p3, %p4067_p2 }
  0x30   :  { %4075 = shalt.err (!%p4072_p4)
}
  0x31   :  { %s4076_s18 = scalar_lea.vmem %s100_s26, 512  ;;  %p4081_p6 = scmp.lt.s32.totalorder %s100_s26, %s100_s26 }
  0x32   :  { %p4077_p5 = scmp.ne.s32.totalorder %s100_s26, %s4076_s18  ;;  %p4082_p7 = scmp.lt.s32.totalorder %s4076_s18, %s4076_s18 }
  0x34   :  { %p4083_p8 = por %p4082_p7, %p4081_p6 }
  0x36   :  { %p4084_p9 = pnand %p4083_p8, %p4077_p5 }
  0x38   :  { %4087 = shalt.err (!%p4084_p9)
}
  0x39   :  { %105 = dma.hbm_to_vmem [thread:$0]  %s5438_s10, 512, %s100_s26, [#allocation12], %s4235_s25, %s4235_s25, %s4236_s1  }
  0x3a   :  { %s4237_s19 = smov [#allocation2]   ;;  %s4238_s20 = smov [#allocation7]  }
  0x3b   :  { %s40_s6 = sshll.u32 %s4237_s19, 4  ;;  %s63_s21 = sshll.u32 %s4238_s20, 4  ;;  %s41_s6 = int_to_ptr.vmem [resolvable:$true] %s40_s6  ;;  %s64_s21 = int_to_ptr.vmem [resolvable:$true] %s63_s21 }
  0x3c   :  { %s4088_s27 = scalar_lea.hbm %s5431_s3, 128 }
  0x3d   :  { %p4089_p10 = scmp.ne.s32.totalorder %s5431_s3, %s4088_s27  ;;  %p4092_p11 = scmp.lt.u32.totalorder %s4088_s27, %s5431_s3 }
  0x3f   :  { %p4094_p12 = pnand %p4092_p11, %p4089_p10 }
  0x41   :  { %4097 = shalt.err (!%p4094_p12)
}
  0x42   :  { %s4098_s10 = scalar_lea.vmem %s41_s6, 128  ;;  %p4103_p0 = scmp.lt.s32.totalorder %s41_s6, %s41_s6 }
  0x43   :  { %p4099_p13 = scmp.ne.s32.totalorder %s41_s6, %s4098_s10  ;;  %p4104_p1 = scmp.lt.s32.totalorder %s4098_s10, %s4098_s10 }
  0x45   :  { %p4105_p2 = por %p4104_p1, %p4103_p0 }
  0x47   :  { %p4106_p3 = pnand %p4105_p2, %p4099_p13 }
  0x49   :  { %4109 = shalt.err (!%p4106_p3)
}
  0x4a   :  { %43 = dma.hbm_to_vmem [thread:$0]  %s5431_s3, 128, %s41_s6, [#allocation3]  }
  0x4b   :  { %s4110_s19 = scalar_lea.hbm %s5435_s7, 512 }
  0x4c   :  { %p4111_p4 = scmp.ne.s32.totalorder %s5435_s7, %s4110_s19  ;;  %p4114_p5 = scmp.lt.u32.totalorder %s4110_s19, %s5435_s7 }
  0x4e   :  { %p4116_p6 = pnand %p4114_p5, %p4111_p4 }
  0x50   :  { %4119 = shalt.err (!%p4116_p6)
}
  0x51   :  { %s4120_s28 = scalar_lea.vmem %s64_s21, 512  ;;  %p4125_p8 = scmp.lt.s32.totalorder %s64_s21, %s64_s21 }
  0x52   :  { %p4121_p7 = scmp.ne.s32.totalorder %s64_s21, %s4120_s28  ;;  %p4126_p9 = scmp.lt.s32.totalorder %s4120_s28, %s4120_s28 }
  0x54   :  { %p4127_p10 = por %p4126_p9, %p4125_p8 }
  0x56   :  { %p4128_p11 = pnand %p4127_p10, %p4121_p7 }
  0x58   :  { %4131 = shalt.err (!%p4128_p11)
}
  0x59   :  { %69 = dma.hbm_to_vmem [thread:$0]  %s5435_s7, 512, %s64_s21, [#allocation6], %s4235_s25, %s4235_s25, %s4236_s1  }
  0x5a   :  { %s4239_s29 = smov [#allocation10]   ;;  %s4240_s30 = smov [#allocation13]  }
  0x5b   :  { %s87_s0 = sshll.u32 %s4239_s29, 4  ;;  %s112_s10 = sshll.u32 %s4240_s30, 4  ;;  %s88_s0 = int_to_ptr.vmem [resolvable:$true] %s87_s0  ;;  %s113_s10 = int_to_ptr.vmem [resolvable:$true] %s112_s10 }
  0x5c   :  { %s4132_s8 = scalar_lea.hbm %s5437_s9, 512 }
  0x5d   :  { %p4133_p12 = scmp.ne.s32.totalorder %s5437_s9, %s4132_s8  ;;  %p4136_p13 = scmp.lt.u32.totalorder %s4132_s8, %s5437_s9 }
  0x5f   :  { %p4138_p0 = pnand %p4136_p13, %p4133_p12 }
  0x61   :  { %4141 = shalt.err (!%p4138_p0)
}
  0x62   :  { %s4142_s7 = scalar_lea.vmem %s88_s0, 512  ;;  %p4147_p2 = scmp.lt.s32.totalorder %s88_s0, %s88_s0 }
  0x63   :  { %p4143_p1 = scmp.ne.s32.totalorder %s88_s0, %s4142_s7  ;;  %p4148_p3 = scmp.lt.s32.totalorder %s4142_s7, %s4142_s7 }
  0x65   :  { %p4149_p4 = por %p4148_p3, %p4147_p2 }
  0x67   :  { %p4150_p5 = pnand %p4149_p4, %p4143_p1 }
  0x69   :  { %4153 = shalt.err (!%p4150_p5)
}
  0x6a   :  { %93 = dma.hbm_to_vmem [thread:$0]  %s5437_s9, 512, %s88_s0, [#allocation9], %s4235_s25, %s4235_s25, %s4236_s1  }
  0x6b   :  { %s4154_s3 = scalar_lea.hbm %s5439_s11, 16 }
  0x6c   :  { %p4155_p6 = scmp.ne.s32.totalorder %s5439_s11, %s4154_s3  ;;  %p4158_p7 = scmp.lt.u32.totalorder %s4154_s3, %s5439_s11 }
  0x6e   :  { %p4160_p8 = pnand %p4158_p7, %p4155_p6 }
  0x70   :  { %4163 = shalt.err (!%p4160_p8)
}
  0x71   :  { %s4164_s18 = scalar_lea.vmem %s113_s10, 16  ;;  %s4168_s8 = scalar_lea.vmem %s113_s10, 32 }
  0x72   :  { %p4165_p9 = scmp.ne.s32.totalorder %s113_s10, %s4164_s18  ;;  %p4169_p10 = scmp.lt.s32.totalorder %s113_s10, %s113_s10 }
  0x73   :  { %p4170_p11 = scmp.lt.s32.totalorder %s4168_s8, %s4164_s18 }
  0x75   :  { %p4171_p12 = por %p4170_p11, %p4169_p10 }
  0x77   :  { %p4172_p13 = pnand %p4171_p12, %p4165_p9 }
  0x79   :  { %4175 = shalt.err (!%p4172_p13)
}
  0x7a   :  { %115 = dma.hbm_to_vmem [thread:$0]  %s5439_s11, 16, %s113_s10, [#allocation12]  }
  0x7b   :  { %s4241_s23 = smov [#allocation14]   ;;  %s4176_s7 = scalar_lea.hbm %s5440_s12, 16 }
  0x7c   :  { %s122_s19 = sshll.u32 %s4241_s23, 4  ;;  %p4177_p0 = scmp.ne.s32.totalorder %s5440_s12, %s4176_s7  ;;  %s123_s19 = int_to_ptr.vmem [resolvable:$true] %s122_s19 }
  0x7d   :  { %p4180_p1 = scmp.lt.u32.totalorder %s4176_s7, %s5440_s12 }
  0x7f   :  { %p4182_p2 = pnand %p4180_p1, %p4177_p0 }
  0x81   :  { %4185 = shalt.err (!%p4182_p2)
}
  0x82   :  { %s4186_s3 = scalar_lea.vmem %s123_s19, 16  ;;  %s4190_s11 = scalar_lea.vmem %s123_s19, 32 }
  0x83   :  { %p4187_p3 = scmp.ne.s32.totalorder %s123_s19, %s4186_s3  ;;  %p4191_p4 = scmp.lt.s32.totalorder %s123_s19, %s123_s19 }
  0x84   :  { %p4192_p5 = scmp.lt.s32.totalorder %s4190_s11, %s4186_s3 }
  0x86   :  { %p4193_p6 = por %p4192_p5, %p4191_p4 }
  0x88   :  { %p4194_p7 = pnand %p4193_p6, %p4187_p3 }
  0x8a   :  { %4197 = shalt.err (!%p4194_p7)
}
  0x8b   :  { %125 = dma.hbm_to_vmem [thread:$0]  %s5440_s12, 16, %s123_s19, [#allocation15]  }
  0x8c   :  { %4220 = dma.done.wait [#allocation3], 128  }
  0x8d   :  { %4221 = vsyncadd [#allocation3], 4294967168 }
  0x8e   :  { %4222 = dma.done.wait [#allocation6], 528  }
  0x8f   :  { %4223 = vsyncadd [#allocation6], 4294966768 }
  0x90   :  { %4224 = dma.done.wait [#allocation9], 1024  }
  0x91   :  { %4225 = vsyncadd [#allocation9], 4294966272 }
  0x92   :  { %4226 = dma.done.wait [#allocation12], 528  }
  0x93   :  { %4227 = vsyncadd [#allocation12], 4294966768 }
  0x94   :  { %4228 = dma.done.wait [#allocation15], 16  }
  0x95   :  { %4229 = vsyncadd [#allocation15], 4294967280  ;;  %vm318_vm0 = vcmask 64512   ;;  %v310_v0 = vld [vmem:[#allocation2] sm:$0xff]  ;;  %v303_v2 = vld [vmem:[%s5430_s2 + $0x8] sm:$0xff]  ;;  %s5450_s23 = sld [smem:[#allocation24_spill]] }
  0x96   :  { %v302_v1 = vld [vmem:[%s5430_s2] sm:$0xff]  ;;  %3466 = vmatprep.subr.mxu0 %v310_v0  ;;  %v304_v3 = vld [vmem:[%s5430_s2 + $0x10] sm:$0xff]  ;;  %v305_v5 = vld [vmem:[%s5430_s2 + $0x18] sm:$0xff]  ;;  %vm460_vm1 = vcmask 261120   ;;  %s5451_s30 = sld [smem:[#allocation23_spill]]  ;;  %s4243_s28 = smov 96  }
  0x97   :  { %3468 = vmatprep.mubr.msk.f32.mxu0 %vm318_vm0, %v302_v1  ;;  %3467 = vmatpush3.msra.mxu0 %v310_v0  ;;  %v306_v7 = vld [vmem:[%s5430_s2 + $0x20] sm:$0xff]  ;;  %v654_v9 = vld [vmem:[#allocation7] sm:$0xff]  ;;  %v655_v11 = vld [vmem:[#allocation7 + $0x8] sm:$0xff]  ;;  %s4244_s20 = smov [#allocation16]  }
  0x98   :  { %3469 = vmatmul.mubr.msk.f32.vlgmr.msra.gmra.mrb[0].mxu0 %vm318_vm0, %v303_v2  ;;  %v3732_v12 = vpack.c.bf16 %v655_v11, %v654_v9  ;;  %v307_v13 = vld [vmem:[%s5430_s2 + $0x28] sm:$0xff]  ;;  %v656_v14 = vld [vmem:[#allocation7 + $0x10] sm:$0xff]  ;;  %v308_v16 = vld [vmem:[%s5430_s2 + $0x30] sm:$0xff]  ;;  %s3175_s22 = sshll.u32 %s4244_s20, 4  ;;  %s3176_s22 = int_to_ptr.vmem [resolvable:$true] %s3175_s22 }
  0x99   :  { %3471 = vmatprep.mubr.msk.f32.mxu0 %vm318_vm0, %v304_v3  ;;  %v657_v15 = vld [vmem:[#allocation7 + $0x18] sm:$0xff]  ;;  %v309_v20 = vld [vmem:[%s5430_s2 + $0x38] sm:$0xff]  ;;  %v789_v27 = vld [vmem:[%s5433_s5 + $0x10] sm:$0xff]  ;;  %s4198_s24 = scalar_lea.vmem %s3176_s22, 1024  ;;  %p4203_p9 = scmp.lt.s32.totalorder %s3176_s22, %s3176_s22 }
  0x9a   :  { %3733 = vmatprep.subr.bf16.mxu0 %v3732_v12  ;;  %v3736_v18 = vpack.c.bf16 %v657_v15, %v656_v14  ;;  %v787_v23 = vld [vmem:[%s5433_s5] sm:$0xff]  ;;  %v788_v24 = vld [vmem:[%s5433_s5 + $0x8] sm:$0xff]  ;;  %v790_v28 = vld [vmem:[%s5433_s5 + $0x18] sm:$0xff]  ;;  %p4199_p8 = scmp.ne.s32.totalorder %s3176_s22, %s4198_s24  ;;  %p4204_p10 = scmp.lt.s32.totalorder %s4198_s24, %s4198_s24 }
  0x9b   :  { %v166_v4 = vld [vmem:[%s5450_s23] sm:$0xff]  ;;  %v167_v8 = vld [vmem:[%s5450_s23 + $0x8] sm:$0xff]  ;;  %v168_v17 = vld [vmem:[%s5450_s23 + $0x10] sm:$0xff]  ;;  %3735 = vmatpush3.bf16.msra.mxu0 %v3732_v12  ;;  %v3740_v25 = vpack.c.bf16 %v788_v24, %v787_v23  ;;  %v3744_v30 = vpack.c.bf16 %v790_v28, %v789_v27 }
  0x9c   :  { %238 = vxpose.xlu0.b32.start [1/4] (short) (narrow) %v166_v4, 32  ;;  %v170_v6 = vld [vmem:[%s5450_s23 + $0x20] sm:$0xff]  ;;  %v171_v10 = vld [vmem:[%s5450_s23 + $0x28] sm:$0xff]  ;;  %3472 = vmatmul.mubr.msk.f32.gmra.mrb[2].mxu0 %vm318_vm0, %v305_v5  ;;  %v172_v19 = vld [vmem:[%s5450_s23 + $0x30] sm:$0xff]  ;;  %p4205_p11 = por %p4204_p10, %p4203_p9 }
  0x9d   :  { %270 = vxpose.xlu1.b32.start [1/4] (short) (narrow) %v170_v6, 32  ;;  %3474 = vmatprep.mubr.msk.f32.mxu0 %vm318_vm0, %v306_v7  ;;  %v169_v21 = vld [vmem:[%s5450_s23 + $0x18] sm:$0xff]  ;;  %v3191_v37 = vld [vmem:[%s5432_s4] ss:$0 sm:$0xff]  ;;  %v3232_v62 = vld [vmem:[#allocation5] ss:$0 sm:$0xff] }
  0x9e   :  { %3737 = vmatprep.subr.bf16.mxu0 %v3736_v18  ;;  %v173_v22 = vld [vmem:[%s5450_s23 + $0x38] sm:$0xff]  ;;  %s4242_s4 = smov 32   ;;  %v158_v15 = vld [vmem:[%s5451_s30] sm:$0xff]  ;;  %v456_v23 = vld [vmem:[#allocation8] sm:$0xff]  ;;  %p4206_p12 = pnand %p4205_p11, %p4199_p8 }
  0x9f   :  { %3739 = vmatpush3.bf16.msra.mxu0 %v3736_v18  ;;  %v161_v18 = vld [vmem:[%s5451_s30 + $0x18] sm:$0xff]  ;;  %v459_v27 = vld [vmem:[#allocation8 + $0x18] sm:$0xff] }
  0xa0   :  { %239 = vxpose.xlu0.b32.cont [2/4] (short) (narrow) %v167_v8, 32  ;;  %3475 = vmatmul.mubr.msk.f32.gmra.mrb[4].mxu0 %vm318_vm0, %v307_v13  ;;  %v457_v24 = vld [vmem:[#allocation8 + $0x8] sm:$0xff] }
  0xa1   :  { %271 = vxpose.xlu1.b32.cont [2/4] (short) (narrow) %v171_v10, 32  ;;  %3477 = vmatprep.mubr.msk.f32.mxu0 %vm318_vm0, %v308_v16  ;;  %v159_v16 = vld [vmem:[%s5451_s30 + $0x8] sm:$0xff] }
  0xa2   :  { %3741 = vmatprep.subr.bf16.mxu0 %v3740_v25 }
  0xa4   :  { %240 = vxpose.xlu0.b32.cont [3/4] (short) (narrow) %v168_v17, 32  ;;  %3478 = vmatmul.mubr.msk.f32.gmra.mrb[6].mxu0 %vm318_vm0, %v309_v20  ;;  %v160_v17 = vld [vmem:[%s5451_s30 + $0x10] sm:$0xff]  ;;  %v163_v20 = vld [vmem:[%s5451_s30 + $0x28] sm:$0xff] }
  0xa5   :  { %272 = vxpose.xlu1.b32.cont [3/4] (short) (narrow) %v172_v19, 32  ;;  %v162_v19 = vld [vmem:[%s5451_s30 + $0x20] sm:$0xff] }
  0xa8   :  { %241 = vxpose.xlu0.b32.end [4/4] (short) (narrow) %v169_v21, 32  ;;  %v164_v21 = vld [vmem:[%s5451_s30 + $0x30] sm:$0xff] }
  0xa9   :  { %273 = vxpose.xlu1.b32.end [4/4] (short) (narrow) %v173_v22, 32  ;;  %v165_v22 = vld [vmem:[%s5451_s30 + $0x38] sm:$0xff] }
  0xc7   :  { %966 = vrot.lane.b32.xlu1 %v3232_v62, %s4242_s4 }
 0x11c   :  { %v254_v26 = vpop.trf.xlu0 }
 0x11d   :  { %3520 = vmatprep.mubr.msk.f32.mxu0 %vm460_vm1, %v254_v26  ;;  %v286_v29 = vpop.trf.xlu1  ;;  %v458_v26 = vld [vmem:[#allocation8 + $0x10] sm:$0xff] }
 0x11e   :  { %v3728_v28 = vpack.c.bf16 %v459_v27, %v458_v26 }
 0x120   :  { %v255_v31 = vpop.trf.xlu0 }
 0x121   :  { %3521 = vmatmul.mubr.msk.f32.vlgmr.msra.gmra.mrb[8].mxu0 %vm460_vm1, %v255_v31  ;;  %v287_v32 = vpop.trf.xlu1 }
 0x122   :  { %3743 = vmatpush3.bf16.msra.mxu0 %v3740_v25  ;;  %v3724_v25 = vpack.c.bf16 %v457_v24, %v456_v23 }
 0x123   :  { %3745 = vmatprep.subr.bf16.mxu0 %v3744_v30 }
 0x124   :  { %v256_v33 = vpop.trf.xlu0  ;;  %3725 = vmatprep.subr.bf16.mxu1 %v3724_v25 }
 0x125   :  { %3523 = vmatprep.mubr.msk.f32.mxu0 %vm460_vm1, %v256_v33  ;;  %v288_v35 = vpop.trf.xlu1  ;;  %3727 = vmatpush3.bf16.msra.mxu1 %v3724_v25 }
 0x126   :  { %3747 = vmatpush3.bf16.msra.mxu0 %v3744_v30  ;;  %3729 = vmatprep.subr.bf16.mxu1 %v3728_v28 }
 0x128   :  { %v257_v34 = vpop.trf.xlu0 }
 0x129   :  { %3524 = vmatmul.mubr.msk.f32.gmra.mrb[10].mxu0 %vm460_vm1, %v257_v34  ;;  %v289_v36 = vpop.trf.xlu1  ;;  %3731 = vmatpush3.bf16.msra.mxu1 %v3728_v28 }
 0x12a   :  { %3526 = vmatprep.mubr.msk.f32.mxu0 %vm460_vm1, %v286_v29 }
 0x12d   :  { %3527 = vmatmul.mubr.msk.f32.gmra.mrb[12].mxu0 %vm460_vm1, %v287_v32 }
 0x12e   :  { %3529 = vmatprep.mubr.msk.f32.mxu0 %vm460_vm1, %v288_v35 }
 0x131   :  { %3530 = vmatmul.mubr.msk.f32.gmra.mrb[14].mxu0 %vm460_vm1, %v289_v36 }
 0x139   :  { %v967_v29 = vpop.permute.xlu1 %966 }
 0x16b   :  { %v3470_v38 = vpop.f32.mrb[0].mxu0 }
 0x16c   :  { %v415_v39 = vadd.f32 %v3470_v38, %v3191_v37  ;;  %v409_v40 = vpop.f32.mrb[1].mxu0 }
 0x16d   :  { %v410_v41 = vadd.f32 %v3191_v37, %v409_v40 }
 0x16e   :  { %v449_v44 = vmax.f32 %v415_v39, 0.0 }
 0x16f   :  { %v448_v42 = vmax.f32 %v410_v41, 0.0  ;;  %v3473_v43 = vpop.f32.mrb[2].mxu0 }
 0x170   :  { %v425_v45 = vadd.f32 %v3473_v43, %v3191_v37  ;;  %v419_v46 = vpop.f32.mrb[3].mxu0 }
 0x171   :  { %v420_v47 = vadd.f32 %v3191_v37, %v419_v46  ;;  %3540 = vmatprep.mubr.msk.f32.mxu0 %vm460_vm1, %v448_v42 }
 0x172   :  { %3541 = vmatmul.mubr.msk.f32.vlgmr.msra.gmra.mrb[16].mxu0 %vm460_vm1, %v449_v44  ;;  %v451_v50 = vmax.f32 %v425_v45, 0.0 }
 0x173   :  { %v450_v48 = vmax.f32 %v420_v47, 0.0  ;;  %v3476_v49 = vpop.f32.mrb[4].mxu0 }
 0x174   :  { %v435_v51 = vadd.f32 %v3476_v49, %v3191_v37  ;;  %v429_v52 = vpop.f32.mrb[5].mxu0 }
 0x175   :  { %v430_v53 = vadd.f32 %v3191_v37, %v429_v52  ;;  %3543 = vmatprep.mubr.msk.f32.mxu0 %vm460_vm1, %v450_v48 }
 0x176   :  { %v453_v54 = vmax.f32 %v435_v51, 0.0  ;;  %3544 = vmatmul.mubr.msk.f32.gmra.mrb[18].mxu0 %vm460_vm1, %v451_v50 }
 0x177   :  { %v452_v55 = vmax.f32 %v430_v53, 0.0  ;;  %v3479_v56 = vpop.f32.mrb[6].mxu0 }
 0x178   :  { %v445_v57 = vadd.f32 %v3479_v56, %v3191_v37  ;;  %v439_v58 = vpop.f32.mrb[7].mxu0 }
 0x179   :  { %v440_v59 = vadd.f32 %v3191_v37, %v439_v58  ;;  %3546 = vmatprep.mubr.msk.f32.mxu0 %vm460_vm1, %v452_v55 }
 0x17a   :  { %v455_v60 = vmax.f32 %v445_v57, 0.0  ;;  %3547 = vmatmul.mubr.msk.f32.gmra.mrb[20].mxu0 %vm460_vm1, %v453_v54 }
 0x17b   :  { %v454_v61 = vmax.f32 %v440_v59, 0.0 }
 0x17d   :  { %3549 = vmatprep.mubr.msk.f32.mxu0 %vm460_vm1, %v454_v61 }
 0x17e   :  { %3550 = vmatmul.mubr.msk.f32.gmra.mrb[22].mxu0 %vm460_vm1, %v455_v60 }
 0x1f4   :  { %v4531_v63 = vpop.f32.mrb[8].mxu0 }
 0x1f5   :  { %v4533_v0 = vpop.f32.mrb[9].mxu0  ;;  %v1075_v59 = vmul.f32 1.442695, %v4531_v63  ;;  %vm1058_vm3 = vcmp.gt.f32.partialorder %v4531_v63, 0.0 }
 0x1f6   :  { %v1073_v58 = vmul.f32 1.442695, %v4533_v0  ;;  %v1065_v62 = vadd.f32 1.0, %v4533_v0  ;;  %vm1057_vm2 = vcmp.gt.f32.partialorder %v4533_v0, 0.0 }
 0x1f8   :  { %3870 = vpow2.f32 %v1073_v58 }
 0x1f9   :  { %3872 = vpow2.f32 %v1075_v59 }
 0x1fc   :  { %v4535_v1 = vpop.f32.mrb[10].mxu0 }
 0x1fd   :  { %v4537_v2 = vpop.f32.mrb[11].mxu0  ;;  %v1079_v61 = vmul.f32 1.442695, %v4535_v1  ;;  %vm1060_vm5 = vcmp.gt.f32.partialorder %v4535_v1, 0.0 }
 0x1fe   :  { %v1077_v60 = vmul.f32 1.442695, %v4537_v2  ;;  %vm1059_vm4 = vcmp.gt.f32.partialorder %v4537_v2, 0.0 }
 0x200   :  { %v4539_v3 = vpop.f32.mrb[12].mxu0  ;;  %3874 = vpow2.f32 %v1077_v60 }
 0x201   :  { %v4541_v4 = vpop.f32.mrb[13].mxu0  ;;  %3876 = vpow2.f32 %v1079_v61  ;;  %v1070_v23 = vadd.f32 1.0, %v4539_v3  ;;  %vm1062_vm7 = vcmp.gt.f32.partialorder %v4539_v3, 0.0 }
 0x202   :  { %vm1061_vm6 = vcmp.gt.f32.partialorder %v4541_v4, 0.0 }
 0x204   :  { %v4543_v5 = vpop.f32.mrb[14].mxu0 }
 0x205   :  { %v4545_v6 = vpop.f32.mrb[15].mxu0  ;;  %vm1064_vm9 = vcmp.gt.f32.partialorder %v4543_v5, 0.0 }
 0x206   :  { %v1071_v26 = vadd.f32 1.0, %v4545_v6  ;;  %vm1063_vm8 = vcmp.gt.f32.partialorder %v4545_v6, 0.0 }
 0x245   :  { %v3542_v7 = vpop.f32.mrb[16].mxu0 }
 0x246   :  { %930 = vrot.lane.b32.xlu1 %v3542_v7, %s4242_s4  ;;  %v881_v8 = vpop.f32.mrb[17].mxu0  ;;  %v3871_v7 = vpop.eup %3870 }
 0x247   :  { %928 = vrot.lane.b32.xlu0 %v881_v8, %s4242_s4  ;;  %v1081_v8 = vmul.f32 1.442695, %v4541_v4 }
 0x249   :  { %v3545_v9 = vpop.f32.mrb[18].mxu0  ;;  %3878 = vpow2.f32 %v1081_v8 }
 0x24a   :  { %934 = vrot.lane.b32.xlu1 %v3545_v9, %s4242_s4  ;;  %v891_v10 = vpop.f32.mrb[19].mxu0  ;;  %v1066_v9 = vadd.f32 1.0, %v4531_v63 }
 0x24d   :  { %v3548_v11 = vpop.f32.mrb[20].mxu0 }
 0x24e   :  { %932 = vrot.lane.b32.xlu1 %v891_v10, %s4242_s4  ;;  %v901_v12 = vpop.f32.mrb[21].mxu0  ;;  %v1089_v10 = vsel %vm1057_vm2, %v1065_v62, %v3871_v7 }
 0x24f   :  { %936 = vrot.lane.b32.xlu0 %v901_v12, %s4242_s4  ;;  %v1083_v12 = vmul.f32 1.442695, %v4539_v3 }
 0x251   :  { %v3551_v13 = vpop.f32.mrb[22].mxu0  ;;  %3880 = vpow2.f32 %v1083_v12 }
 0x252   :  { %938 = vrot.lane.b32.xlu1 %v3548_v11, %s4242_s4  ;;  %v911_v14 = vpop.f32.mrb[23].mxu0  ;;  %v3873_v11 = vpop.eup %3872 }
 0x253   :  { %940 = vrot.lane.b32.xlu0 %v911_v14, %s4242_s4  ;;  %v1090_v14 = vsel %vm1058_vm3, %v1066_v9, %v3873_v11 }
 0x256   :  { %942 = vrot.lane.b32.xlu1 %v3551_v13, %s4242_s4  ;;  %v1067_v13 = vadd.f32 1.0, %v4537_v2 }
 0x271   :  { %174 = vxpose.xlu0.b32.start [1/4] (short) (narrow) %v158_v15, 64  ;;  %v3875_v15 = vpop.eup %3874 }
 0x275   :  { %175 = vxpose.xlu0.b32.cont [2/4] (short) (narrow) %v159_v16, 64  ;;  %v1068_v16 = vadd.f32 1.0, %v4535_v1 }
 0x279   :  { %176 = vxpose.xlu0.b32.cont [3/4] (short) (narrow) %v160_v17, 64  ;;  %v1091_v17 = vsel %vm1059_vm4, %v1067_v13, %v3875_v15 }
 0x27d   :  { %177 = vxpose.xlu0.b32.end [4/4] (short) (narrow) %v161_v18, 64  ;;  %v3877_v18 = vpop.eup %3876 }
 0x27f   :  { %206 = vxpose.xlu1.b32.start [1/4] (short) (narrow) %v162_v19, 64  ;;  %v1087_v19 = vmul.f32 1.442695, %v4543_v5 }
 0x283   :  { %207 = vxpose.xlu1.b32.cont [2/4] (short) (narrow) %v163_v20, 64  ;;  %v1069_v20 = vadd.f32 1.0, %v4541_v4 }
 0x287   :  { %208 = vxpose.xlu1.b32.cont [3/4] (short) (narrow) %v164_v21, 64  ;;  %v3879_v21 = vpop.eup %3878 }
 0x288   :  { %v3881_v24 = vpop.eup %3880 }
 0x289   :  { %v1094_v27 = vsel %vm1062_vm7, %v1070_v23, %v3881_v24 }
 0x28b   :  { %209 = vxpose.xlu1.b32.end [4/4] (short) (narrow) %v165_v22, 64 }
 0x2b8   :  { %v931_v30 = vpop.permute.xlu1 %930 }
 0x2b9   :  { %v953_v31 = vadd.f32 %v4531_v63, %v931_v30  ;;  %v929_v32 = vpop.permute.xlu0 %928 }
 0x2ba   :  { %v952_v33 = vadd.f32 %v929_v32, %v4533_v0  ;;  %v1085_v0 = vmul.f32 1.442695, %v4545_v6 }
 0x2bb   :  { %v970_v34 = vadd.f32 %v967_v29, %v953_v31 }
 0x2bc   :  { %v969_v35 = vadd.f32 %v967_v29, %v952_v33  ;;  %v935_v36 = vpop.permute.xlu1 %934  ;;  %3882 = vpow2.f32 %v1085_v0 }
 0x2bd   :  { %v955_v38 = vadd.f32 %v4535_v1, %v935_v36  ;;  %3884 = vpow2.f32 %v1087_v19  ;;  %v1093_v1 = vsel %vm1061_vm6, %v1069_v20, %v3879_v21 }
 0x2be   :  { %v3830_v37 = vpack.i.bf16 %v970_v34, %v969_v35 }
 0x2bf   :  { %v972_v42 = vadd.f32 %v967_v29, %v955_v38 }
 0x2c0   :  { %v933_v39 = vpop.permute.xlu1 %932  ;;  %3831 = vrot.lane.b32.xlu1 %v3830_v37, %s4243_s28 }
 0x2c1   :  { %v954_v40 = vadd.f32 %v933_v39, %v4537_v2  ;;  %v937_v41 = vpop.permute.xlu0 %936  ;;  %v1092_v2 = vsel %vm1060_vm5, %v1068_v16, %v3877_v18 }
 0x2c2   :  { %v956_v44 = vadd.f32 %v937_v41, %v4541_v4 }
 0x2c3   :  { %v971_v43 = vadd.f32 %v967_v29, %v954_v40 }
 0x2c4   :  { %v939_v45 = vpop.permute.xlu1 %938  ;;  %v973_v49 = vadd.f32 %v967_v29, %v956_v44 }
 0x2c5   :  { %v957_v46 = vadd.f32 %v4539_v3, %v939_v45  ;;  %v941_v47 = vpop.permute.xlu0 %940  ;;  %v3835_v48 = vpack.i.bf16 %v972_v42, %v971_v43 }
 0x2c6   :  { %v958_v51 = vadd.f32 %v941_v47, %v4545_v6  ;;  %v3883_v28 = vpop.eup %3882 }
 0x2c7   :  { %v974_v50 = vadd.f32 %v967_v29, %v957_v46  ;;  %3836 = vrot.lane.b32.xlu1 %v3835_v48, %s4243_s28  ;;  %v1095_v30 = vsel %vm1063_vm8, %v1071_v26, %v3883_v28  ;;  %v3885_v32 = vpop.eup %3884 }
 0x2c8   :  { %v943_v52 = vpop.permute.xlu1 %942  ;;  %v975_v55 = vadd.f32 %v967_v29, %v958_v51 }
 0x2c9   :  { %v959_v53 = vadd.f32 %v4543_v5, %v943_v52  ;;  %v3840_v54 = vpack.i.bf16 %v974_v50, %v973_v49 }
 0x2cb   :  { %v976_v56 = vadd.f32 %v967_v29, %v959_v53  ;;  %3841 = vrot.lane.b32.xlu0 %v3840_v54, %s4243_s28  ;;  %v1072_v29 = vadd.f32 1.0, %v4543_v5 }
 0x2cd   :  { %v3845_v57 = vpack.i.bf16 %v976_v56, %v975_v55  ;;  %v1096_v33 = vsel %vm1064_vm9, %v1072_v29, %v3885_v32 }
 0x2cf   :  { %3846 = vrot.lane.b32.xlu1 %v3845_v57, %s4243_s28 }
 0x2e9   :  { %1101 = vxpose.xlu0.b32.start [1/4] (short) (narrow) %v1089_v10, 32 }
 0x2ed   :  { %1102 = vxpose.xlu0.b32.cont [2/4] (short) (narrow) %v1090_v14, 32 }
 0x2f1   :  { %1103 = vxpose.xlu0.b32.cont [3/4] (short) (narrow) %v1091_v17, 32  ;;  %v190_v63 = vpop.trf.xlu0 }
 0x2f2   :  { %3488 = vmatprep.mubr.msk.f32.mxu1 %vm460_vm1, %v190_v63 }
 0x2f5   :  { %1104 = vxpose.xlu0.b32.end [4/4] (short) (narrow) %v1092_v2, 32  ;;  %v191_v22 = vpop.trf.xlu0 }
 0x2f6   :  { %3489 = vmatmul.mubr.msk.f32.vlgmr.msra.gmra.mrb[0].mxu1 %vm460_vm1, %v191_v22 }
 0x2f8   :  { %1133 = vxpose.xlu1.b32.start [1/4] (short) (narrow) %v1093_v1, 32 }
 0x2f9   :  { %v192_v25 = vpop.trf.xlu0 }
 0x2fa   :  { %3491 = vmatprep.mubr.msk.f32.mxu1 %vm460_vm1, %v192_v25 }
 0x2fc   :  { %1134 = vxpose.xlu1.b32.cont [2/4] (short) (narrow) %v1094_v27, 32 }
 0x2fd   :  { %v193_v4 = vpop.trf.xlu0 }
 0x2fe   :  { %3492 = vmatmul.mubr.msk.f32.gmra.mrb[2].mxu1 %vm460_vm1, %v193_v4 }
 0x2ff   :  { %v222_v31 = vpop.trf.xlu1 }
 0x300   :  { %1135 = vxpose.xlu1.b32.cont [3/4] (short) (narrow) %v1095_v30, 32 }
 0x301   :  { %v194_v3 = vpop.trf.xlu0 }
 0x302   :  { %3494 = vmatprep.mubr.msk.f32.mxu1 %vm460_vm1, %v194_v3 }
 0x303   :  { %v223_v34 = vpop.trf.xlu1 }
 0x304   :  { %1136 = vxpose.xlu1.b32.end [4/4] (short) (narrow) %v1096_v33, 32 }
 0x305   :  { %v195_v35 = vpop.trf.xlu0 }
 0x306   :  { %3495 = vmatmul.mubr.msk.f32.gmra.mrb[4].mxu1 %vm460_vm1, %v195_v35 }
 0x307   :  { %v224_v6 = vpop.trf.xlu1 }
 0x309   :  { %v196_v36 = vpop.trf.xlu0 }
 0x30a   :  { %3497 = vmatprep.mubr.msk.f32.mxu1 %vm460_vm1, %v196_v36 }
 0x30b   :  { %v225_v37 = vpop.trf.xlu1 }
 0x30d   :  { %v197_v38 = vpop.trf.xlu0 }
 0x30e   :  { %3498 = vmatmul.mubr.msk.f32.gmra.mrb[6].mxu1 %vm460_vm1, %v197_v38 }
 0x30f   :  { %v226_v39 = vpop.trf.xlu1  ;;  %3500 = vmatprep.mubr.msk.f32.mxu1 %vm460_vm1, %v222_v31 }
 0x312   :  { %3501 = vmatmul.mubr.msk.f32.gmra.mrb[8].mxu1 %vm460_vm1, %v223_v34 }
 0x313   :  { %v227_v5 = vpop.trf.xlu1  ;;  %3503 = vmatprep.mubr.msk.f32.mxu1 %vm460_vm1, %v224_v6  ;;  %v4687_v6 = vld [vmem:[#allocation11] sm:$0xff] }
 0x316   :  { %3504 = vmatmul.mubr.msk.f32.gmra.mrb[10].mxu1 %vm460_vm1, %v225_v37  ;;  %v4689_v37 = vld [vmem:[#allocation11 + $0x8] sm:$0xff] }
 0x317   :  { %v228_v40 = vpop.trf.xlu1  ;;  %3506 = vmatprep.mubr.msk.f32.mxu1 %vm460_vm1, %v226_v39 }
 0x31a   :  { %3507 = vmatmul.mubr.msk.f32.gmra.mrb[12].mxu1 %vm460_vm1, %v227_v5 }
 0x31b   :  { %3509 = vmatprep.mubr.msk.f32.mxu1 %vm460_vm1, %v228_v40  ;;  %v229_v41 = vpop.trf.xlu1 }
 0x31e   :  { %3510 = vmatmul.mubr.msk.f32.gmra.mrb[14].mxu1 %vm460_vm1, %v229_v41 }
 0x332   :  { %v3832_v42 = vpop.permute.xlu1 %3831 }
 0x333   :  { %v3834_v43 = vunpack.i.h.bf16 %v3832_v42  ;;  %v3833_v44 = vunpack.i.l.bf16 %v3832_v42  ;;  %v4694_v42 = vld [vmem:[#allocation11 + $0x10] sm:$0xff] }
 0x335   :  { %v3748_v45 = vpack.c.bf16 %v3834_v43, %v3833_v44  ;;  %v4696_v43 = vld [vmem:[#allocation11 + $0x18] sm:$0xff] }
 0x337   :  { %3749 = vmatprep.subr.bf16.mxu1 %v3748_v45 }
 0x338   :  { %3751 = vmatpush3.bf16.msra.mxu1 %v3748_v45 }
 0x339   :  { %v3837_v46 = vpop.permute.xlu1 %3836 }
 0x33a   :  { %v3839_v47 = vunpack.i.h.bf16 %v3837_v46  ;;  %v3838_v48 = vunpack.i.l.bf16 %v3837_v46 }
 0x33c   :  { %v3752_v49 = vpack.c.bf16 %v3839_v47, %v3838_v48 }
 0x33d   :  { %v3842_v50 = vpop.permute.xlu0 %3841 }
 0x33e   :  { %v3844_v51 = vunpack.i.h.bf16 %v3842_v50  ;;  %v3843_v52 = vunpack.i.l.bf16 %v3842_v50  ;;  %3753 = vmatprep.subr.bf16.mxu1 %v3752_v49 }
 0x33f   :  { %3755 = vmatpush3.bf16.msra.mxu1 %v3752_v49 }
 0x340   :  { %v3756_v53 = vpack.c.bf16 %v3844_v51, %v3843_v52 }
 0x341   :  { %v3847_v54 = vpop.permute.xlu1 %3846 }
 0x342   :  { %3757 = vmatprep.subr.bf16.mxu1 %v3756_v53  ;;  %v3849_v56 = vunpack.i.h.bf16 %v3847_v54  ;;  %v3848_v57 = vunpack.i.l.bf16 %v3847_v54 }
 0x344   :  { %v3760_v61 = vpack.c.bf16 %v3849_v56, %v3848_v57 }
 0x369   :  { %v1117_v55 = vpop.trf.xlu0 }
 0x36a   :  { %3560 = vmatprep.mubr.msk.f32.mxu1 %vm460_vm1, %v1117_v55  ;;  %v1391_v58 = vsel %vm460_vm1, %v1117_v55, 0.0 }
 0x36b   :  { %1392 = vadd.xlane.f32.xlu0 %v1391_v58 }
 0x36d   :  { %v1118_v59 = vpop.trf.xlu0 }
 0x36e   :  { %3561 = vmatmul.mubr.msk.f32.vlgmr.msra.gmra.mrb[16].mxu1 %vm460_vm1, %v1118_v59  ;;  %v1394_v60 = vsel %vm460_vm1, %v1118_v59, 0.0 }
 0x36f   :  { %3759 = vmatpush3.bf16.msra.mxu1 %v3756_v53  ;;  %1395 = vadd.xlane.f32.xlu1 %v1394_v60 }
 0x370   :  { %3761 = vmatprep.subr.bf16.mxu1 %v3760_v61 }
 0x371   :  { %v1119_v62 = vpop.trf.xlu0 }
 0x372   :  { %3563 = vmatprep.mubr.msk.f32.mxu1 %vm460_vm1, %v1119_v62  ;;  %v1397_v7 = vsel %vm460_vm1, %v1119_v62, 0.0 }
 0x373   :  { %3763 = vmatpush3.bf16.msra.mxu1 %v3760_v61  ;;  %1398 = vadd.xlane.f32.xlu0 %v1397_v7 }
 0x375   :  { %v1120_v8 = vpop.trf.xlu0 }
 0x376   :  { %3564 = vmatmul.mubr.msk.f32.gmra.mrb[18].mxu1 %vm460_vm1, %v1120_v8  ;;  %v1400_v9 = vsel %vm460_vm1, %v1120_v8, 0.0 }
 0x377   :  { %1401 = vadd.xlane.f32.xlu0 %v1400_v9 }
 0x378   :  { %v1149_v10 = vpop.trf.xlu1 }
 0x379   :  { %v1403_v11 = vsel %vm460_vm1, %v1149_v10, 0.0  ;;  %3574 = vmatprep.mubr.msk.f32.mxu1 %vm460_vm1, %v1149_v10 }
 0x37b   :  { %1404 = vadd.xlane.f32.xlu0 %v1403_v11 }
 0x37c   :  { %v1150_v12 = vpop.trf.xlu1 }
 0x37d   :  { %v1406_v13 = vsel %vm460_vm1, %v1150_v12, 0.0  ;;  %3575 = vmatmul.mubr.msk.f32.vlgmr.msra.gmra.mrb[20].mxu1 %vm460_vm1, %v1150_v12 }
 0x37f   :  { %1407 = vadd.xlane.f32.xlu0 %v1406_v13 }
 0x380   :  { %v1151_v14 = vpop.trf.xlu1 }
 0x381   :  { %v1409_v15 = vsel %vm460_vm1, %v1151_v14, 0.0  ;;  %3577 = vmatprep.mubr.msk.f32.mxu1 %vm460_vm1, %v1151_v14 }
 0x382   :  { %1410 = vadd.xlane.f32.xlu1 %v1409_v15 }
 0x384   :  { %v1152_v0 = vpop.trf.xlu1 }
 0x385   :  { %v1412_v16 = vsel %vm460_vm1, %v1152_v0, 0.0  ;;  %3578 = vmatmul.mubr.msk.f32.gmra.mrb[22].mxu1 %vm460_vm1, %v1152_v0 }
 0x386   :  { %1413 = vadd.xlane.f32.xlu0 %v1412_v16 }
 0x3c9   :  { %v4647_v17 = vpop.f32.mrb[0].mxu1 }
 0x3ca   :  { %v4649_v18 = vpop.f32.mrb[1].mxu1  ;;  %v1011_v10 = vmul.f32 1.442695, %v4647_v17  ;;  %vm978_vm12 = vcmp.gt.f32.partialorder %v4647_v17, 0.0 }
 0x3cb   :  { %v1009_v63 = vmul.f32 1.442695, %v4649_v18  ;;  %v993_v21 = vadd.f32 1.0, %v4649_v18  ;;  %vm977_vm10 = vcmp.gt.f32.partialorder %v4649_v18, 0.0 }
 0x3cd   :  { %3886 = vpow2.f32 %v1009_v63 }
 0x3d1   :  { %v4652_v19 = vpop.f32.mrb[2].mxu1 }
 0x3d2   :  { %v4654_v20 = vpop.f32.mrb[3].mxu1  ;;  %v1015_v16 = vmul.f32 1.442695, %v4652_v19  ;;  %vm980_vm14 = vcmp.gt.f32.partialorder %v4652_v19, 0.0 }
 0x3d3   :  { %v1013_v11 = vmul.f32 1.442695, %v4654_v20  ;;  %vm979_vm13 = vcmp.gt.f32.partialorder %v4654_v20, 0.0 }
 0x3d7   :  { %v3887_v2 = vpop.eup %3886 }
 0x3d8   :  { %v1041_v22 = vsel %vm977_vm10, %v993_v21, %v3887_v2 }
 0x3d9   :  { %v4658_v23 = vpop.f32.mrb[4].mxu1  ;;  %3588 = vmatprep.mubr.msk.f32.mxu0 %vm460_vm1, %v1041_v22 }
 0x3da   :  { %v4661_v1 = vpop.f32.mrb[5].mxu1  ;;  %vm982_vm0 = vcmp.gt.f32.partialorder %v4658_v23, 0.0 }
 0x3db   :  { %v1017_v2 = vmul.f32 1.442695, %v4661_v1  ;;  %vm981_vm15 = vcmp.gt.f32.partialorder %v4661_v1, 0.0 }
 0x3e1   :  { %v4663_v24 = vpop.f32.mrb[6].mxu1 }
 0x3e2   :  { %v4665_v25 = vpop.f32.mrb[7].mxu1  ;;  %vm984_vm3 = vcmp.gt.f32.partialorder %v4663_v24, 0.0 }
 0x3e3   :  { %vm983_vm2 = vcmp.gt.f32.partialorder %v4665_v25, 0.0 }
 0x3e5   :  { %v4667_v26 = vpop.f32.mrb[8].mxu1 }
 0x3e6   :  { %v4669_v27 = vpop.f32.mrb[9].mxu1  ;;  %vm986_vm4 = vcmp.gt.f32.partialorder %v4667_v26, 0.0 }
 0x3e7   :  { %v1025_v28 = vmul.f32 1.442695, %v4669_v27  ;;  %v1001_v32 = vadd.f32 1.0, %v4669_v27  ;;  %vm985_vm11 = vcmp.gt.f32.partialorder %v4669_v27, 0.0 }
 0x3e9   :  { %3888 = vpow2.f32 %v1025_v28  ;;  %v4672_v4 = vpop.f32.mrb[10].mxu1  ;;  %v1019_v28 = vmul.f32 1.442695, %v4658_v23 }
 0x3ea   :  { %v4674_v29 = vpop.f32.mrb[11].mxu1  ;;  %3890 = vpow2.f32 %v1011_v10  ;;  %vm988_vm6 = vcmp.gt.f32.partialorder %v4672_v4, 0.0 }
 0x3eb   :  { %3892 = vpow2.f32 %v1013_v11  ;;  %vm987_vm5 = vcmp.gt.f32.partialorder %v4674_v29, 0.0 }
 0x3ec   :  { %3894 = vpow2.f32 %v1015_v16 }
 0x3ed   :  { %v4676_v30 = vpop.f32.mrb[12].mxu1  ;;  %3896 = vpow2.f32 %v1017_v2 }
 0x3ee   :  { %v4678_v31 = vpop.f32.mrb[13].mxu1  ;;  %3898 = vpow2.f32 %v1019_v28  ;;  %v1035_v16 = vmul.f32 1.442695, %v4676_v30  ;;  %vm990_vm8 = vcmp.gt.f32.partialorder %v4676_v30, 0.0 }
 0x3ef   :  { %v1033_v11 = vmul.f32 1.442695, %v4678_v31  ;;  %vm989_vm7 = vcmp.gt.f32.partialorder %v4678_v31, 0.0 }
 0x3f1   :  { %v4682_v3 = vpop.f32.mrb[14].mxu1 }
 0x3f2   :  { %v4684_v33 = vpop.f32.mrb[15].mxu1  ;;  %vm992_vm10 = vcmp.gt.f32.partialorder %v4682_v3, 0.0 }
 0x3f3   :  { %v3889_v34 = vpop.eup %3888  ;;  %vm991_vm9 = vcmp.gt.f32.partialorder %v4684_v33, 0.0 }
 0x3f4   :  { %v1049_v35 = vsel %vm985_vm11, %v1001_v32, %v3889_v34  ;;  %v1021_v32 = vmul.f32 1.442695, %v4665_v25  ;;  %vm2658_vm11 = vcmask 523264  }
 0x3f5   :  { %3608 = vmatprep.mubr.msk.f32.mxu1 %vm460_vm1, %v1049_v35 }
 0x3f6   :  { %3900 = vpow2.f32 %v1021_v32 }
 0x3f8   :  { %v1393_v36 = vpop.xlane.xlu0 %1392 }
 0x3f9   :  { %v1423_v39 = vmul.f32 %v1393_v36, %v4687_v6 }
 0x3fc   :  { %v1396_v38 = vpop.xlane.xlu1 %1395 }
 0x3fd   :  { %v1424_v5 = vmul.f32 %v1396_v38, %v4689_v37 }
 0x3ff   :  { %v3850_v40 = vpack.i.bf16 %v1424_v5, %v1423_v39 }
 0x400   :  { %v1399_v41 = vpop.xlane.xlu0 %1398 }
 0x401   :  { %3851 = vrot.lane.b32.xlu1 %v3850_v40, %s4242_s4  ;;  %v1425_v45 = vmul.f32 %v1399_v41, %v4694_v42  ;;  %v994_v41 = vadd.f32 1.0, %v4647_v17 }
 0x404   :  { %v1402_v44 = vpop.xlane.xlu0 %1401 }
 0x405   :  { %v1426_v46 = vmul.f32 %v1402_v44, %v4696_v43  ;;  %v1023_v44 = vmul.f32 1.442695, %v4663_v24 }
 0x407   :  { %v3855_v47 = vpack.i.bf16 %v1426_v46, %v1425_v45  ;;  %v3891_v46 = vpop.eup %3890  ;;  %3902 = vpow2.f32 %v1023_v44 }
 0x408   :  { %v1405_v48 = vpop.xlane.xlu0 %1404 }
 0x409   :  { %3856 = vrot.lane.b32.xlu0 %v3855_v47, %s4242_s4  ;;  %v1427_v49 = vmul.f32 %v1405_v48, %v4687_v6  ;;  %v995_v47 = vadd.f32 1.0, %v4654_v20  ;;  %v3893_v48 = vpop.eup %3892 }
 0x40b   :  { %v1043_v10 = vsel %vm979_vm13, %v995_v47, %v3893_v48  ;;  %v1004_v47 = vadd.f32 1.0, %v4672_v4 }
 0x40c   :  { %v1408_v50 = vpop.xlane.xlu0 %1407 }
 0x40d   :  { %v1428_v51 = vmul.f32 %v1408_v50, %v4689_v37  ;;  %v1027_v50 = vmul.f32 1.442695, %v4667_v26 }
 0x40f   :  { %v3860_v52 = vpack.i.bf16 %v1428_v51, %v1427_v49  ;;  %v1411_v53 = vpop.xlane.xlu1 %1410  ;;  %v996_v49 = vadd.f32 1.0, %v4652_v19  ;;  %v1042_v51 = vsel %vm978_vm12, %v994_v41, %v3891_v46  ;;  %3904 = vpow2.f32 %v1027_v50 }
 0x410   :  { %v1429_v54 = vmul.f32 %v1411_v53, %v4694_v42 }
 0x411   :  { %3861 = vrot.lane.b32.xlu1 %v3860_v52, %s4242_s4  ;;  %v1029_v52 = vmul.f32 1.442695, %v4674_v29 }
 0x413   :  { %v1414_v55 = vpop.xlane.xlu0 %1413  ;;  %3906 = vpow2.f32 %v1029_v52 }
 0x414   :  { %v1430_v56 = vmul.f32 %v1414_v55, %v4696_v43 }
 0x416   :  { %v3865_v57 = vpack.i.bf16 %v1430_v56, %v1429_v54  ;;  %v3895_v54 = vpop.eup %3894 }
 0x418   :  { %3866 = vrot.lane.b32.xlu1 %v3865_v57, %s4242_s4 }
 0x441   :  { %v3562_v58 = vpop.f32.mrb[16].mxu1 }
 0x442   :  { %v1259_v59 = vpop.f32.mrb[17].mxu1  ;;  %v1416_v13 = vmul.f32 %v3562_v58, %v4689_v37 }
 0x443   :  { %v1415_v14 = vmul.f32 %v1259_v59, %v4687_v6  ;;  %v3897_v59 = vpop.eup %3896 }
 0x449   :  { %v3565_v60 = vpop.f32.mrb[18].mxu1 }
 0x44a   :  { %v1269_v61 = vpop.f32.mrb[19].mxu1  ;;  %v1418_v35 = vmul.f32 %v3565_v60, %v4696_v43  ;;  %v997_v60 = vadd.f32 1.0, %v4661_v1 }
 0x44b   :  { %v1417_v36 = vmul.f32 %v1269_v61, %v4694_v42  ;;  %v1031_v61 = vmul.f32 1.442695, %v4672_v4 }
 0x44d   :  { %3908 = vpow2.f32 %v1031_v61 }
 0x44e   :  { %3910 = vpow2.f32 %v1033_v11  ;;  %v1858_v11 = vld [vmem:[#allocation10 + $0x8] sm:$0xff] }
 0x44f   :  { %3912 = vpow2.f32 %v1035_v16 }
 0x450   :  { %v3576_v62 = vpop.f32.mrb[20].mxu1 }
 0x451   :  { %v1372_v7 = vpop.f32.mrb[21].mxu1  ;;  %v1420_v55 = vmul.f32 %v3576_v62, %v4689_v37 }
 0x452   :  { %v1419_v56 = vmul.f32 %v1372_v7, %v4687_v6  ;;  %v998_v7 = vadd.f32 1.0, %v4658_v23 }
 0x458   :  { %v4707_v8 = vpop.f32.mrb[22].mxu1 }
 0x459   :  { %v4709_v9 = vpop.f32.mrb[23].mxu1  ;;  %v1422_v2 = vmul.f32 %v4707_v8, %v4696_v43  ;;  %v1039_v43 = vmul.f32 1.442695, %v4682_v3  ;;  %v1002_v8 = vadd.f32 1.0, %v4667_v26 }
 0x473   :  { %v3852_v12 = vpop.permute.xlu1 %3851 }
 0x474   :  { %v3854_v15 = vunpack.i.h.bf16 %v3852_v12  ;;  %v3853_v0 = vunpack.i.l.bf16 %v3852_v12  ;;  %v1044_v12 = vsel %vm980_vm14, %v996_v49, %v3895_v54  ;;  %v1005_v49 = vadd.f32 1.0, %v4678_v31 }
 0x475   :  { %v1007_v54 = vadd.f32 1.0, %v4684_v33 }
 0x476   :  { %v1463_v63 = vsel %vm460_vm1, %v1415_v14, %v3853_v0  ;;  %v1464_v21 = vsel %vm460_vm1, %v1416_v13, %v3854_v15  ;;  %v3899_v13 = vpop.eup %3898  ;;  %v999_v14 = vadd.f32 1.0, %v4665_v25  ;;  %v1045_v15 = vsel %vm981_vm15, %v997_v60, %v3897_v59 }
 0x477   :  { %v3764_v22 = vpack.c.bf16 %v1464_v21, %v1463_v63  ;;  %v3901_v0 = vpop.eup %3900  ;;  %v1037_v63 = vmul.f32 1.442695, %v4684_v33 }
 0x479   :  { %3765 = vmatprep.subr.bf16.mxu0 %v3764_v22  ;;  %3914 = vpow2.f32 %v1037_v63 }
 0x47a   :  { %3767 = vmatpush3.bf16.msra.mxu0 %v3764_v22  ;;  %v1421_v22 = vmul.f32 %v4709_v9, %v4694_v42  ;;  %3916 = vpow2.f32 %v1039_v43 }
 0x47b   :  { %v3857_v34 = vpop.permute.xlu0 %3856 }
 0x47c   :  { %v3859_v38 = vunpack.i.h.bf16 %v3857_v34  ;;  %v3858_v39 = vunpack.i.l.bf16 %v3857_v34  ;;  %v1000_v34 = vadd.f32 1.0, %v4663_v24 }
 0x47e   :  { %v1465_v5 = vsel %vm460_vm1, %v1417_v36, %v3858_v39  ;;  %v1466_v40 = vsel %vm460_vm1, %v1418_v35, %v3859_v38  ;;  %v1046_v35 = vsel %vm982_vm0, %v998_v7, %v3899_v13  ;;  %v3903_v36 = vpop.eup %3902  ;;  %v1047_v38 = vsel %vm983_vm2, %v999_v14, %v3901_v0 }
 0x47f   :  { %v3768_v45 = vpack.c.bf16 %v1466_v40, %v1465_v5  ;;  %v3905_v9 = vpop.eup %3904  ;;  %v1003_v40 = vadd.f32 1.0, %v4674_v29  ;;  %v1048_v41 = vsel %vm984_vm3, %v1000_v34, %v3903_v36 }
 0x480   :  { %v3907_v44 = vpop.eup %3906  ;;  %v1050_v46 = vsel %vm986_vm4, %v1002_v8, %v3905_v9 }
 0x481   :  { %3769 = vmatprep.subr.bf16.mxu0 %v3768_v45  ;;  %v1051_v50 = vsel %vm987_vm5, %v1003_v40, %v3907_v44 }
 0x482   :  { %3771 = vmatpush3.bf16.msra.mxu0 %v3768_v45  ;;  %v3909_v45 = vpop.eup %3908 }
 0x483   :  { %v3862_v53 = vpop.permute.xlu1 %3861  ;;  %v3911_v48 = vpop.eup %3910  ;;  %v1052_v52 = vsel %vm988_vm6, %v1004_v47, %v3909_v45 }
 0x484   :  { %v3864_v57 = vunpack.i.h.bf16 %v3862_v53  ;;  %v3863_v58 = vunpack.i.l.bf16 %v3862_v53  ;;  %v3913_v53 = vpop.eup %3912 }
 0x485   :  { %3589 = vmatmul.mubr.msk.f32.vlgmr.msra.gmra.mrb[24].mxu0 %vm460_vm1, %v1042_v51  ;;  %v1006_v51 = vadd.f32 1.0, %v4676_v30 }
 0x486   :  { %3591 = vmatprep.mubr.msk.f32.mxu0 %vm460_vm1, %v1043_v10  ;;  %v1467_v37 = vsel %vm460_vm1, %v1419_v56, %v3863_v58  ;;  %v1468_v6 = vsel %vm460_vm1, %v1420_v55, %v3864_v57  ;;  %v1053_v55 = vsel %vm989_vm7, %v1005_v49, %v3911_v48  ;;  %v3915_v56 = vpop.eup %3914  ;;  %v1008_v57 = vadd.f32 1.0, %v4682_v3  ;;  %v1857_v10 = vld [vmem:[#allocation10] sm:$0xff] }
 0x487   :  { %v3772_v62 = vpack.c.bf16 %v1468_v6, %v1467_v37  ;;  %v1054_v58 = vsel %vm990_vm8, %v1006_v51, %v3913_v53  ;;  %v3917_v59 = vpop.eup %3916  ;;  %v1055_v60 = vsel %vm991_vm9, %v1007_v54, %v3915_v56  ;;  %v3780_v37 = vpack.c.bf16 %v1858_v11, %v1857_v10  ;;  %v1859_v6 = vld [vmem:[#allocation10 + $0x10] sm:$0xff] }
 0x488   :  { %v1056_v61 = vsel %vm992_vm10, %v1008_v57, %v3917_v59 }
 0x489   :  { %3592 = vmatmul.mubr.msk.f32.gmra.mrb[26].mxu0 %vm460_vm1, %v1044_v12  ;;  %3773 = vmatprep.subr.bf16.mxu1 %v3772_v62 }
 0x48a   :  { %v3867_v21 = vpop.permute.xlu1 %3866  ;;  %3594 = vmatprep.mubr.msk.f32.mxu0 %vm460_vm1, %v1045_v15  ;;  %3775 = vmatpush3.bf16.msra.mxu1 %v3772_v62  ;;  %v1860_v62 = vld [vmem:[#allocation10 + $0x18] sm:$0xff] }
 0x48b   :  { %v3869_v28 = vunpack.i.h.bf16 %v3867_v21  ;;  %v3868_v32 = vunpack.i.l.bf16 %v3867_v21  ;;  %3781 = vmatprep.subr.bf16.mxu0 %v3780_v37  ;;  %v3784_v12 = vpack.c.bf16 %v1860_v62, %v1859_v6 }
 0x48c   :  { %3783 = vmatpush3.bf16.msra.mxu0 %v3780_v37 }
 0x48d   :  { %3595 = vmatmul.mubr.msk.f32.gmra.mrb[28].mxu0 %vm460_vm1, %v1046_v35  ;;  %v1469_v39 = vsel %vm460_vm1, %v1421_v22, %v3868_v32  ;;  %v1470_v5 = vsel %vm460_vm1, %v1422_v2, %v3869_v28  ;;  %3785 = vmatprep.subr.bf16.mxu0 %v3784_v12 }
 0x48e   :  { %3597 = vmatprep.mubr.msk.f32.mxu0 %vm460_vm1, %v1047_v38  ;;  %v3776_v42 = vpack.c.bf16 %v1470_v5, %v1469_v39 }
 0x490   :  { %3777 = vmatprep.subr.bf16.mxu1 %v3776_v42  ;;  %3787 = vmatpush3.bf16.msra.mxu0 %v3784_v12 }
 0x491   :  { %3598 = vmatmul.mubr.msk.f32.gmra.mrb[30].mxu0 %vm460_vm1, %v1048_v41  ;;  %3779 = vmatpush3.bf16.msra.mxu1 %v3776_v42 }
 0x492   :  { %3812 = vmatprep.subr.bf16.mxu1 %v3780_v37 }
 0x494   :  { %3609 = vmatmul.mubr.msk.f32.vlgmr.msra.gmra.mrb[24].mxu1 %vm460_vm1, %v1050_v46 }
 0x495   :  { %3611 = vmatprep.mubr.msk.f32.mxu1 %vm460_vm1, %v1051_v50  ;;  %3814 = vmatpush3.bf16.msra.mxu1 %v3780_v37 }
 0x496   :  { %3813 = vmatprep.subr.bf16.mxu1 %v3784_v12 }
 0x498   :  { %3612 = vmatmul.mubr.msk.f32.gmra.mrb[26].mxu1 %vm460_vm1, %v1052_v52 }
 0x499   :  { %3614 = vmatprep.mubr.msk.f32.mxu1 %vm460_vm1, %v1053_v55  ;;  %3815 = vmatpush3.bf16.msra.mxu1 %v3784_v12 }
 0x49c   :  { %3615 = vmatmul.mubr.msk.f32.gmra.mrb[28].mxu1 %vm460_vm1, %v1054_v58 }
 0x49d   :  { %3617 = vmatprep.mubr.msk.f32.mxu1 %vm460_vm1, %v1055_v60 }
 0x4a0   :  { %3618 = vmatmul.mubr.msk.f32.gmra.mrb[30].mxu1 %vm460_vm1, %v1056_v61 }
 0x558   :  { %v4787_v7 = vpop.f32.mrb[24].mxu0 }
 0x559   :  { %v1730_v13 = vadd.f32 1e-06, %v4787_v7  ;;  %v4790_v14 = vpop.f32.mrb[25].mxu0 }
 0x55a   :  { %v1729_v15 = vadd.f32 1e-06, %v4790_v14 }
 0x55b   :  { %3918 = vrcp.f32 %v1730_v13 }
 0x55c   :  { %3920 = vrcp.f32 %v1729_v15  ;;  %v4793_v0 = vpop.f32.mrb[26].mxu0 }
 0x55d   :  { %v1732_v16 = vadd.f32 1e-06, %v4793_v0  ;;  %v4796_v63 = vpop.f32.mrb[27].mxu0 }
 0x55e   :  { %v1731_v21 = vadd.f32 1e-06, %v4796_v63 }
 0x55f   :  { %3922 = vrcp.f32 %v1732_v16 }
 0x560   :  { %3924 = vrcp.f32 %v1731_v21  ;;  %v4799_v2 = vpop.f32.mrb[28].mxu0 }
 0x561   :  { %v1734_v22 = vadd.f32 1e-06, %v4799_v2  ;;  %v4802_v28 = vpop.f32.mrb[29].mxu0 }
 0x562   :  { %v1733_v32 = vadd.f32 1e-06, %v4802_v28 }
 0x563   :  { %3926 = vrcp.f32 %v1734_v22 }
 0x564   :  { %3928 = vrcp.f32 %v1733_v32  ;;  %v4805_v34 = vpop.f32.mrb[30].mxu0 }
 0x565   :  { %v3919_v35 = vpop.eup %3918  ;;  %v1736_v36 = vadd.f32 1e-06, %v4805_v34  ;;  %v4808_v38 = vpop.f32.mrb[31].mxu0 }
 0x566   :  { %v3921_v39 = vpop.eup %3920  ;;  %v1735_v5 = vadd.f32 1e-06, %v4808_v38  ;;  %1795 = vrot.lane.b32.xlu1 %v3919_v35, %s4243_s28 }
 0x567   :  { %3930 = vrcp.f32 %v1736_v36  ;;  %1793 = vrot.lane.b32.xlu0 %v3921_v39, %s4243_s28  ;;  %v4813_v43 = vpop.f32.mrb[24].mxu1 }
 0x568   :  { %3932 = vrcp.f32 %v1735_v5  ;;  %v1738_v42 = vadd.f32 1e-06, %v4813_v43  ;;  %v4816_v8 = vpop.f32.mrb[25].mxu1 }
 0x569   :  { %v3923_v9 = vpop.eup %3922  ;;  %v1737_v40 = vadd.f32 1e-06, %v4816_v8 }
 0x56a   :  { %v3925_v41 = vpop.eup %3924  ;;  %3934 = vrcp.f32 %v1738_v42  ;;  %1799 = vrot.lane.b32.xlu1 %v3923_v9, %s4243_s28 }
 0x56b   :  { %3936 = vrcp.f32 %v1737_v40  ;;  %1797 = vrot.lane.b32.xlu0 %v3925_v41, %s4243_s28  ;;  %v4821_v44 = vpop.f32.mrb[26].mxu1 }
 0x56c   :  { %v1740_v45 = vadd.f32 1e-06, %v4821_v44  ;;  %v4824_v46 = vpop.f32.mrb[27].mxu1 }
 0x56d   :  { %v3927_v47 = vpop.eup %3926  ;;  %v1739_v48 = vadd.f32 1e-06, %v4824_v46 }
 0x56e   :  { %v3929_v49 = vpop.eup %3928  ;;  %3938 = vrcp.f32 %v1740_v45  ;;  %1803 = vrot.lane.b32.xlu1 %v3927_v47, %s4243_s28 }
 0x56f   :  { %3940 = vrcp.f32 %v1739_v48  ;;  %1801 = vrot.lane.b32.xlu0 %v3929_v49, %s4243_s28  ;;  %v4829_v50 = vpop.f32.mrb[28].mxu1 }
 0x570   :  { %v1742_v51 = vadd.f32 1e-06, %v4829_v50  ;;  %v4832_v52 = vpop.f32.mrb[29].mxu1 }
 0x571   :  { %v3931_v53 = vpop.eup %3930  ;;  %v1741_v54 = vadd.f32 1e-06, %v4832_v52 }
 0x572   :  { %v3933_v55 = vpop.eup %3932  ;;  %3942 = vrcp.f32 %v1742_v51  ;;  %1807 = vrot.lane.b32.xlu1 %v3931_v53, %s4243_s28 }
 0x573   :  { %3944 = vrcp.f32 %v1741_v54  ;;  %1805 = vrot.lane.b32.xlu0 %v3933_v55, %s4243_s28  ;;  %v4837_v56 = vpop.f32.mrb[30].mxu1 }
 0x574   :  { %v3935_v57 = vpop.eup %3934  ;;  %v1744_v58 = vadd.f32 1e-06, %v4837_v56  ;;  %v4840_v59 = vpop.f32.mrb[31].mxu1 }
 0x575   :  { %v3937_v60 = vpop.eup %3936  ;;  %v1743_v61 = vadd.f32 1e-06, %v4840_v59 }
 0x576   :  { %3946 = vrcp.f32 %v1744_v58  ;;  %1811 = vrot.lane.b32.xlu1 %v3935_v57, %s4243_s28 }
 0x577   :  { %3948 = vrcp.f32 %v1743_v61  ;;  %1809 = vrot.lane.b32.xlu0 %v3937_v60, %s4243_s28 }
 0x578   :  { %v3939_v10 = vpop.eup %3938 }
 0x579   :  { %v3941_v11 = vpop.eup %3940 }
 0x57a   :  { %1815 = vrot.lane.b32.xlu1 %v3939_v10, %s4243_s28 }
 0x57b   :  { %1813 = vrot.lane.b32.xlu0 %v3941_v11, %s4243_s28 }
 0x57c   :  { %v3943_v37 = vpop.eup %3942 }
 0x57d   :  { %v3945_v6 = vpop.eup %3944 }
 0x57e   :  { %1819 = vrot.lane.b32.xlu1 %v3943_v37, %s4243_s28 }
 0x57f   :  { %1817 = vrot.lane.b32.xlu0 %v3945_v6, %s4243_s28 }
 0x580   :  { %v3947_v62 = vpop.eup %3946 }
 0x581   :  { %v3949_v12 = vpop.eup %3948 }
 0x582   :  { %1823 = vrot.lane.b32.xlu1 %v3947_v62, %s4243_s28 }
 0x583   :  { %1821 = vrot.lane.b32.xlu0 %v3949_v12, %s4243_s28 }
 0x5d8   :  { %v1796_v13 = vpop.permute.xlu1 %1795 }
 0x5d9   :  { %v1794_v15 = vpop.permute.xlu0 %1793  ;;  %v1842_v21 = vmul.f32 %v4787_v7, %v1796_v13 }
 0x5da   :  { %v1841_v16 = vmul.f32 %v1794_v15, %v4790_v14 }
 0x5dc   :  { %3628 = vmatprep.mubr.msk.f32.mxu0 %vm460_vm1, %v1841_v16  ;;  %v1800_v22 = vpop.permute.xlu1 %1799 }
 0x5dd   :  { %3629 = vmatmul.mubr.msk.f32.vlgmr.msra.gmra.mrb[32].mxu0 %vm460_vm1, %v1842_v21  ;;  %v1798_v32 = vpop.permute.xlu0 %1797  ;;  %v1844_v36 = vmul.f32 %v4793_v0, %v1800_v22 }
 0x5de   :  { %v1843_v35 = vmul.f32 %v1798_v32, %v4796_v63 }
 0x5e0   :  { %3631 = vmatprep.mubr.msk.f32.mxu0 %vm460_vm1, %v1843_v35  ;;  %v1804_v39 = vpop.permute.xlu1 %1803 }
 0x5e1   :  { %3632 = vmatmul.mubr.msk.f32.gmra.mrb[34].mxu0 %vm460_vm1, %v1844_v36  ;;  %v1802_v5 = vpop.permute.xlu0 %1801  ;;  %v1846_v7 = vmul.f32 %v4799_v2, %v1804_v39 }
 0x5e2   :  { %v1845_v14 = vmul.f32 %v1802_v5, %v4802_v28 }
 0x5e4   :  { %3634 = vmatprep.mubr.msk.f32.mxu0 %vm460_vm1, %v1845_v14  ;;  %v1808_v42 = vpop.permute.xlu1 %1807 }
 0x5e5   :  { %3635 = vmatmul.mubr.msk.f32.gmra.mrb[36].mxu0 %vm460_vm1, %v1846_v7  ;;  %v1806_v9 = vpop.permute.xlu0 %1805  ;;  %v1848_v0 = vmul.f32 %v4805_v34, %v1808_v42 }
 0x5e6   :  { %v1847_v63 = vmul.f32 %v1806_v9, %v4808_v38 }
 0x5e8   :  { %3637 = vmatprep.mubr.msk.f32.mxu0 %vm460_vm1, %v1847_v63  ;;  %v1812_v40 = vpop.permute.xlu1 %1811 }
 0x5e9   :  { %3638 = vmatmul.mubr.msk.f32.gmra.mrb[38].mxu0 %vm460_vm1, %v1848_v0  ;;  %v1810_v41 = vpop.permute.xlu0 %1809  ;;  %v1850_v2 = vmul.f32 %v4813_v43, %v1812_v40 }
 0x5ea   :  { %v1849_v28 = vmul.f32 %v1810_v41, %v4816_v8 }
 0x5ec   :  { %3640 = vmatprep.mubr.msk.f32.mxu0 %vm460_vm1, %v1849_v28  ;;  %v1816_v45 = vpop.permute.xlu1 %1815 }
 0x5ed   :  { %3641 = vmatmul.mubr.msk.f32.gmra.mrb[40].mxu0 %vm460_vm1, %v1850_v2  ;;  %v1814_v47 = vpop.permute.xlu0 %1813  ;;  %v1852_v34 = vmul.f32 %v4821_v44, %v1816_v45 }
 0x5ee   :  { %v1851_v38 = vmul.f32 %v1814_v47, %v4824_v46 }
 0x5f0   :  { %3643 = vmatprep.mubr.msk.f32.mxu1 %vm460_vm1, %v1851_v38  ;;  %v1820_v48 = vpop.permute.xlu1 %1819 }
 0x5f1   :  { %3644 = vmatmul.mubr.msk.f32.vlgmr.msra.gmra.mrb[32].mxu1 %vm460_vm1, %v1852_v34  ;;  %v1818_v49 = vpop.permute.xlu0 %1817  ;;  %v1854_v43 = vmul.f32 %v4829_v50, %v1820_v48 }
 0x5f2   :  { %v1853_v8 = vmul.f32 %v1818_v49, %v4832_v52 }
 0x5f4   :  { %3646 = vmatprep.mubr.msk.f32.mxu1 %vm460_vm1, %v1853_v8  ;;  %v1824_v51 = vpop.permute.xlu1 %1823 }
 0x5f5   :  { %3647 = vmatmul.mubr.msk.f32.gmra.mrb[34].mxu1 %vm460_vm1, %v1854_v43  ;;  %v1822_v53 = vpop.permute.xlu0 %1821  ;;  %v1856_v44 = vmul.f32 %v4837_v56, %v1824_v51 }
 0x5f6   :  { %v1855_v46 = vmul.f32 %v1822_v53, %v4840_v59 }
 0x5f8   :  { %3649 = vmatprep.mubr.msk.f32.mxu1 %vm460_vm1, %v1855_v46 }
 0x5f9   :  { %3650 = vmatmul.mubr.msk.f32.gmra.mrb[36].mxu1 %vm460_vm1, %v1856_v44 }
 0x6b0   :  { %v3630_v54 = vpop.f32.mrb[32].mxu0 }
 0x6b1   :  { %v1975_v55 = vpop.f32.mrb[33].mxu0  ;;  %v2059_v52 = vsel %vm460_vm1, %v3630_v54, 0.0 }
 0x6b2   :  { %2060 = vadd.xlane.f32.xlu1 %v2059_v52  ;;  %v2056_v50 = vsel %vm460_vm1, %v1975_v55, 0.0 }
 0x6b3   :  { %2057 = vadd.xlane.f32.xlu0 %v2056_v50 }
 0x6b4   :  { %v4885_v57 = vpop.f32.mrb[34].mxu0 }
 0x6b5   :  { %v1985_v58 = vpop.f32.mrb[35].mxu0  ;;  %v2065_v10 = vsel %vm460_vm1, %v4885_v57, 0.0 }
 0x6b6   :  { %v2062_v60 = vsel %vm460_vm1, %v1985_v58, 0.0 }
 0x6b7   :  { %2063 = vadd.xlane.f32.xlu0 %v2062_v60 }
 0x6b8   :  { %v4888_v59 = vpop.f32.mrb[36].mxu0 }
 0x6b9   :  { %v1995_v56 = vpop.f32.mrb[37].mxu0  ;;  %v2071_v62 = vsel %vm460_vm1, %v4888_v59, 0.0 }
 0x6ba   :  { %v2068_v61 = vsel %vm460_vm1, %v1995_v56, 0.0 }
 0x6bb   :  { %2069 = vadd.xlane.f32.xlu1 %v2068_v61  ;;  %2066 = vadd.xlane.f32.xlu0 %v2065_v10 }
 0x6bc   :  { %v4893_v11 = vpop.f32.mrb[38].mxu0 }
 0x6bd   :  { %v2005_v37 = vpop.f32.mrb[39].mxu0  ;;  %v2077_v16 = vsel %vm460_vm1, %v4893_v11, 0.0 }
 0x6be   :  { %v2074_v6 = vsel %vm460_vm1, %v2005_v37, 0.0 }
 0x6bf   :  { %2075 = vadd.xlane.f32.xlu1 %v2074_v6  ;;  %2072 = vadd.xlane.f32.xlu0 %v2071_v62 }
 0x6c0   :  { %v4898_v12 = vpop.f32.mrb[40].mxu0 }
 0x6c1   :  { %v4900_v13 = vpop.f32.mrb[41].mxu0  ;;  %v2083_v35 = vsel %vm460_vm1, %v4898_v12, 0.0 }
 0x6c2   :  { %v2080_v15 = vsel %vm460_vm1, %v4900_v13, 0.0 }
 0x6c3   :  { %2081 = vadd.xlane.f32.xlu1 %v2080_v15  ;;  %2078 = vadd.xlane.f32.xlu0 %v2077_v16 }
 0x6c4   :  { %v4906_v21 = vpop.f32.mrb[32].mxu1 }
 0x6c5   :  { %v4908_v22 = vpop.f32.mrb[33].mxu1  ;;  %v2089_v14 = vsel %vm460_vm1, %v4906_v21, 0.0 }
 0x6c6   :  { %v2086_v32 = vsel %vm460_vm1, %v4908_v22, 0.0 }
 0x6c7   :  { %2087 = vadd.xlane.f32.xlu1 %v2086_v32  ;;  %2084 = vadd.xlane.f32.xlu0 %v2083_v35 }
 0x6c8   :  { %v4914_v36 = vpop.f32.mrb[34].mxu1 }
 0x6c9   :  { %v4916_v39 = vpop.f32.mrb[35].mxu1  ;;  %v2095_v9 = vsel %vm460_vm1, %v4914_v36, 0.0 }
 0x6ca   :  { %v2092_v5 = vsel %vm460_vm1, %v4916_v39, 0.0 }
 0x6cb   :  { %2093 = vadd.xlane.f32.xlu1 %v2092_v5  ;;  %2090 = vadd.xlane.f32.xlu0 %v2089_v14 }
 0x6cc   :  { %v4922_v7 = vpop.f32.mrb[36].mxu1 }
 0x6cd   :  { %v4924_v42 = vpop.f32.mrb[37].mxu1  ;;  %v2101_v0 = vsel %vm460_vm1, %v4922_v7, 0.0 }
 0x6ce   :  { %v2098_v63 = vsel %vm460_vm1, %v4924_v42, 0.0 }
 0x6cf   :  { %2096 = vadd.xlane.f32.xlu0 %v2095_v9  ;;  %2099 = vadd.xlane.f32.xlu1 %v2098_v63 }
 0x6d3   :  { %2102 = vadd.xlane.f32.xlu0 %v2101_v0 }
 0x73f   :  { %v2061_v40 = vpop.xlane.xlu1 %2060 }
 0x740   :  { %v2106_v41 = vmul.f32 0.03125, %v2061_v40  ;;  %v2058_v28 = vpop.xlane.xlu0 %2057 }
 0x741   :  { %v2105_v2 = vmul.f32 0.03125, %v2058_v28 }
 0x742   :  { %v4932_v45 = vsub.f32 %v3630_v54, %v2106_v41 }
 0x743   :  { %v4934_v47 = vsub.f32 %v1975_v55, %v2105_v2 }
 0x744   :  { %v2064_v38 = vpop.xlane.xlu0 %2063  ;;  %v2138_v34 = vmul.f32 %v4932_v45, %v4932_v45 }
 0x745   :  { %v2107_v48 = vmul.f32 0.03125, %v2064_v38  ;;  %v2137_v49 = vmul.f32 %v4934_v47, %v4934_v47 }
 0x746   :  { %v2156_v8 = vsel %vm460_vm1, %v2138_v34, 0.0 }
 0x747   :  { %v4941_v43 = vsub.f32 %v1985_v58, %v2107_v48  ;;  %2157 = vadd.xlane.f32.xlu0 %v2156_v8  ;;  %v2153_v51 = vsel %vm460_vm1, %v2137_v49, 0.0 }
 0x748   :  { %v2070_v53 = vpop.xlane.xlu1 %2069  ;;  %2154 = vadd.xlane.f32.xlu1 %v2153_v51  ;;  %v2067_v46 = vpop.xlane.xlu0 %2066 }
 0x749   :  { %v2109_v44 = vmul.f32 0.03125, %v2070_v53  ;;  %v2108_v54 = vmul.f32 0.03125, %v2067_v46  ;;  %v2139_v55 = vmul.f32 %v4941_v43, %v4941_v43 }
 0x74b   :  { %v4946_v52 = vsub.f32 %v1995_v56, %v2109_v44  ;;  %v4949_v50 = vsub.f32 %v4885_v57, %v2108_v54  ;;  %v2159_v60 = vsel %vm460_vm1, %v2139_v55, 0.0 }
 0x74c   :  { %v2076_v58 = vpop.xlane.xlu1 %2075  ;;  %2160 = vadd.xlane.f32.xlu1 %v2159_v60  ;;  %v2073_v61 = vpop.xlane.xlu0 %2072 }
 0x74d   :  { %v2111_v10 = vmul.f32 0.03125, %v2076_v58  ;;  %v2110_v6 = vmul.f32 0.03125, %v2073_v61  ;;  %v2141_v62 = vmul.f32 %v4946_v52, %v4946_v52  ;;  %v2140_v15 = vmul.f32 %v4949_v50, %v4949_v50 }
 0x74f   :  { %v4956_v16 = vsub.f32 %v2005_v37, %v2111_v10  ;;  %v4959_v56 = vsub.f32 %v4888_v59, %v2110_v6  ;;  %v2165_v57 = vsel %vm460_vm1, %v2141_v62, 0.0  ;;  %v2162_v32 = vsel %vm460_vm1, %v2140_v15, 0.0 }
 0x750   :  { %v2082_v35 = vpop.xlane.xlu1 %2081  ;;  %2166 = vadd.xlane.f32.xlu1 %v2165_v57  ;;  %2163 = vadd.xlane.f32.xlu0 %v2162_v32  ;;  %v2079_v5 = vpop.xlane.xlu0 %2078 }
 0x751   :  { %v2113_v14 = vmul.f32 0.03125, %v2082_v35  ;;  %v2112_v9 = vmul.f32 0.03125, %v2079_v5  ;;  %v2143_v63 = vmul.f32 %v4956_v16, %v4956_v16  ;;  %v2142_v37 = vmul.f32 %v4959_v56, %v4959_v56 }
 0x753   :  { %v4968_v0 = vsub.f32 %v4900_v13, %v2113_v14  ;;  %v4971_v59 = vsub.f32 %v4893_v11, %v2112_v9  ;;  %v2171_v40 = vsel %vm460_vm1, %v2143_v63, 0.0  ;;  %v2168_v41 = vsel %vm460_vm1, %v2142_v37, 0.0 }
 0x754   :  { %v2088_v28 = vpop.xlane.xlu1 %2087  ;;  %2172 = vadd.xlane.f32.xlu1 %v2171_v40  ;;  %2169 = vadd.xlane.f32.xlu0 %v2168_v41  ;;  %v2085_v2 = vpop.xlane.xlu0 %2084 }
 0x755   :  { %v2115_v38 = vmul.f32 0.03125, %v2088_v28  ;;  %v2114_v34 = vmul.f32 0.03125, %v2085_v2  ;;  %v2145_v48 = vmul.f32 %v4968_v0, %v4968_v0  ;;  %v2144_v13 = vmul.f32 %v4971_v59, %v4971_v59 }
 0x757   :  { %v4980_v49 = vsub.f32 %v4908_v22, %v2115_v38  ;;  %v4983_v11 = vsub.f32 %v4898_v12, %v2114_v34  ;;  %v2177_v8 = vsel %vm460_vm1, %v2145_v48, 0.0  ;;  %v2174_v51 = vsel %vm460_vm1, %v2144_v13, 0.0  ;;  %v2311_v34 = vld [vmem:[%s5441_s13 + $0x10] sm:$0xff] }
 0x758   :  { %v2094_v53 = vpop.xlane.xlu1 %2093  ;;  %2178 = vadd.xlane.f32.xlu1 %v2177_v8  ;;  %2175 = vadd.xlane.f32.xlu0 %v2174_v51  ;;  %v2091_v46 = vpop.xlane.xlu0 %2090 }
 0x759   :  { %v2117_v44 = vmul.f32 0.03125, %v2094_v53  ;;  %v2116_v54 = vmul.f32 0.03125, %v2091_v46  ;;  %v2147_v55 = vmul.f32 %v4980_v49, %v4980_v49  ;;  %v2146_v22 = vmul.f32 %v4983_v11, %v4983_v11 }
 0x75b   :  { %v4992_v60 = vsub.f32 %v4916_v39, %v2117_v44  ;;  %v4995_v12 = vsub.f32 %v4906_v21, %v2116_v54  ;;  %v2183_v58 = vsel %vm460_vm1, %v2147_v55, 0.0  ;;  %v2180_v61 = vsel %vm460_vm1, %v2146_v22, 0.0 }
 0x75c   :  { %v2100_v10 = vpop.xlane.xlu1 %2099  ;;  %2184 = vadd.xlane.f32.xlu1 %v2183_v58  ;;  %2181 = vadd.xlane.f32.xlu0 %v2180_v61  ;;  %v2097_v6 = vpop.xlane.xlu0 %2096 }
 0x75d   :  { %v2119_v62 = vmul.f32 0.03125, %v2100_v10  ;;  %v2118_v15 = vmul.f32 0.03125, %v2097_v6  ;;  %v2149_v57 = vmul.f32 %v4992_v60, %v4992_v60  ;;  %v2148_v39 = vmul.f32 %v4995_v12, %v4995_v12 }
 0x75f   :  { %v5004_v32 = vsub.f32 %v4924_v42, %v2119_v62  ;;  %v5007_v21 = vsub.f32 %v4914_v36, %v2118_v15  ;;  %v2189_v35 = vsel %vm460_vm1, %v2149_v57, 0.0  ;;  %v2186_v5 = vsel %vm460_vm1, %v2148_v39, 0.0  ;;  %v2309_v42 = vld [vmem:[%s5441_s13] sm:$0xff]  ;;  %v2310_v36 = vld [vmem:[%s5441_s13 + $0x8] sm:$0xff] }
 0x760   :  { %2190 = vadd.xlane.f32.xlu1 %v2189_v35  ;;  %2187 = vadd.xlane.f32.xlu0 %v2186_v5  ;;  %v2103_v14 = vpop.xlane.xlu0 %2102  ;;  %v3788_v2 = vpack.c.bf16 %v2310_v36, %v2309_v42 }
 0x761   :  { %v2120_v9 = vmul.f32 0.03125, %v2103_v14  ;;  %v2151_v63 = vmul.f32 %v5004_v32, %v5004_v32  ;;  %v2150_v37 = vmul.f32 %v5007_v21, %v5007_v21 }
 0x762   :  { %3789 = vmatprep.subr.bf16.mxu1 %v3788_v2 }
 0x763   :  { %v5022_v40 = vsub.f32 %v4922_v7, %v2120_v9  ;;  %v2195_v41 = vsel %vm460_vm1, %v2151_v63, 0.0  ;;  %v2192_v28 = vsel %vm460_vm1, %v2150_v37, 0.0  ;;  %3791 = vmatpush3.bf16.msra.mxu1 %v3788_v2  ;;  %v2312_v7 = vld [vmem:[%s5441_s13 + $0x18] sm:$0xff]  ;;  %v5035_v63 = vld [vmem:[#allocation13] ss:$0 sm:$0xff] }
 0x764   :  { %2196 = vadd.xlane.f32.xlu1 %v2195_v41  ;;  %2193 = vadd.xlane.f32.xlu0 %v2192_v28  ;;  %v3792_v13 = vpack.c.bf16 %v2312_v7, %v2311_v34  ;;  %v5039_v34 = vld [vmem:[#allocation14] ss:$0 sm:$0xff] }
 0x765   :  { %v2152_v38 = vmul.f32 %v5022_v40, %v5022_v40 }
 0x766   :  { %3793 = vmatprep.subr.bf16.mxu1 %v3792_v13 }
 0x767   :  { %v2198_v48 = vsel %vm460_vm1, %v2152_v38, 0.0  ;;  %3795 = vmatpush3.bf16.msra.mxu1 %v3792_v13 }
 0x768   :  { %2199 = vadd.xlane.f32.xlu0 %v2198_v48 }
 0x7d4   :  { %v2158_v8 = vpop.xlane.xlu0 %2157 }
 0x7d5   :  { %v2202_v51 = vmul.f32 0.03125, %v2158_v8  ;;  %v2155_v53 = vpop.xlane.xlu1 %2154 }
 0x7d6   :  { %v2201_v46 = vmul.f32 0.03125, %v2155_v53 }
 0x7d7   :  { %v2218_v44 = vadd.f32 1e-05, %v2202_v51 }
 0x7d8   :  { %v2217_v54 = vadd.f32 1e-05, %v2201_v46 }
 0x7d9   :  { %3950 = vrsqrt.f32 %v2218_v44  ;;  %v2161_v55 = vpop.xlane.xlu1 %2160 }
 0x7da   :  { %3952 = vrsqrt.f32 %v2217_v54  ;;  %v2203_v22 = vmul.f32 0.03125, %v2161_v55 }
 0x7dc   :  { %v2219_v58 = vadd.f32 1e-05, %v2203_v22 }
 0x7dd   :  { %v2167_v61 = vpop.xlane.xlu1 %2166  ;;  %v2164_v10 = vpop.xlane.xlu0 %2163 }
 0x7de   :  { %3954 = vrsqrt.f32 %v2219_v58  ;;  %v2205_v6 = vmul.f32 0.03125, %v2167_v61  ;;  %v2204_v62 = vmul.f32 0.03125, %v2164_v10 }
 0x7e0   :  { %v2221_v15 = vadd.f32 1e-05, %v2205_v6  ;;  %v2220_v57 = vadd.f32 1e-05, %v2204_v62 }
 0x7e1   :  { %v2173_v39 = vpop.xlane.xlu1 %2172  ;;  %v2170_v35 = vpop.xlane.xlu0 %2169 }
 0x7e2   :  { %3956 = vrsqrt.f32 %v2221_v15  ;;  %v2207_v5 = vmul.f32 0.03125, %v2173_v39  ;;  %v2206_v14 = vmul.f32 0.03125, %v2170_v35 }
 0x7e3   :  { %v3951_v9 = vpop.eup %3950  ;;  %3958 = vrsqrt.f32 %v2220_v57 }
 0x7e4   :  { %v3953_v37 = vpop.eup %3952  ;;  %v2250_v42 = vmul.f32 %v3951_v9, %v4932_v45  ;;  %v2223_v36 = vadd.f32 1e-05, %v2207_v5  ;;  %v2222_v41 = vadd.f32 1e-05, %v2206_v14 }
 0x7e5   :  { %v2179_v28 = vpop.xlane.xlu1 %2178  ;;  %v2176_v2 = vpop.xlane.xlu0 %2175  ;;  %v2249_v38 = vmul.f32 %v3953_v37, %v4934_v47 }
 0x7e6   :  { %v2272_v7 = vmul.f32 %v5035_v63, %v2250_v42  ;;  %3960 = vrsqrt.f32 %v2223_v36  ;;  %v2209_v48 = vmul.f32 0.03125, %v2179_v28  ;;  %v2208_v13 = vmul.f32 0.03125, %v2176_v2 }
 0x7e7   :  { %3962 = vrsqrt.f32 %v2222_v41  ;;  %v2271_v8 = vmul.f32 %v5035_v63, %v2249_v38 }
 0x7e8   :  { %v3955_v51 = vpop.eup %3954  ;;  %v2225_v53 = vadd.f32 1e-05, %v2209_v48  ;;  %v2224_v46 = vadd.f32 1e-05, %v2208_v13  ;;  %v2294_v47 = vadd.f32 %v5039_v34, %v2272_v7 }
 0x7e9   :  { %v2185_v45 = vpop.xlane.xlu1 %2184  ;;  %v2182_v44 = vpop.xlane.xlu0 %2181  ;;  %v2293_v54 = vadd.f32 %v5039_v34, %v2271_v8  ;;  %v2251_v55 = vmul.f32 %v3955_v51, %v4941_v43 }
 0x7ea   :  { %3964 = vrsqrt.f32 %v2225_v53  ;;  %v2211_v22 = vmul.f32 0.03125, %v2185_v45  ;;  %v2210_v58 = vmul.f32 0.03125, %v2182_v44 }
 0x7eb   :  { %3966 = vrsqrt.f32 %v2224_v46  ;;  %3660 = vmatprep.mubr.msk.f32.mxu1 %vm460_vm1, %v2293_v54  ;;  %v2273_v61 = vmul.f32 %v5035_v63, %v2251_v55 }
 0x7ec   :  { %v3957_v10 = vpop.eup %3956  ;;  %v2227_v6 = vadd.f32 1e-05, %v2211_v22  ;;  %v2226_v62 = vadd.f32 1e-05, %v2210_v58  ;;  %3661 = vmatmul.mubr.msk.f32.vlgmr.msra.gmra.mrb[38].mxu1 %vm460_vm1, %v2294_v47 }
 0x7ed   :  { %v3959_v15 = vpop.eup %3958  ;;  %v2191_v57 = vpop.xlane.xlu1 %2190  ;;  %v2295_v43 = vadd.f32 %v5039_v34, %v2273_v61  ;;  %v2253_v35 = vmul.f32 %v3957_v10, %v4946_v52 }
 0x7ee   :  { %v2188_v39 = vpop.xlane.xlu0 %2187  ;;  %3968 = vrsqrt.f32 %v2227_v6  ;;  %v2213_v5 = vmul.f32 0.03125, %v2191_v57  ;;  %v2252_v9 = vmul.f32 %v3959_v15, %v4949_v50 }
 0x7ef   :  { %v2212_v14 = vmul.f32 0.03125, %v2188_v39  ;;  %3970 = vrsqrt.f32 %v2226_v62  ;;  %3663 = vmatprep.mubr.msk.f32.mxu1 %vm460_vm1, %v2295_v43  ;;  %v2275_v37 = vmul.f32 %v5035_v63, %v2253_v35 }
 0x7f0   :  { %v3961_v42 = vpop.eup %3960  ;;  %v2229_v36 = vadd.f32 1e-05, %v2213_v5  ;;  %v2274_v28 = vmul.f32 %v5035_v63, %v2252_v9 }
 0x7f1   :  { %v2228_v41 = vadd.f32 1e-05, %v2212_v14  ;;  %v3963_v2 = vpop.eup %3962  ;;  %v2197_v38 = vpop.xlane.xlu1 %2196  ;;  %v2297_v52 = vadd.f32 %v5039_v34, %v2275_v37  ;;  %v2255_v48 = vmul.f32 %v3961_v42, %v4956_v16 }
 0x7f2   :  { %v2194_v7 = vpop.xlane.xlu0 %2193  ;;  %3972 = vrsqrt.f32 %v2229_v36  ;;  %v2215_v13 = vmul.f32 0.03125, %v2197_v38  ;;  %v2296_v8 = vadd.f32 %v5039_v34, %v2274_v28  ;;  %v2254_v51 = vmul.f32 %v3963_v2, %v4959_v56 }
 0x7f3   :  { %v2214_v50 = vmul.f32 0.03125, %v2194_v7  ;;  %3974 = vrsqrt.f32 %v2228_v41  ;;  %v2277_v53 = vmul.f32 %v5035_v63, %v2255_v48 }
 0x7f4   :  { %v3965_v46 = vpop.eup %3964  ;;  %v2231_v45 = vadd.f32 1e-05, %v2215_v13  ;;  %3664 = vmatmul.mubr.msk.f32.gmra.mrb[40].mxu1 %vm460_vm1, %v2296_v8  ;;  %v2276_v16 = vmul.f32 %v5035_v63, %v2254_v51 }
 0x7f5   :  { %v2230_v44 = vadd.f32 1e-05, %v2214_v50  ;;  %v3967_v54 = vpop.eup %3966  ;;  %3666 = vmatprep.mubr.msk.f32.mxu1 %vm460_vm1, %v2297_v52  ;;  %v2257_v47 = vmul.f32 %v3965_v46, %v4968_v0  ;;  %v2299_v58 = vadd.f32 %v5039_v34, %v2277_v53 }
 0x7f6   :  { %v2200_v55 = vpop.xlane.xlu0 %2199  ;;  %3976 = vrsqrt.f32 %v2231_v45  ;;  %v2256_v56 = vmul.f32 %v3967_v54, %v4971_v59  ;;  %v2298_v61 = vadd.f32 %v5039_v34, %v2276_v16 }
 0x7f7   :  { %v2216_v22 = vmul.f32 0.03125, %v2200_v55  ;;  %3978 = vrsqrt.f32 %v2230_v44  ;;  %v2279_v10 = vmul.f32 %v5035_v63, %v2257_v47 }
 0x7f8   :  { %v3969_v6 = vpop.eup %3968  ;;  %v2278_v15 = vmul.f32 %v5035_v63, %v2256_v56  ;;  %3667 = vmatmul.mubr.msk.f32.gmra.mrb[42].mxu1 %vm460_vm1, %v2298_v61  ;;  %v2602_v56 = vld [vmem:[%s5442_s14] sm:$0xff]  ;;  %v2603_v61 = vld [vmem:[%s5442_s14 + $0x8] sm:$0xff] }
 0x7f9   :  { %v2232_v62 = vadd.f32 1e-05, %v2216_v22  ;;  %v3971_v57 = vpop.eup %3970  ;;  %v2259_v0 = vmul.f32 %v3969_v6, %v4980_v49  ;;  %3669 = vmatprep.mubr.msk.f32.mxu1 %vm460_vm1, %v2299_v58  ;;  %v2301_v59 = vadd.f32 %v5039_v34, %v2279_v10  ;;  %v2604_v10 = vld [vmem:[%s5442_s14 + $0x10] sm:$0xff] }
 0x7fa   :  { %v2300_v39 = vadd.f32 %v5039_v34, %v2278_v15  ;;  %v2258_v43 = vmul.f32 %v3971_v57, %v4983_v11  ;;  %v2605_v15 = vld [vmem:[%s5442_s14 + $0x18] sm:$0xff] }
 0x7fb   :  { %3980 = vrsqrt.f32 %v2232_v62  ;;  %v2281_v35 = vmul.f32 %v5035_v63, %v2259_v0  ;;  %v3796_v62 = vpack.c.bf16 %v2603_v61, %v2602_v56  ;;  %v3800_v57 = vpack.c.bf16 %v2605_v15, %v2604_v10  ;;  %v2606_v0 = vld [vmem:[%s5442_s14 + $0x20] sm:$0xff] }
 0x7fc   :  { %v3973_v5 = vpop.eup %3972  ;;  %v2280_v14 = vmul.f32 %v5035_v63, %v2258_v43  ;;  %3670 = vmatmul.mubr.msk.f32.gmra.mrb[44].mxu1 %vm460_vm1, %v2300_v39  ;;  %v2607_v39 = vld [vmem:[%s5442_s14 + $0x28] sm:$0xff] }
 0x7fd   :  { %v3975_v9 = vpop.eup %3974  ;;  %v2261_v37 = vmul.f32 %v3973_v5, %v4992_v60  ;;  %3672 = vmatprep.mubr.msk.f32.mxu1 %vm460_vm1, %v2301_v59  ;;  %v2303_v42 = vadd.f32 %v5039_v34, %v2281_v35  ;;  %3797 = vmatprep.subr.bf16.mxu0 %v3796_v62  ;;  %v3804_v35 = vpack.c.bf16 %v2607_v39, %v2606_v0  ;;  %v2608_v5 = vld [vmem:[%s5442_s14 + $0x30] sm:$0xff] }
 0x7fe   :  { %v2302_v49 = vadd.f32 %v5039_v34, %v2280_v14  ;;  %v2260_v36 = vmul.f32 %v3975_v9, %v4995_v12  ;;  %3799 = vmatpush3.bf16.msra.mxu0 %v3796_v62  ;;  %v2609_v14 = vld [vmem:[%s5442_s14 + $0x38] sm:$0xff] }
 0x7ff   :  { %v2283_v11 = vmul.f32 %v5035_v63, %v2261_v37  ;;  %3801 = vmatprep.subr.bf16.mxu0 %v3800_v57  ;;  %v3808_v9 = vpack.c.bf16 %v2609_v14, %v2608_v5 }
 0x800   :  { %v3977_v41 = vpop.eup %3976  ;;  %v2282_v28 = vmul.f32 %v5035_v63, %v2260_v36  ;;  %3673 = vmatmul.mubr.msk.f32.gmra.mrb[46].mxu1 %vm460_vm1, %v2302_v49 }
 0x801   :  { %v3979_v2 = vpop.eup %3978  ;;  %v2263_v38 = vmul.f32 %v3977_v41, %v5004_v32  ;;  %3675 = vmatprep.mubr.msk.f32.mxu1 %vm460_vm1, %v2303_v42  ;;  %v2305_v7 = vadd.f32 %v5039_v34, %v2283_v11 }
 0x802   :  { %v2304_v60 = vadd.f32 %v5039_v34, %v2282_v28  ;;  %v2262_v52 = vmul.f32 %v3979_v2, %v5007_v21  ;;  %3803 = vmatpush3.bf16.msra.mxu0 %v3800_v57 }
 0x803   :  { %v2285_v12 = vmul.f32 %v5035_v63, %v2263_v38  ;;  %3805 = vmatprep.subr.bf16.mxu0 %v3804_v35 }
 0x804   :  { %v2284_v13 = vmul.f32 %v5035_v63, %v2262_v52  ;;  %3676 = vmatmul.mubr.msk.f32.gmra.mrb[48].mxu1 %vm460_vm1, %v2304_v60 }
 0x805   :  { %v3981_v48 = vpop.eup %3980  ;;  %3678 = vmatprep.mubr.msk.f32.mxu1 %vm460_vm1, %v2305_v7  ;;  %v2307_v8 = vadd.f32 %v5039_v34, %v2285_v12 }
 0x806   :  { %v2264_v50 = vmul.f32 %v3981_v48, %v5022_v40  ;;  %v2306_v32 = vadd.f32 %v5039_v34, %v2284_v13  ;;  %3807 = vmatpush3.bf16.msra.mxu0 %v3804_v35 }
 0x807   :  { %3809 = vmatprep.subr.bf16.mxu0 %v3808_v9 }
 0x808   :  { %v2286_v51 = vmul.f32 %v5035_v63, %v2264_v50  ;;  %3679 = vmatmul.mubr.msk.f32.gmra.mrb[50].mxu1 %vm460_vm1, %v2306_v32 }
 0x809   :  { %3681 = vmatprep.mubr.msk.f32.mxu1 %vm460_vm1, %v2307_v8 }
 0x80a   :  { %v2308_v21 = vadd.f32 %v5039_v34, %v2286_v51  ;;  %3811 = vmatpush3.bf16.msra.mxu0 %v3808_v9 }
 0x80c   :  { %3682 = vmatmul.mubr.msk.f32.gmra.mrb[52].mxu1 %vm460_vm1, %v2308_v21 }
 0x8bf   :  { %v3662_v53 = vpop.f32.mrb[38].mxu1 }
 0x8c0   :  { %2524 = vrot.lane.b32.xlu0 %v3662_v53, %s4242_s4  ;;  %v2427_v40 = vpop.f32.mrb[39].mxu1 }
 0x8c1   :  { %2522 = vrot.lane.b32.xlu1 %v2427_v40, %s4242_s4 }
 0x8c7   :  { %v3665_v46 = vpop.f32.mrb[40].mxu1 }
 0x8c8   :  { %v2437_v45 = vpop.f32.mrb[41].mxu1 }
 0x8c9   :  { %2526 = vrot.lane.b32.xlu1 %v2437_v45, %s4242_s4 }
 0x8cb   :  { %v3668_v44 = vpop.f32.mrb[42].mxu1 }
 0x8cc   :  { %v2447_v63 = vpop.f32.mrb[43].mxu1 }
 0x8cd   :  { %2528 = vrot.lane.b32.xlu1 %v3665_v46, %s4242_s4  ;;  %2530 = vrot.lane.b32.xlu0 %v2447_v63, %s4242_s4 }
 0x8cf   :  { %v3671_v34 = vpop.f32.mrb[44].mxu1 }
 0x8d0   :  { %v2457_v54 = vpop.f32.mrb[45].mxu1 }
 0x8d1   :  { %2532 = vrot.lane.b32.xlu1 %v3668_v44, %s4242_s4  ;;  %2534 = vrot.lane.b32.xlu0 %v2457_v54, %s4242_s4 }
 0x8d3   :  { %v3674_v55 = vpop.f32.mrb[46].mxu1 }
 0x8d4   :  { %v2467_v16 = vpop.f32.mrb[47].mxu1 }
 0x8d5   :  { %2536 = vrot.lane.b32.xlu1 %v3671_v34, %s4242_s4  ;;  %2538 = vrot.lane.b32.xlu0 %v2467_v16, %s4242_s4 }
 0x8d7   :  { %v3677_v47 = vpop.f32.mrb[48].mxu1 }
 0x8d8   :  { %v2477_v22 = vpop.f32.mrb[49].mxu1 }
 0x8d9   :  { %2540 = vrot.lane.b32.xlu1 %v3674_v55, %s4242_s4  ;;  %2542 = vrot.lane.b32.xlu0 %v2477_v22, %s4242_s4 }
 0x8db   :  { %v3680_v58 = vpop.f32.mrb[50].mxu1 }
 0x8dc   :  { %v2487_v6 = vpop.f32.mrb[51].mxu1 }
 0x8dd   :  { %2544 = vrot.lane.b32.xlu1 %v3677_v47, %s4242_s4  ;;  %2546 = vrot.lane.b32.xlu0 %v2487_v6, %s4242_s4 }
 0x8df   :  { %v3683_v59 = vpop.f32.mrb[52].mxu1 }
 0x8e0   :  { %v2497_v43 = vpop.f32.mrb[53].mxu1 }
 0x8e1   :  { %2548 = vrot.lane.b32.xlu1 %v3680_v58, %s4242_s4  ;;  %2550 = vrot.lane.b32.xlu0 %v2497_v43, %s4242_s4 }
 0x8e5   :  { %2552 = vrot.lane.b32.xlu1 %v3683_v59, %s4242_s4 }
 0x932   :  { %v2525_v37 = vpop.permute.xlu0 %2524 }
 0x933   :  { %v2571_v49 = vadd.f32 %v4647_v17, %v2525_v37  ;;  %v2523_v42 = vpop.permute.xlu1 %2522 }
 0x934   :  { %v2570_v36 = vadd.f32 %v2523_v42, %v4649_v18 }
 0x935   :  { %v2587_v11 = vmax.f32 %v2571_v49, 0.0 }
 0x936   :  { %v2586_v41 = vmax.f32 %v2570_v36, 0.0 }
 0x937   :  { %2628 = vrot.lane.b32.xlu1 %v2587_v11, %s4243_s28 }
 0x938   :  { %2626 = vrot.lane.b32.xlu0 %v2586_v41, %s4243_s28 }
 0x93b   :  { %v2527_v28 = vpop.permute.xlu1 %2526 }
 0x93c   :  { %v2572_v2 = vadd.f32 %v2527_v28, %v4654_v20 }
 0x93e   :  { %v2588_v38 = vmax.f32 %v2572_v2, 0.0 }
 0x93f   :  { %v2529_v60 = vpop.permute.xlu1 %2528  ;;  %v2531_v52 = vpop.permute.xlu0 %2530 }
 0x940   :  { %v2573_v7 = vadd.f32 %v4652_v19, %v2529_v60  ;;  %2630 = vrot.lane.b32.xlu0 %v2588_v38, %s4243_s28  ;;  %v2574_v17 = vadd.f32 %v2531_v52, %v4661_v1 }
 0x942   :  { %v2589_v12 = vmax.f32 %v2573_v7, 0.0  ;;  %v2590_v18 = vmax.f32 %v2574_v17, 0.0 }
 0x943   :  { %v2533_v48 = vpop.permute.xlu1 %2532  ;;  %v2535_v50 = vpop.permute.xlu0 %2534 }
 0x944   :  { %v2575_v13 = vadd.f32 %v4658_v23, %v2533_v48  ;;  %2632 = vrot.lane.b32.xlu1 %v2589_v12, %s4243_s28  ;;  %v2576_v32 = vadd.f32 %v2535_v50, %v4665_v25  ;;  %2634 = vrot.lane.b32.xlu0 %v2590_v18, %s4243_s28 }
 0x946   :  { %v2591_v20 = vmax.f32 %v2575_v13, 0.0  ;;  %v2592_v8 = vmax.f32 %v2576_v32, 0.0 }
 0x947   :  { %v2537_v19 = vpop.permute.xlu1 %2536  ;;  %v2539_v21 = vpop.permute.xlu0 %2538 }
 0x948   :  { %v2577_v51 = vadd.f32 %v4663_v24, %v2537_v19  ;;  %2636 = vrot.lane.b32.xlu1 %v2591_v20, %s4243_s28  ;;  %v2578_v1 = vadd.f32 %v2539_v21, %v4669_v27  ;;  %2638 = vrot.lane.b32.xlu0 %v2592_v8, %s4243_s28 }
 0x94a   :  { %v2593_v23 = vmax.f32 %v2577_v51, 0.0  ;;  %v2594_v53 = vmax.f32 %v2578_v1, 0.0 }
 0x94b   :  { %v2541_v40 = vpop.permute.xlu1 %2540  ;;  %v2543_v25 = vpop.permute.xlu0 %2542 }
 0x94c   :  { %v2579_v46 = vadd.f32 %v4667_v26, %v2541_v40  ;;  %2640 = vrot.lane.b32.xlu1 %v2593_v23, %s4243_s28  ;;  %v2580_v45 = vadd.f32 %v2543_v25, %v4674_v29  ;;  %2642 = vrot.lane.b32.xlu0 %v2594_v53, %s4243_s28 }
 0x94e   :  { %v2595_v24 = vmax.f32 %v2579_v46, 0.0  ;;  %v2596_v44 = vmax.f32 %v2580_v45, 0.0 }
 0x94f   :  { %v2545_v63 = vpop.permute.xlu1 %2544  ;;  %v2547_v27 = vpop.permute.xlu0 %2546 }
 0x950   :  { %v2581_v34 = vadd.f32 %v4672_v4, %v2545_v63  ;;  %2644 = vrot.lane.b32.xlu1 %v2595_v24, %s4243_s28  ;;  %v2582_v54 = vadd.f32 %v2547_v27, %v4678_v31  ;;  %2646 = vrot.lane.b32.xlu0 %v2596_v44, %s4243_s28 }
 0x952   :  { %v2597_v26 = vmax.f32 %v2581_v34, 0.0  ;;  %v2598_v55 = vmax.f32 %v2582_v54, 0.0 }
 0x953   :  { %v2549_v16 = vpop.permute.xlu1 %2548  ;;  %v2551_v29 = vpop.permute.xlu0 %2550 }
 0x954   :  { %v2583_v47 = vadd.f32 %v4676_v30, %v2549_v16  ;;  %2648 = vrot.lane.b32.xlu1 %v2597_v26, %s4243_s28  ;;  %v2584_v22 = vadd.f32 %v2551_v29, %v4684_v33  ;;  %2650 = vrot.lane.b32.xlu0 %v2598_v55, %s4243_s28 }
 0x956   :  { %v2599_v4 = vmax.f32 %v2583_v47, 0.0  ;;  %v2600_v58 = vmax.f32 %v2584_v22, 0.0 }
 0x957   :  { %v2553_v56 = vpop.permute.xlu1 %2552 }
 0x958   :  { %v2585_v61 = vadd.f32 %v4682_v3, %v2553_v56  ;;  %2652 = vrot.lane.b32.xlu1 %v2599_v4, %s4243_s28  ;;  %2654 = vrot.lane.b32.xlu0 %v2600_v58, %s4243_s28 }
 0x95a   :  { %v2601_v31 = vmax.f32 %v2585_v61, 0.0 }
 0x95c   :  { %2656 = vrot.lane.b32.xlu1 %v2601_v31, %s4243_s28 }
 0x9a9   :  { %v2629_v10 = vpop.permute.xlu1 %2628 }
 0x9aa   :  { %v2627_v30 = vpop.permute.xlu0 %2626 }
 0x9ab   :  { %3700 = vmatprep.mubr.msk.f32.mxu0 %vm2658_vm11, %v2627_v30 }
 0x9ac   :  { %3701 = vmatmul.mubr.msk.f32.vlgmr.msra.gmra.mrb[42].mxu0 %vm2658_vm11, %v2629_v10 }
 0x9b2   :  { %v2631_v33 = vpop.permute.xlu0 %2630 }
 0x9b3   :  { %3703 = vmatprep.mubr.msk.f32.mxu0 %vm2658_vm11, %v2631_v33 }
 0x9b6   :  { %v2633_v6 = vpop.permute.xlu1 %2632  ;;  %v2635_v62 = vpop.permute.xlu0 %2634 }
 0x9b7   :  { %3704 = vmatmul.mubr.msk.f32.gmra.mrb[44].mxu0 %vm2658_vm11, %v2633_v6 }
 0x9b8   :  { %3706 = vmatprep.mubr.msk.f32.mxu0 %vm2658_vm11, %v2635_v62 }
 0x9ba   :  { %v2637_v3 = vpop.permute.xlu1 %2636  ;;  %v2639_v15 = vpop.permute.xlu0 %2638 }
 0x9bb   :  { %3707 = vmatmul.mubr.msk.f32.gmra.mrb[46].mxu0 %vm2658_vm11, %v2637_v3 }
 0x9bc   :  { %3709 = vmatprep.mubr.msk.f32.mxu0 %vm2658_vm11, %v2639_v15 }
 0x9be   :  { %v2641_v57 = vpop.permute.xlu1 %2640  ;;  %v2643_v0 = vpop.permute.xlu0 %2642 }
 0x9bf   :  { %3710 = vmatmul.mubr.msk.f32.gmra.mrb[48].mxu0 %vm2658_vm11, %v2641_v57 }
 0x9c0   :  { %3712 = vmatprep.mubr.msk.f32.mxu0 %vm2658_vm11, %v2643_v0 }
 0x9c2   :  { %v2645_v39 = vpop.permute.xlu1 %2644  ;;  %v2647_v59 = vpop.permute.xlu0 %2646 }
 0x9c3   :  { %3713 = vmatmul.mubr.msk.f32.gmra.mrb[50].mxu0 %vm2658_vm11, %v2645_v39 }
 0x9c4   :  { %3715 = vmatprep.mubr.msk.f32.mxu0 %vm2658_vm11, %v2647_v59 }
 0x9c6   :  { %v2649_v43 = vpop.permute.xlu1 %2648  ;;  %v2651_v35 = vpop.permute.xlu0 %2650 }
 0x9c7   :  { %3716 = vmatmul.mubr.msk.f32.gmra.mrb[52].mxu0 %vm2658_vm11, %v2649_v43 }
 0x9c8   :  { %3718 = vmatprep.mubr.msk.f32.mxu0 %vm2658_vm11, %v2651_v35 }
 0x9ca   :  { %v2653_v5 = vpop.permute.xlu1 %2652  ;;  %v2655_v14 = vpop.permute.xlu0 %2654 }
 0x9cb   :  { %3719 = vmatmul.mubr.msk.f32.gmra.mrb[54].mxu0 %vm2658_vm11, %v2653_v5 }
 0x9cc   :  { %3721 = vmatprep.mubr.msk.f32.mxu0 %vm2658_vm11, %v2655_v14 }
 0x9ce   :  { %v2657_v9 = vpop.permute.xlu1 %2656 }
 0x9cf   :  { %3722 = vmatmul.mubr.msk.f32.gmra.mrb[56].mxu0 %vm2658_vm11, %v2657_v9 }
 0xa7f   :  { %v3702_v37 = vpop.f32.mrb[42].mxu0 }
 0xa80   :  { %v2757_v49 = vpop.f32.mrb[43].mxu0  ;;  %v2841_v42 = vsel %vm460_vm1, %v3702_v37, 0.0 }
 0xa81   :  { %2842 = vadd.xlane.f32.xlu0 %v2841_v42  ;;  %v2838_v36 = vsel %vm460_vm1, %v2757_v49, 0.0 }
 0xa85   :  { %2839 = vadd.xlane.f32.xlu0 %v2838_v36 }
 0xa8a   :  { %v3705_v11 = vpop.f32.mrb[44].mxu0 }
 0xa8b   :  { %v2767_v41 = vpop.f32.mrb[45].mxu0  ;;  %v2847_v28 = vsel %vm460_vm1, %v3705_v11, 0.0 }
 0xa8c   :  { %2848 = vadd.xlane.f32.xlu1 %v2847_v28  ;;  %v2844_v60 = vsel %vm460_vm1, %v2767_v41, 0.0 }
 0xa8e   :  { %v5194_v2 = vpop.f32.mrb[46].mxu0 }
 0xa8f   :  { %v5196_v38 = vpop.f32.mrb[47].mxu0  ;;  %v2853_v21 = vsel %vm460_vm1, %v5194_v2, 0.0 }
 0xa90   :  { %2845 = vadd.xlane.f32.xlu1 %v2844_v60  ;;  %v2850_v20 = vsel %vm460_vm1, %v5196_v38, 0.0 }
 0xa92   :  { %v5199_v7 = vpop.f32.mrb[48].mxu0 }
 0xa93   :  { %v5201_v52 = vpop.f32.mrb[49].mxu0  ;;  %v2859_v25 = vsel %vm460_vm1, %v5199_v7, 0.0 }
 0xa94   :  { %v2856_v40 = vsel %vm460_vm1, %v5201_v52, 0.0 }
 0xa96   :  { %v3714_v17 = vpop.f32.mrb[50].mxu0 }
 0xa97   :  { %v2797_v12 = vpop.f32.mrb[51].mxu0  ;;  %v2865_v18 = vsel %vm460_vm1, %v3714_v17, 0.0 }
 0xa98   :  { %2866 = vadd.xlane.f32.xlu0 %v2865_v18  ;;  %v2862_v48 = vsel %vm460_vm1, %v2797_v12, 0.0 }
 0xa99   :  { %2863 = vadd.xlane.f32.xlu1 %v2862_v48 }
 0xa9a   :  { %v3717_v13 = vpop.f32.mrb[52].mxu0 }
 0xa9b   :  { %v5205_v50 = vpop.f32.mrb[53].mxu0  ;;  %v2871_v32 = vsel %vm460_vm1, %v3717_v13, 0.0 }
 0xa9c   :  { %2872 = vadd.xlane.f32.xlu0 %v2871_v32  ;;  %v2868_v51 = vsel %vm460_vm1, %v5205_v50, 0.0 }
 0xa9d   :  { %2851 = vadd.xlane.f32.xlu1 %v2850_v20 }
 0xa9e   :  { %v5210_v8 = vpop.f32.mrb[54].mxu0 }
 0xa9f   :  { %v5212_v19 = vpop.f32.mrb[55].mxu0  ;;  %v2877_v53 = vsel %vm460_vm1, %v5210_v8, 0.0 }
 0xaa0   :  { %2869 = vadd.xlane.f32.xlu0 %v2868_v51  ;;  %v2874_v46 = vsel %vm460_vm1, %v5212_v19, 0.0 }
 0xaa1   :  { %2854 = vadd.xlane.f32.xlu1 %v2853_v21 }
 0xaa2   :  { %v5218_v1 = vpop.f32.mrb[56].mxu0 }
 0xaa3   :  { %v5220_v23 = vpop.f32.mrb[57].mxu0  ;;  %v2883_v24 = vsel %vm460_vm1, %v5218_v1, 0.0 }
 0xaa4   :  { %2878 = vadd.xlane.f32.xlu0 %v2877_v53  ;;  %v2880_v45 = vsel %vm460_vm1, %v5220_v23, 0.0 }
 0xaa5   :  { %2857 = vadd.xlane.f32.xlu1 %v2856_v40 }
 0xaa8   :  { %2875 = vadd.xlane.f32.xlu0 %v2874_v46 }
 0xaa9   :  { %2860 = vadd.xlane.f32.xlu1 %v2859_v25 }
 0xaac   :  { %2881 = vadd.xlane.f32.xlu0 %v2880_v45 }
 0xab0   :  { %2884 = vadd.xlane.f32.xlu0 %v2883_v24 }
 0xb0e   :  { %v2843_v44 = vpop.xlane.xlu0 %2842 }
 0xb0f   :  { %v2887_v63 = vmul.f32 0.03125, %v2843_v44 }
 0xb11   :  { %v5234_v34 = vsub.f32 %v3702_v37, %v2887_v63 }
 0xb12   :  { %v2840_v27 = vpop.xlane.xlu0 %2839 }
 0xb13   :  { %v2886_v54 = vmul.f32 0.03125, %v2840_v27  ;;  %v2919_v26 = vmul.f32 %v5234_v34, %v5234_v34 }
 0xb15   :  { %v5238_v55 = vsub.f32 %v2757_v49, %v2886_v54  ;;  %v2937_v16 = vsel %vm460_vm1, %v2919_v26, 0.0 }
 0xb16   :  { %2938 = vadd.xlane.f32.xlu1 %v2937_v16 }
 0xb17   :  { %v2918_v47 = vmul.f32 %v5238_v55, %v5238_v55 }
 0xb19   :  { %v2849_v29 = vpop.xlane.xlu1 %2848  ;;  %v2934_v22 = vsel %vm460_vm1, %v2918_v47, 0.0 }
 0xb1a   :  { %v2889_v4 = vmul.f32 0.03125, %v2849_v29  ;;  %2935 = vadd.xlane.f32.xlu1 %v2934_v22 }
 0xb1c   :  { %v5244_v58 = vsub.f32 %v3705_v11, %v2889_v4 }
 0xb1d   :  { %v2846_v56 = vpop.xlane.xlu1 %2845 }
 0xb1e   :  { %v2888_v61 = vmul.f32 0.03125, %v2846_v56  ;;  %v2921_v31 = vmul.f32 %v5244_v58, %v5244_v58 }
 0xb20   :  { %v5248_v30 = vsub.f32 %v2767_v41, %v2888_v61  ;;  %v2943_v10 = vsel %vm460_vm1, %v2921_v31, 0.0 }
 0xb21   :  { %2944 = vadd.xlane.f32.xlu1 %v2943_v10 }
 0xb22   :  { %v2920_v33 = vmul.f32 %v5248_v30, %v5248_v30 }
 0xb24   :  { %v2940_v6 = vsel %vm460_vm1, %v2920_v33, 0.0 }
 0xb25   :  { %2941 = vadd.xlane.f32.xlu1 %v2940_v6  ;;  %v2867_v62 = vpop.xlane.xlu0 %2866 }
 0xb26   :  { %v2895_v3 = vmul.f32 0.03125, %v2867_v62  ;;  %v2864_v15 = vpop.xlane.xlu1 %2863 }
 0xb27   :  { %v2894_v57 = vmul.f32 0.03125, %v2864_v15 }
 0xb28   :  { %v5254_v0 = vsub.f32 %v3714_v17, %v2895_v3 }
 0xb29   :  { %v5256_v39 = vsub.f32 %v2797_v12, %v2894_v57  ;;  %v2873_v59 = vpop.xlane.xlu0 %2872 }
 0xb2a   :  { %v2897_v43 = vmul.f32 0.03125, %v2873_v59  ;;  %v2852_v35 = vpop.xlane.xlu1 %2851  ;;  %v2927_v5 = vmul.f32 %v5254_v0, %v5254_v0 }
 0xb2b   :  { %v2926_v37 = vmul.f32 %v5256_v39, %v5256_v39  ;;  %v2890_v49 = vmul.f32 0.03125, %v2852_v35 }
 0xb2c   :  { %v5260_v14 = vsub.f32 %v3717_v13, %v2897_v43  ;;  %v2961_v9 = vsel %vm460_vm1, %v2927_v5, 0.0 }
 0xb2d   :  { %2962 = vadd.xlane.f32.xlu0 %v2961_v9  ;;  %v2870_v42 = vpop.xlane.xlu0 %2869  ;;  %v2958_v60 = vsel %vm460_vm1, %v2926_v37, 0.0  ;;  %v5272_v12 = vsub.f32 %v5196_v38, %v2890_v49 }
 0xb2e   :  { %v2896_v36 = vmul.f32 0.03125, %v2870_v42  ;;  %v2855_v11 = vpop.xlane.xlu1 %2854  ;;  %v2929_v17 = vmul.f32 %v5260_v14, %v5260_v14 }
 0xb2f   :  { %v2891_v41 = vmul.f32 0.03125, %v2855_v11  ;;  %v2922_v46 = vmul.f32 %v5272_v12, %v5272_v12 }
 0xb30   :  { %v5266_v28 = vsub.f32 %v5205_v50, %v2896_v36  ;;  %v2967_v21 = vsel %vm460_vm1, %v2929_v17, 0.0  ;;  %v5328_v17 = vld [vmem:[%s5443_s15] ss:$0 sm:$0xff] }
 0xb31   :  { %v5275_v18 = vsub.f32 %v5194_v2, %v2891_v41  ;;  %2959 = vadd.xlane.f32.xlu0 %v2958_v60  ;;  %v2879_v48 = vpop.xlane.xlu0 %2878  ;;  %v2946_v54 = vsel %vm460_vm1, %v2922_v46, 0.0 }
 0xb32   :  { %v2899_v13 = vmul.f32 0.03125, %v2879_v48  ;;  %v2858_v32 = vpop.xlane.xlu1 %2857  ;;  %v2928_v38 = vmul.f32 %v5266_v28, %v5266_v28 }
 0xb33   :  { %v2892_v20 = vmul.f32 0.03125, %v2858_v32  ;;  %v2923_v50 = vmul.f32 %v5275_v18, %v5275_v18  ;;  %v5334_v32 = vld [vmem:[%s5444_s16] ss:$0 sm:$0xff] }
 0xb34   :  { %v5280_v51 = vsub.f32 %v5210_v8, %v2899_v13  ;;  %v2964_v44 = vsel %vm460_vm1, %v2928_v38, 0.0 }
 0xb35   :  { %v5286_v53 = vsub.f32 %v5201_v52, %v2892_v20  ;;  %2968 = vadd.xlane.f32.xlu0 %v2967_v21  ;;  %v2876_v2 = vpop.xlane.xlu0 %2875  ;;  %v2949_v40 = vsel %vm460_vm1, %v2923_v50, 0.0 }
 0xb36   :  { %v2898_v25 = vmul.f32 0.03125, %v2876_v2  ;;  %v2861_v45 = vpop.xlane.xlu1 %2860  ;;  %2950 = vadd.xlane.f32.xlu1 %v2949_v40  ;;  %v2931_v52 = vmul.f32 %v5280_v51, %v5280_v51 }
 0xb37   :  { %v2893_v8 = vmul.f32 0.03125, %v2861_v45  ;;  %v2924_v26 = vmul.f32 %v5286_v53, %v5286_v53 }
 0xb38   :  { %v5292_v24 = vsub.f32 %v5212_v19, %v2898_v25  ;;  %v2973_v47 = vsel %vm460_vm1, %v2931_v52, 0.0 }
 0xb39   :  { %v5298_v63 = vsub.f32 %v5199_v7, %v2893_v8  ;;  %2965 = vadd.xlane.f32.xlu0 %v2964_v44  ;;  %v2882_v27 = vpop.xlane.xlu0 %2881  ;;  %v2952_v22 = vsel %vm460_vm1, %v2924_v26, 0.0 }
 0xb3a   :  { %v2900_v16 = vmul.f32 0.03125, %v2882_v27  ;;  %2947 = vadd.xlane.f32.xlu1 %v2946_v54  ;;  %v2930_v29 = vmul.f32 %v5292_v24, %v5292_v24 }
 0xb3b   :  { %v2925_v4 = vmul.f32 %v5298_v63, %v5298_v63 }
 0xb3c   :  { %v5304_v19 = vsub.f32 %v5220_v23, %v2900_v16  ;;  %v2970_v23 = vsel %vm460_vm1, %v2930_v29, 0.0 }
 0xb3d   :  { %2974 = vadd.xlane.f32.xlu0 %v2973_v47  ;;  %v2885_v7 = vpop.xlane.xlu0 %2884  ;;  %v2955_v10 = vsel %vm460_vm1, %v2925_v4, 0.0 }
 0xb3e   :  { %v2901_v56 = vmul.f32 0.03125, %v2885_v7  ;;  %2953 = vadd.xlane.f32.xlu1 %v2952_v22  ;;  %v2932_v31 = vmul.f32 %v5304_v19, %v5304_v19 }
 0xb40   :  { %v5313_v61 = vsub.f32 %v5218_v1, %v2901_v56  ;;  %v2976_v33 = vsel %vm460_vm1, %v2932_v31, 0.0 }
 0xb41   :  { %2971 = vadd.xlane.f32.xlu0 %v2970_v23 }
 0xb42   :  { %2956 = vadd.xlane.f32.xlu1 %v2955_v10  ;;  %v2933_v6 = vmul.f32 %v5313_v61, %v5313_v61 }
 0xb44   :  { %v2979_v62 = vsel %vm460_vm1, %v2933_v6, 0.0 }
 0xb45   :  { %2977 = vadd.xlane.f32.xlu0 %v2976_v33 }
 0xb49   :  { %2980 = vadd.xlane.f32.xlu0 %v2979_v62 }
 0xba3   :  { %v2939_v1 = vpop.xlane.xlu1 %2938 }
 0xba4   :  { %v2983_v3 = vmul.f32 0.03125, %v2939_v1 }
 0xba6   :  { %v2999_v15 = vadd.f32 1e-05, %v2983_v3 }
 0xba7   :  { %v2936_v57 = vpop.xlane.xlu1 %2935 }
 0xba8   :  { %v2982_v59 = vmul.f32 0.03125, %v2936_v57  ;;  %3982 = vrsqrt.f32 %v2999_v15 }
 0xbaa   :  { %v2998_v43 = vadd.f32 1e-05, %v2982_v59 }
 0xbac   :  { %3984 = vrsqrt.f32 %v2998_v43 }
 0xbae   :  { %v2945_v35 = vpop.xlane.xlu1 %2944 }
 0xbaf   :  { %v2985_v5 = vmul.f32 0.03125, %v2945_v35 }
 0xbb1   :  { %v3001_v9 = vadd.f32 1e-05, %v2985_v5 }
 0xbb2   :  { %v2942_v37 = vpop.xlane.xlu1 %2941  ;;  %v3983_v42 = vpop.eup %3982 }
 0xbb3   :  { %v2984_v49 = vmul.f32 0.03125, %v2942_v37  ;;  %3986 = vrsqrt.f32 %v3001_v9  ;;  %v3031_v60 = vmul.f32 %v3983_v42, %v5234_v34 }
 0xbb5   :  { %v3000_v36 = vadd.f32 1e-05, %v2984_v49 }
 0xbb6   :  { %v3985_v11 = vpop.eup %3984 }
 0xbb7   :  { %3988 = vrsqrt.f32 %v3000_v36  ;;  %v3030_v41 = vmul.f32 %v3985_v11, %v5238_v55  ;;  %v3053_v55 = vmul.f32 %v5328_v17, %v3031_v60 }
 0xbb9   :  { %v3052_v48 = vmul.f32 %v5328_v17, %v3030_v41  ;;  %v3075_v40 = vadd.f32 %v5334_v32, %v3053_v55 }
 0xbba   :  { %v2963_v13 = vpop.xlane.xlu0 %2962 }
 0xbbb   :  { %v2991_v20 = vmul.f32 0.03125, %v2963_v13  ;;  %v3074_v50 = vadd.f32 %v5334_v32, %v3052_v48 }
 0xbbd   :  { %v3007_v21 = vadd.f32 1e-05, %v2991_v20  ;;  %3090 = vxpose.xlu1.b32.start [1/8] (short) (narrow) %v3074_v50, 32  ;;  %v3987_v38 = vpop.eup %3986 }
 0xbbe   :  { %v2960_v34 = vpop.xlane.xlu0 %2959  ;;  %v3033_v44 = vmul.f32 %v3987_v38, %v5244_v58 }
 0xbbf   :  { %v2990_v2 = vmul.f32 0.03125, %v2960_v34  ;;  %3990 = vrsqrt.f32 %v3007_v21 }
 0xbc0   :  { %v3055_v22 = vmul.f32 %v5328_v17, %v3033_v44 }
 0xbc1   :  { %v3989_v46 = vpop.eup %3988  ;;  %v3006_v25 = vadd.f32 1e-05, %v2990_v2  ;;  %3091 = vxpose.xlu1.b32.cont [2/8] (short) (narrow) %v3075_v40, 32 }
 0xbc2   :  { %v2969_v45 = vpop.xlane.xlu0 %2968  ;;  %v3032_v8 = vmul.f32 %v3989_v46, %v5248_v30  ;;  %v3077_v10 = vadd.f32 %v5334_v32, %v3055_v22 }
 0xbc3   :  { %3992 = vrsqrt.f32 %v3006_v25  ;;  %v2993_v52 = vmul.f32 0.03125, %v2969_v45  ;;  %v2951_v27 = vpop.xlane.xlu1 %2950 }
 0xbc4   :  { %v2987_v54 = vmul.f32 0.03125, %v2951_v27  ;;  %v3054_v26 = vmul.f32 %v5328_v17, %v3032_v8 }
 0xbc5   :  { %v3009_v16 = vadd.f32 1e-05, %v2993_v52 }
 0xbc6   :  { %v3003_v47 = vadd.f32 1e-05, %v2987_v54  ;;  %v2966_v29 = vpop.xlane.xlu0 %2965  ;;  %v3076_v7 = vadd.f32 %v5334_v32, %v3054_v26 }
 0xbc7   :  { %v2992_v4 = vmul.f32 0.03125, %v2966_v29  ;;  %v2948_v56 = vpop.xlane.xlu1 %2947  ;;  %3994 = vrsqrt.f32 %v3009_v16 }
 0xbc8   :  { %v2986_v23 = vmul.f32 0.03125, %v2948_v56  ;;  %3092 = vxpose.xlu1.b32.cont [3/8] (short) (narrow) %v3076_v7, 32  ;;  %3996 = vrsqrt.f32 %v3003_v47 }
 0xbc9   :  { %v3008_v30 = vadd.f32 1e-05, %v2992_v4  ;;  %v3991_v33 = vpop.eup %3990 }
 0xbca   :  { %v3002_v58 = vadd.f32 1e-05, %v2986_v23  ;;  %v2975_v31 = vpop.xlane.xlu0 %2974  ;;  %v3039_v35 = vmul.f32 %v3991_v33, %v5254_v0 }
 0xbcb   :  { %3998 = vrsqrt.f32 %v3008_v30  ;;  %v2995_v6 = vmul.f32 0.03125, %v2975_v31  ;;  %v2954_v62 = vpop.xlane.xlu1 %2953 }
 0xbcc   :  { %4000 = vrsqrt.f32 %v3002_v58  ;;  %v2988_v1 = vmul.f32 0.03125, %v2954_v62  ;;  %3093 = vxpose.xlu1.b32.cont [4/8] (short) (narrow) %v3077_v10, 32  ;;  %v3061_v60 = vmul.f32 %v5328_v17, %v3039_v35 }
 0xbcd   :  { %v3993_v3 = vpop.eup %3992  ;;  %v3011_v15 = vadd.f32 1e-05, %v2995_v6 }
 0xbce   :  { %v3004_v57 = vadd.f32 1e-05, %v2988_v1  ;;  %v2972_v59 = vpop.xlane.xlu0 %2971  ;;  %v3038_v43 = vmul.f32 %v3993_v3, %v5256_v39  ;;  %v3083_v21 = vadd.f32 %v5334_v32, %v3061_v60 }
 0xbcf   :  { %v2994_v5 = vmul.f32 0.03125, %v2972_v59  ;;  %v2957_v9 = vpop.xlane.xlu1 %2956  ;;  %v4015_v59 = vld [vmem:[%s5451_s30 + $0x8] sm:$0xff] }
 0xbd0   :  { %4002 = vrsqrt.f32 %v3004_v57  ;;  %v2989_v37 = vmul.f32 0.03125, %v2957_v9  ;;  %v3060_v49 = vmul.f32 %v5328_v17, %v3038_v43  ;;  %v4017_v9 = vld [vmem:[%s5451_s30 + $0x10] sm:$0xff] }
 0xbd1   :  { %4004 = vrsqrt.f32 %v3011_v15  ;;  %v3010_v42 = vadd.f32 1e-05, %v2994_v5  ;;  %v3995_v48 = vpop.eup %3994  ;;  %v4014_v15 = vld [vmem:[%s5451_s30] sm:$0xff] }
 0xbd2   :  { %v3005_v36 = vadd.f32 1e-05, %v2989_v37  ;;  %v2978_v11 = vpop.xlane.xlu0 %2977  ;;  %v3082_v41 = vadd.f32 %v5334_v32, %v3060_v49  ;;  %v3997_v39 = vpop.eup %3996  ;;  %v3041_v38 = vmul.f32 %v3995_v48, %v5260_v14 }
 0xbd3   :  { %4006 = vrsqrt.f32 %v3010_v42  ;;  %v2996_v13 = vmul.f32 0.03125, %v2978_v11  ;;  %v3035_v46 = vmul.f32 %v3997_v39, %v5275_v18  ;;  %v4018_v42 = vld [vmem:[%s5451_s30 + $0x28] sm:$0xff] }
 0xbd4   :  { %4008 = vrsqrt.f32 %v3005_v36  ;;  %3122 = vxpose.xlu0.b32.start [1/8] (short) (narrow) %v3082_v41, 32  ;;  %v3063_v27 = vmul.f32 %v5328_v17, %v3041_v38  ;;  %v4019_v41 = vld [vmem:[%s5451_s30 + $0x18] sm:$0xff] }
 0xbd5   :  { %v3999_v0 = vpop.eup %3998  ;;  %v3012_v20 = vadd.f32 1e-05, %v2996_v13  ;;  %v3057_v54 = vmul.f32 %v5328_v17, %v3035_v46  ;;  %v4020_v13 = vld [vmem:[%s5451_s30 + $0x30] sm:$0xff] }
 0xbd6   :  { %v4001_v50 = vpop.eup %4000  ;;  %v2981_v55 = vpop.xlane.xlu0 %2980  ;;  %v3040_v34 = vmul.f32 %v3999_v0, %v5266_v28  ;;  %v3085_v16 = vadd.f32 %v5334_v32, %v3063_v27 }
 0xbd7   :  { %4010 = vrsqrt.f32 %v3012_v20  ;;  %v2997_v2 = vmul.f32 0.03125, %v2981_v55  ;;  %v3034_v40 = vmul.f32 %v4001_v50, %v5272_v12  ;;  %v3079_v7 = vadd.f32 %v5334_v32, %v3057_v54  ;;  %v4021_v20 = vld [vmem:[%s5451_s30 + $0x38] sm:$0xff] }
 0xbd8   :  { %3123 = vxpose.xlu0.b32.cont [2/8] (short) (narrow) %v3083_v21, 32  ;;  %v3062_v25 = vmul.f32 %v5328_v17, %v3040_v34 }
 0xbd9   :  { %v3013_v45 = vadd.f32 1e-05, %v2997_v2  ;;  %v3056_v8 = vmul.f32 %v5328_v17, %v3034_v40 }
 0xbda   :  { %v4003_v44 = vpop.eup %4002  ;;  %v3084_v52 = vadd.f32 %v5334_v32, %v3062_v25 }
 0xbdb   :  { %v4005_v28 = vpop.eup %4004  ;;  %4012 = vrsqrt.f32 %v3013_v45  ;;  %v3078_v14 = vadd.f32 %v5334_v32, %v3056_v8  ;;  %v3036_v12 = vmul.f32 %v4003_v44, %v5286_v53 }
 0xbdc   :  { %3124 = vxpose.xlu0.b32.cont [3/8] (short) (narrow) %v3084_v52, 32  ;;  %v3043_v29 = vmul.f32 %v4005_v28, %v5280_v51 }
 0xbdd   :  { %v4007_v18 = vpop.eup %4006  ;;  %3094 = vxpose.xlu1.b32.cont [5/8] (short) (narrow) %v3078_v14, 32  ;;  %v3058_v22 = vmul.f32 %v5328_v17, %v3036_v12 }
 0xbde   :  { %v4009_v26 = vpop.eup %4008  ;;  %v3042_v47 = vmul.f32 %v4007_v18, %v5292_v24  ;;  %v3065_v30 = vmul.f32 %v5328_v17, %v3043_v29 }
 0xbdf   :  { %v3037_v4 = vmul.f32 %v4009_v26, %v5298_v63  ;;  %v3080_v24 = vadd.f32 %v5334_v32, %v3058_v22 }
 0xbe0   :  { %3125 = vxpose.xlu0.b32.cont [4/8] (short) (narrow) %v3085_v16, 32  ;;  %v3064_v56 = vmul.f32 %v5328_v17, %v3042_v47  ;;  %v3087_v63 = vadd.f32 %v5334_v32, %v3065_v30 }
 0xbe1   :  { %v4011_v53 = vpop.eup %4010  ;;  %3095 = vxpose.xlu1.b32.cont [6/8] (short) (narrow) %v3079_v7, 32  ;;  %v3059_v51 = vmul.f32 %v5328_v17, %v3037_v4 }
 0xbe2   :  { %v3086_v23 = vadd.f32 %v5334_v32, %v3064_v56  ;;  %v3044_v58 = vmul.f32 %v4011_v53, %v5304_v19 }
 0xbe3   :  { %v3081_v6 = vadd.f32 %v5334_v32, %v3059_v51 }
 0xbe4   :  { %3126 = vxpose.xlu0.b32.cont [5/8] (short) (narrow) %v3086_v23, 32  ;;  %v3066_v10 = vmul.f32 %v5328_v17, %v3044_v58 }
 0xbe5   :  { %v4013_v31 = vpop.eup %4012  ;;  %3096 = vxpose.xlu1.b32.cont [7/8] (short) (narrow) %v3080_v24, 32 }
 0xbe6   :  { %v3045_v33 = vmul.f32 %v4013_v31, %v5313_v61  ;;  %v3088_v62 = vadd.f32 %v5334_v32, %v3066_v10 }
 0xbe8   :  { %3127 = vxpose.xlu0.b32.cont [6/8] (short) (narrow) %v3087_v63, 32  ;;  %v3067_v19 = vmul.f32 %v5328_v17, %v3045_v33  ;;  %v4016_v17 = vld [vmem:[%s5451_s30 + $0x20] sm:$0xff] }
 0xbe9   :  { %3097 = vxpose.xlu1.b32.end [8/8] (short) (narrow) %v3081_v6, 32 }
 0xbea   :  { %v3089_v1 = vadd.f32 %v5334_v32, %v3067_v19 }
 0xbec   :  { %3128 = vxpose.xlu0.b32.cont [7/8] (short) (narrow) %v3088_v62, 32 }
 0xbf0   :  { %3129 = vxpose.xlu0.b32.end [8/8] (short) (narrow) %v3089_v1, 32 }
 0xc4d   :  { %v3106_v3 = vpop.trf.xlu1 }
 0xc4e   :  { %v3154_v57 = vadd.f32 %v4014_v15, %v3106_v3 }
 0xc50   :  { %3162 = vst.msk [vmem:[#allocation16] sm:$0xff] %vm2658_vm11, %v3154_v57 }
 0xc51   :  { %v3107_v61 = vpop.trf.xlu1 }
 0xc52   :  { %v3155_v43 = vadd.f32 %v4015_v59, %v3107_v61 }
 0xc54   :  { %v3138_v35 = vpop.trf.xlu0  ;;  %3163 = vst.msk [vmem:[#allocation16 + $0x8] sm:$0xff] %vm2658_vm11, %v3155_v43 }
 0xc55   :  { %v3158_v32 = vadd.f32 %v4016_v17, %v3138_v35  ;;  %v3108_v5 = vpop.trf.xlu1 }
 0xc56   :  { %v3156_v37 = vadd.f32 %v4017_v9, %v3108_v5 }
 0xc57   :  { %3166 = vst.msk [vmem:[#allocation16 + $0x20] sm:$0xff] %vm2658_vm11, %v3158_v32 }
 0xc58   :  { %v3139_v49 = vpop.trf.xlu0  ;;  %3164 = vst.msk [vmem:[#allocation16 + $0x10] sm:$0xff] %vm2658_vm11, %v3156_v37 }
 0xc59   :  { %v3159_v36 = vadd.f32 %v4018_v42, %v3139_v49  ;;  %v3109_v11 = vpop.trf.xlu1 }
 0xc5a   :  { %v3157_v60 = vadd.f32 %v4019_v41, %v3109_v11 }
 0xc5b   :  { %3167 = vst.msk [vmem:[#allocation16 + $0x28] sm:$0xff] %vm2658_vm11, %v3159_v36 }
 0xc5c   :  { %v3140_v48 = vpop.trf.xlu0  ;;  %3165 = vst.msk [vmem:[#allocation16 + $0x18] sm:$0xff] %vm2658_vm11, %v3157_v60 }
 0xc5d   :  { %v3160_v39 = vadd.f32 %v4020_v13, %v3140_v48 }
 0xc5f   :  { %3168 = vst.msk [vmem:[#allocation16 + $0x30] sm:$0xff] %vm2658_vm11, %v3160_v39 }
 0xc60   :  { %v3141_v0 = vpop.trf.xlu0 }
 0xc61   :  { %v3161_v50 = vadd.f32 %v4021_v20, %v3141_v0 }
 0xc63   :  { %3169 = vst.msk [vmem:[#allocation16 + $0x38] sm:$0xff] %vm2658_vm11, %v3161_v50 }
 0xc64   :  { %4209 = shalt.err (!%p4206_p12)
}
 0xc65   :  { %s4210_s3 = scalar_lea.hbm %s5445_s17, 1024 }
 0xc66   :  { %p4211_p13 = scmp.ne.s32.totalorder %s5445_s17, %s4210_s3  ;;  %p4214_p0 = scmp.lt.u32.totalorder %s4210_s3, %s5445_s17 }
 0xc68   :  { %p4216_p1 = pnand %p4214_p0, %p4211_p13 }
 0xc6a   :  { %4219 = shalt.err (!%p4216_p1)
}
 0xc6b   :  { %3181 = dma.vmem_to_hbm [thread:$0]  %s3176_s22, 1024, %s5445_s17, [#allocation4], %s4235_s25, %s4235_s25, %s4236_s1  }
 0xc6c   :  { %4230 = dma.done.wait [#allocation4], 1024  }
 0xc6d   :  { %4231 = vsyncadd [#allocation4], 4294966272 }
 0xc6e   :  { %3185 = vsyncpa [#allocation3], 1 }
 0xc6f   :  { %3186 = vsyncpa [#allocation6], 1 }
 0xc70   :  { %3187 = vsyncpa [#allocation9], 1 }
 0xc71   :  { %3188 = vsyncpa [#allocation12], 1 }
 0xc72   :  { %3189 = vsyncpa [#allocation15], 1 }
 0xc73   :  { %3190 = vsyncpa [#allocation4], 1 }

// kernel: tpu_custom_call.1
= control target key start
LH: loop header
LB: loop body
LE: loop exit
PB: predicated region body
PF: predicated region fallthrough
CT: control target
= control target key end

     0   :  { %s5428_s0 = inlined_call_operand.vmem [shape: f32[2,32,64], index: 0, kind: input, shape index: {}]   ;;  %s5429_s1 = inlined_call_operand.vmem [shape: f32[2,32,32], index: 1, kind: input, shape index: {}]   ;;  %s5430_s2 = inlined_call_operand.vmem [shape: f32[2,32,8], index: 2, kind: input, shape index: {}]   ;;  %s5431_s3 = inlined_call_operand.hbm [shape: f32[8,32], index: 3, kind: input, shape index: {}]   ;;  %s5432_s4 = inlined_call_operand.vmem [shape: f32[1,32], index: 4, kind: input, shape index: {}]   ;;  %s5433_s5 = inlined_call_operand.vmem [shape: f32[32,32], index: 5, kind: input, shape index: {}]   ;;  %s5434_s6 = inlined_call_operand.hbm [shape: f32[1,32], index: 6, kind: input, shape index: {}]   ;;  %s5435_s7 = inlined_call_operand.hbm [shape: f32[32,64], index: 7, kind: input, shape index: {}]   ;;  %s5436_s8 = inlined_call_operand.hbm [shape: f32[32,96], index: 8, kind: input, shape index: {}]   ;;  %s5437_s9 = inlined_call_operand.hbm [shape: f32[32,32], index: 9, kind: input, shape index: {}]   ;;  %s5438_s10 = inlined_call_operand.hbm [shape: f32[32,32], index: 10, kind: input, shape index: {}]   ;;  %s5439_s11 = inlined_call_operand.hbm [shape: f32[1,32], index: 11, kind: input, shape index: {}]   ;;  %s5440_s12 = inlined_call_operand.hbm [shape: f32[1,32], index: 12, kind: input, shape index: {}]   ;;  %s5441_s13 = inlined_call_operand.vmem [shape: f32[32,64], index: 13, kind: input, shape index: {}]   ;;  %s5442_s14 = inlined_call_operand.vmem [shape: f32[64,32], index: 14, kind: input, shape index: {}]   ;;  %s5443_s15 = inlined_call_operand.vmem [shape: f32[1,32], index: 15, kind: input, shape index: {}]   ;;  %s5444_s16 = inlined_call_operand.vmem [shape: f32[1,32], index: 16, kind: input, shape index: {}]   ;;  %s5445_s17 = inlined_call_operand.hbm [shape: f32[2,32,64], index: 17, kind: output, shape index: {}]  }
   0x1   :  { %5448 = sst [smem:[#allocation23_spill]] %s5428_s0 }
   0x2   :  { %5449 = sst [smem:[#allocation24_spill]] %s5429_s1 }
   0x3   :  { %22 = vsyncpa [#allocation3], 0 }
   0x4   :  { %23 = vsyncpa [#allocation6], 0 }
   0x5   :  { %24 = vsyncpa [#allocation9], 0 }
   0x6   :  { %25 = vsyncpa [#allocation12], 0 }
   0x7   :  { %26 = vsyncpa [#allocation15], 0 }
   0x8   :  { %27 = vsyncpa [#allocation4], 0  ;;  %s4232_s24 = smov [#allocation5]   ;;  %s4022_s28 = scalar_lea.hbm %s5434_s6, 16 }
   0x9   :  { %s54_s25 = sshll.u32 %s4232_s24, 4  ;;  %p4023_p0 = scmp.ne.s32.totalorder %s5434_s6, %s4022_s28  ;;  %s55_s25 = int_to_ptr.vmem [resolvable:$true] %s54_s25 }
   0xa   :  { %p4026_p1 = scmp.lt.u32.totalorder %s4022_s28, %s5434_s6 }
   0xc   :  { %p4028_p2 = pnand %p4026_p1, %p4023_p0 }
   0xe   :  { %4031 = shalt.err (!%p4028_p2)
}
   0xf   :  { %s4032_s19 = scalar_lea.vmem %s55_s25, 16  ;;  %s4036_s1 = scalar_lea.vmem %s55_s25, 32 }
  0x10   :  { %p4033_p3 = scmp.ne.s32.totalorder %s55_s25, %s4032_s19  ;;  %p4037_p4 = scmp.lt.s32.totalorder %s55_s25, %s55_s25 }
  0x11   :  { %p4038_p5 = scmp.lt.s32.totalorder %s4036_s1, %s4032_s19 }
  0x13   :  { %p4039_p6 = por %p4038_p5, %p4037_p4 }
  0x15   :  { %p4040_p7 = pnand %p4039_p6, %p4033_p3 }
  0x17   :  { %4043 = shalt.err (!%p4040_p7)
}
  0x18   :  { %57 = dma.hbm_to_vmem [thread:$0]  %s5434_s6, 16, %s55_s25, [#allocation6]  }
  0x19   :  { %s4233_s22 = smov [#allocation8]   ;;  %s4234_s24 = smov [#allocation11]  }
  0x1a   :  { %s75_s23 = sshll.u32 %s4233_s22, 4  ;;  %s99_s26 = sshll.u32 %s4234_s24, 4  ;;  %s76_s23 = int_to_ptr.vmem [resolvable:$true] %s75_s23  ;;  %s100_s26 = int_to_ptr.vmem [resolvable:$true] %s99_s26 }
  0x1b   :  { %s4044_s29 = scalar_lea.hbm %s5436_s8, 512 }
  0x1c   :  { %p4045_p8 = scmp.ne.s32.totalorder %s5436_s8, %s4044_s29  ;;  %p4048_p9 = scmp.lt.u32.totalorder %s4044_s29, %s5436_s8 }
  0x1e   :  { %p4050_p10 = pnand %p4048_p9, %p4045_p8 }
  0x20   :  { %4053 = shalt.err (!%p4050_p10)
}
  0x21   :  { %s4054_s6 = scalar_lea.vmem %s76_s23, 512  ;;  %p4059_p12 = scmp.lt.s32.totalorder %s76_s23, %s76_s23 }
  0x22   :  { %p4055_p11 = scmp.ne.s32.totalorder %s76_s23, %s4054_s6  ;;  %p4060_p13 = scmp.lt.s32.totalorder %s4054_s6, %s4054_s6 }
  0x24   :  { %p4061_p0 = por %p4060_p13, %p4059_p12 }
  0x26   :  { %p4062_p1 = pnand %p4061_p0, %p4055_p11 }
  0x28   :  { %4065 = shalt.err (!%p4062_p1)
}
  0x29   :  { %s4235_s25 = smov 128   ;;  %s4236_s1 = smov 8  }
  0x2a   :  { %81 = dma.hbm_to_vmem [thread:$0]  %s5436_s8, 512, %s76_s23, [#allocation9], %s4235_s25, %s4235_s25, %s4236_s1  }
  0x2b   :  { %s4066_s27 = scalar_lea.hbm %s5438_s10, 512 }
  0x2c   :  { %p4067_p2 = scmp.ne.s32.totalorder %s5438_s10, %s4066_s27  ;;  %p4070_p3 = scmp.lt.u32.totalorder %s4066_s27, %s5438_s10 }
  0x2e   :  { %p4072_p4 = pnand %p4070_p3, %p4067_p2 }
  0x30   :  { %4075 = shalt.err (!%p4072_p4)
}
  0x31   :  { %s4076_s18 = scalar_lea.vmem %s100_s26, 512  ;;  %p4081_p6 = scmp.lt.s32.totalorder %s100_s26, %s100_s26 }
  0x32   :  { %p4077_p5 = scmp.ne.s32.totalorder %s100_s26, %s4076_s18  ;;  %p4082_p7 = scmp.lt.s32.totalorder %s4076_s18, %s4076_s18 }
  0x34   :  { %p4083_p8 = por %p4082_p7, %p4081_p6 }
  0x36   :  { %p4084_p9 = pnand %p4083_p8, %p4077_p5 }
  0x38   :  { %4087 = shalt.err (!%p4084_p9)
}
  0x39   :  { %105 = dma.hbm_to_vmem [thread:$0]  %s5438_s10, 512, %s100_s26, [#allocation12], %s4235_s25, %s4235_s25, %s4236_s1  }
  0x3a   :  { %s4237_s19 = smov [#allocation2]   ;;  %s4238_s20 = smov [#allocation7]  }
  0x3b   :  { %s40_s6 = sshll.u32 %s4237_s19, 4  ;;  %s63_s21 = sshll.u32 %s4238_s20, 4  ;;  %s41_s6 = int_to_ptr.vmem [resolvable:$true] %s40_s6  ;;  %s64_s21 = int_to_ptr.vmem [resolvable:$true] %s63_s21 }
  0x3c   :  { %s4088_s27 = scalar_lea.hbm %s5431_s3, 128 }
  0x3d   :  { %p4089_p10 = scmp.ne.s32.totalorder %s5431_s3, %s4088_s27  ;;  %p4092_p11 = scmp.lt.u32.totalorder %s4088_s27, %s5431_s3 }
  0x3f   :  { %p4094_p12 = pnand %p4092_p11, %p4089_p10 }
  0x41   :  { %4097 = shalt.err (!%p4094_p12)
}
  0x42   :  { %s4098_s10 = scalar_lea.vmem %s41_s6, 128  ;;  %p4103_p0 = scmp.lt.s32.totalorder %s41_s6, %s41_s6 }
  0x43   :  { %p4099_p13 = scmp.ne.s32.totalorder %s41_s6, %s4098_s10  ;;  %p4104_p1 = scmp.lt.s32.totalorder %s4098_s10, %s4098_s10 }
  0x45   :  { %p4105_p2 = por %p4104_p1, %p4103_p0 }
  0x47   :  { %p4106_p3 = pnand %p4105_p2, %p4099_p13 }
  0x49   :  { %4109 = shalt.err (!%p4106_p3)
}
  0x4a   :  { %43 = dma.hbm_to_vmem [thread:$0]  %s5431_s3, 128, %s41_s6, [#allocation3]  }
  0x4b   :  { %s4110_s19 = scalar_lea.hbm %s5435_s7, 512 }
  0x4c   :  { %p4111_p4 = scmp.ne.s32.totalorder %s5435_s7, %s4110_s19  ;;  %p4114_p5 = scmp.lt.u32.totalorder %s4110_s19, %s5435_s7 }
  0x4e   :  { %p4116_p6 = pnand %p4114_p5, %p4111_p4 }
  0x50   :  { %4119 = shalt.err (!%p4116_p6)
}
  0x51   :  { %s4120_s28 = scalar_lea.vmem %s64_s21, 512  ;;  %p4125_p8 = scmp.lt.s32.totalorder %s64_s21, %s64_s21 }
  0x52   :  { %p4121_p7 = scmp.ne.s32.totalorder %s64_s21, %s4120_s28  ;;  %p4126_p9 = scmp.lt.s32.totalorder %s4120_s28, %s4120_s28 }
  0x54   :  { %p4127_p10 = por %p4126_p9, %p4125_p8 }
  0x56   :  { %p4128_p11 = pnand %p4127_p10, %p4121_p7 }
  0x58   :  { %4131 = shalt.err (!%p4128_p11)
}
  0x59   :  { %69 = dma.hbm_to_vmem [thread:$0]  %s5435_s7, 512, %s64_s21, [#allocation6], %s4235_s25, %s4235_s25, %s4236_s1  }
  0x5a   :  { %s4239_s29 = smov [#allocation10]   ;;  %s4240_s30 = smov [#allocation13]  }
  0x5b   :  { %s87_s0 = sshll.u32 %s4239_s29, 4  ;;  %s112_s10 = sshll.u32 %s4240_s30, 4  ;;  %s88_s0 = int_to_ptr.vmem [resolvable:$true] %s87_s0  ;;  %s113_s10 = int_to_ptr.vmem [resolvable:$true] %s112_s10 }
  0x5c   :  { %s4132_s8 = scalar_lea.hbm %s5437_s9, 512 }
  0x5d   :  { %p4133_p12 = scmp.ne.s32.totalorder %s5437_s9, %s4132_s8  ;;  %p4136_p13 = scmp.lt.u32.totalorder %s4132_s8, %s5437_s9 }
  0x5f   :  { %p4138_p0 = pnand %p4136_p13, %p4133_p12 }
  0x61   :  { %4141 = shalt.err (!%p4138_p0)
}
  0x62   :  { %s4142_s7 = scalar_lea.vmem %s88_s0, 512  ;;  %p4147_p2 = scmp.lt.s32.totalorder %s88_s0, %s88_s0 }
  0x63   :  { %p4143_p1 = scmp.ne.s32.totalorder %s88_s0, %s4142_s7  ;;  %p4148_p3 = scmp.lt.s32.totalorder %s4142_s7, %s4142_s7 }
  0x65   :  { %p4149_p4 = por %p4148_p3, %p4147_p2 }
  0x67   :  { %p4150_p5 = pnand %p4149_p4, %p4143_p1 }
  0x69   :  { %4153 = shalt.err (!%p4150_p5)
}
  0x6a   :  { %93 = dma.hbm_to_vmem [thread:$0]  %s5437_s9, 512, %s88_s0, [#allocation9], %s4235_s25, %s4235_s25, %s4236_s1  }
  0x6b   :  { %s4154_s3 = scalar_lea.hbm %s5439_s11, 16 }
  0x6c   :  { %p4155_p6 = scmp.ne.s32.totalorder %s5439_s11, %s4154_s3  ;;  %p4158_p7 = scmp.lt.u32.totalorder %s4154_s3, %s5439_s11 }
  0x6e   :  { %p4160_p8 = pnand %p4158_p7, %p4155_p6 }
  0x70   :  { %4163 = shalt.err (!%p4160_p8)
}
  0x71   :  { %s4164_s18 = scalar_lea.vmem %s113_s10, 16  ;;  %s4168_s8 = scalar_lea.vmem %s113_s10, 32 }
  0x72   :  { %p4165_p9 = scmp.ne.s32.totalorder %s113_s10, %s4164_s18  ;;  %p4169_p10 = scmp.lt.s32.totalorder %s113_s10, %s113_s10 }
  0x73   :  { %p4170_p11 = scmp.lt.s32.totalorder %s4168_s8, %s4164_s18 }
  0x75   :  { %p4171_p12 = por %p4170_p11, %p4169_p10 }
  0x77   :  { %p4172_p13 = pnand %p4171_p12, %p4165_p9 }
  0x79   :  { %4175 = shalt.err (!%p4172_p13)
}
  0x7a   :  { %115 = dma.hbm_to_vmem [thread:$0]  %s5439_s11, 16, %s113_s10, [#allocation12]  }
  0x7b   :  { %s4241_s23 = smov [#allocation14]   ;;  %s4176_s7 = scalar_lea.hbm %s5440_s12, 16 }
  0x7c   :  { %s122_s19 = sshll.u32 %s4241_s23, 4  ;;  %p4177_p0 = scmp.ne.s32.totalorder %s5440_s12, %s4176_s7  ;;  %s123_s19 = int_to_ptr.vmem [resolvable:$true] %s122_s19 }
  0x7d   :  { %p4180_p1 = scmp.lt.u32.totalorder %s4176_s7, %s5440_s12 }
  0x7f   :  { %p4182_p2 = pnand %p4180_p1, %p4177_p0 }
  0x81   :  { %4185 = shalt.err (!%p4182_p2)
}
  0x82   :  { %s4186_s3 = scalar_lea.vmem %s123_s19, 16  ;;  %s4190_s11 = scalar_lea.vmem %s123_s19, 32 }
  0x83   :  { %p4187_p3 = scmp.ne.s32.totalorder %s123_s19, %s4186_s3  ;;  %p4191_p4 = scmp.lt.s32.totalorder %s123_s19, %s123_s19 }
  0x84   :  { %p4192_p5 = scmp.lt.s32.totalorder %s4190_s11, %s4186_s3 }
  0x86   :  { %p4193_p6 = por %p4192_p5, %p4191_p4 }
  0x88   :  { %p4194_p7 = pnand %p4193_p6, %p4187_p3 }
  0x8a   :  { %4197 = shalt.err (!%p4194_p7)
}
  0x8b   :  { %125 = dma.hbm_to_vmem [thread:$0]  %s5440_s12, 16, %s123_s19, [#allocation15]  }
  0x8c   :  { %4220 = dma.done.wait [#allocation3], 128  }
  0x8d   :  { %4221 = vsyncadd [#allocation3], 4294967168 }
  0x8e   :  { %4222 = dma.done.wait [#allocation6], 528  }
  0x8f   :  { %4223 = vsyncadd [#allocation6], 4294966768 }
  0x90   :  { %4224 = dma.done.wait [#allocation9], 1024  }
  0x91   :  { %4225 = vsyncadd [#allocation9], 4294966272 }
  0x92   :  { %4226 = dma.done.wait [#allocation12], 528  }
  0x93   :  { %4227 = vsyncadd [#allocation12], 4294966768 }
  0x94   :  { %4228 = dma.done.wait [#allocation15], 16  }
  0x95   :  { %4229 = vsyncadd [#allocation15], 4294967280  ;;  %vm318_vm0 = vcmask 64512   ;;  %v310_v0 = vld [vmem:[#allocation2] sm:$0xff]  ;;  %v303_v2 = vld [vmem:[%s5430_s2 + $0x8] sm:$0xff]  ;;  %s5450_s23 = sld [smem:[#allocation24_spill]] }
  0x96   :  { %v302_v1 = vld [vmem:[%s5430_s2] sm:$0xff]  ;;  %3466 = vmatprep.subr.mxu0 %v310_v0  ;;  %v304_v3 = vld [vmem:[%s5430_s2 + $0x10] sm:$0xff]  ;;  %v305_v5 = vld [vmem:[%s5430_s2 + $0x18] sm:$0xff]  ;;  %vm460_vm1 = vcmask 261120   ;;  %s5451_s30 = sld [smem:[#allocation23_spill]]  ;;  %s4243_s28 = smov 96  }
  0x97   :  { %3468 = vmatprep.mubr.msk.f32.mxu0 %vm318_vm0, %v302_v1  ;;  %3467 = vmatpush3.msra.mxu0 %v310_v0  ;;  %v306_v7 = vld [vmem:[%s5430_s2 + $0x20] sm:$0xff]  ;;  %v654_v9 = vld [vmem:[#allocation7] sm:$0xff]  ;;  %v655_v11 = vld [vmem:[#allocation7 + $0x8] sm:$0xff]  ;;  %s4244_s20 = smov [#allocation16]  }
  0x98   :  { %3469 = vmatmul.mubr.msk.f32.vlgmr.msra.gmra.mrb[0].mxu0 %vm318_vm0, %v303_v2  ;;  %v3732_v12 = vpack.c.bf16 %v655_v11, %v654_v9  ;;  %v307_v13 = vld [vmem:[%s5430_s2 + $0x28] sm:$0xff]  ;;  %v656_v14 = vld [vmem:[#allocation7 + $0x10] sm:$0xff]  ;;  %v308_v16 = vld [vmem:[%s5430_s2 + $0x30] sm:$0xff]  ;;  %s3175_s22 = sshll.u32 %s4244_s20, 4  ;;  %s3176_s22 = int_to_ptr.vmem [resolvable:$true] %s3175_s22 }
  0x99   :  { %3471 = vmatprep.mubr.msk.f32.mxu0 %vm318_vm0, %v304_v3  ;;  %v657_v15 = vld [vmem:[#allocation7 + $0x18] sm:$0xff]  ;;  %v309_v20 = vld [vmem:[%s5430_s2 + $0x38] sm:$0xff]  ;;  %v789_v27 = vld [vmem:[%s5433_s5 + $0x10] sm:$0xff]  ;;  %s4198_s24 = scalar_lea.vmem %s3176_s22, 1024  ;;  %p4203_p9 = scmp.lt.s32.totalorder %s3176_s22, %s3176_s22 }
  0x9a   :  { %3733 = vmatprep.subr.bf16.mxu0 %v3732_v12  ;;  %v3736_v18 = vpack.c.bf16 %v657_v15, %v656_v14  ;;  %v787_v23 = vld [vmem:[%s5433_s5] sm:$0xff]  ;;  %v788_v24 = vld [vmem:[%s5433_s5 + $0x8] sm:$0xff]  ;;  %v790_v28 = vld [vmem:[%s5433_s5 + $0x18] sm:$0xff]  ;;  %p4199_p8 = scmp.ne.s32.totalorder %s3176_s22, %s4198_s24  ;;  %p4204_p10 = scmp.lt.s32.totalorder %s4198_s24, %s4198_s24 }
  0x9b   :  { %v166_v4 = vld [vmem:[%s5450_s23] sm:$0xff]  ;;  %v167_v8 = vld [vmem:[%s5450_s23 + $0x8] sm:$0xff]  ;;  %v168_v17 = vld [vmem:[%s5450_s23 + $0x10] sm:$0xff]  ;;  %3735 = vmatpush3.bf16.msra.mxu0 %v3732_v12  ;;  %v3740_v25 = vpack.c.bf16 %v788_v24, %v787_v23  ;;  %v3744_v30 = vpack.c.bf16 %v790_v28, %v789_v27 }
  0x9c   :  { %238 = vxpose.xlu0.b32.start [1/4] (short) (narrow) %v166_v4, 32  ;;  %v170_v6 = vld [vmem:[%s5450_s23 + $0x20] sm:$0xff]  ;;  %v171_v10 = vld [vmem:[%s5450_s23 + $0x28] sm:$0xff]  ;;  %3472 = vmatmul.mubr.msk.f32.gmra.mrb[2].mxu0 %vm318_vm0, %v305_v5  ;;  %v172_v19 = vld [vmem:[%s5450_s23 + $0x30] sm:$0xff]  ;;  %p4205_p11 = por %p4204_p10, %p4203_p9 }
  0x9d   :  { %270 = vxpose.xlu1.b32.start [1/4] (short) (narrow) %v170_v6, 32  ;;  %3474 = vmatprep.mubr.msk.f32.mxu0 %vm318_vm0, %v306_v7  ;;  %v169_v21 = vld [vmem:[%s5450_s23 + $0x18] sm:$0xff]  ;;  %v3191_v37 = vld [vmem:[%s5432_s4] ss:$0 sm:$0xff]  ;;  %v3232_v62 = vld [vmem:[#allocation5] ss:$0 sm:$0xff] }
  0x9e   :  { %3737 = vmatprep.subr.bf16.mxu0 %v3736_v18  ;;  %v173_v22 = vld [vmem:[%s5450_s23 + $0x38] sm:$0xff]  ;;  %s4242_s4 = smov 32   ;;  %v158_v15 = vld [vmem:[%s5451_s30] sm:$0xff]  ;;  %v456_v23 = vld [vmem:[#allocation8] sm:$0xff]  ;;  %p4206_p12 = pnand %p4205_p11, %p4199_p8 }
  0x9f   :  { %3739 = vmatpush3.bf16.msra.mxu0 %v3736_v18  ;;  %v161_v18 = vld [vmem:[%s5451_s30 + $0x18] sm:$0xff]  ;;  %v459_v27 = vld [vmem:[#allocation8 + $0x18] sm:$0xff] }
  0xa0   :  { %239 = vxpose.xlu0.b32.cont [2/4] (short) (narrow) %v167_v8, 32  ;;  %3475 = vmatmul.mubr.msk.f32.gmra.mrb[4].mxu0 %vm318_vm0, %v307_v13  ;;  %v457_v24 = vld [vmem:[#allocation8 + $0x8] sm:$0xff] }
  0xa1   :  { %271 = vxpose.xlu1.b32.cont [2/4] (short) (narrow) %v171_v10, 32  ;;  %3477 = vmatprep.mubr.msk.f32.mxu0 %vm318_vm0, %v308_v16  ;;  %v159_v16 = vld [vmem:[%s5451_s30 + $0x8] sm:$0xff] }
  0xa2   :  { %3741 = vmatprep.subr.bf16.mxu0 %v3740_v25 }
  0xa4   :  { %240 = vxpose.xlu0.b32.cont [3/4] (short) (narrow) %v168_v17, 32  ;;  %3478 = vmatmul.mubr.msk.f32.gmra.mrb[6].mxu0 %vm318_vm0, %v309_v20  ;;  %v160_v17 = vld [vmem:[%s5451_s30 + $0x10] sm:$0xff]  ;;  %v163_v20 = vld [vmem:[%s5451_s30 + $0x28] sm:$0xff] }
  0xa5   :  { %272 = vxpose.xlu1.b32.cont [3/4] (short) (narrow) %v172_v19, 32  ;;  %v162_v19 = vld [vmem:[%s5451_s30 + $0x20] sm:$0xff] }
  0xa8   :  { %241 = vxpose.xlu0.b32.end [4/4] (short) (narrow) %v169_v21, 32  ;;  %v164_v21 = vld [vmem:[%s5451_s30 + $0x30] sm:$0xff] }
  0xa9   :  { %273 = vxpose.xlu1.b32.end [4/4] (short) (narrow) %v173_v22, 32  ;;  %v165_v22 = vld [vmem:[%s5451_s30 + $0x38] sm:$0xff] }
  0xc7   :  { %966 = vrot.lane.b32.xlu1 %v3232_v62, %s4242_s4 }
 0x11c   :  { %v254_v26 = vpop.trf.xlu0 }
 0x11d   :  { %3520 = vmatprep.mubr.msk.f32.mxu0 %vm460_vm1, %v254_v26  ;;  %v286_v29 = vpop.trf.xlu1  ;;  %v458_v26 = vld [vmem:[#allocation8 + $0x10] sm:$0xff] }
 0x11e   :  { %v3728_v28 = vpack.c.bf16 %v459_v27, %v458_v26 }
 0x120   :  { %v255_v31 = vpop.trf.xlu0 }
 0x121   :  { %3521 = vmatmul.mubr.msk.f32.vlgmr.msra.gmra.mrb[8].mxu0 %vm460_vm1, %v255_v31  ;;  %v287_v32 = vpop.trf.xlu1 }
 0x122   :  { %3743 = vmatpush3.bf16.msra.mxu0 %v3740_v25  ;;  %v3724_v25 = vpack.c.bf16 %v457_v24, %v456_v23 }
 0x123   :  { %3745 = vmatprep.subr.bf16.mxu0 %v3744_v30 }
 0x124   :  { %v256_v33 = vpop.trf.xlu0  ;;  %3725 = vmatprep.subr.bf16.mxu1 %v3724_v25 }
 0x125   :  { %3523 = vmatprep.mubr.msk.f32.mxu0 %vm460_vm1, %v256_v33  ;;  %v288_v35 = vpop.trf.xlu1  ;;  %3727 = vmatpush3.bf16.msra.mxu1 %v3724_v25 }
 0x126   :  { %3747 = vmatpush3.bf16.msra.mxu0 %v3744_v30  ;;  %3729 = vmatprep.subr.bf16.mxu1 %v3728_v28 }
 0x128   :  { %v257_v34 = vpop.trf.xlu0 }
 0x129   :  { %3524 = vmatmul.mubr.msk.f32.gmra.mrb[10].mxu0 %vm460_vm1, %v257_v34  ;;  %v289_v36 = vpop.trf.xlu1  ;;  %3731 = vmatpush3.bf16.msra.mxu1 %v3728_v28 }
 0x12a   :  { %3526 = vmatprep.mubr.msk.f32.mxu0 %vm460_vm1, %v286_v29 }
 0x12d   :  { %3527 = vmatmul.mubr.msk.f32.gmra.mrb[12].mxu0 %vm460_vm1, %v287_v32 }
 0x12e   :  { %3529 = vmatprep.mubr.msk.f32.mxu0 %vm460_vm1, %v288_v35 }
 0x131   :  { %3530 = vmatmul.mubr.msk.f32.gmra.mrb[14].mxu0 %vm460_vm1, %v289_v36 }
 0x139   :  { %v967_v29 = vpop.permute.xlu1 %966 }
 0x16b   :  { %v3470_v38 = vpop.f32.mrb[0].mxu0 }
 0x16c   :  { %v415_v39 = vadd.f32 %v3470_v38, %v3191_v37  ;;  %v409_v40 = vpop.f32.mrb[1].mxu0 }
 0x16d   :  { %v410_v41 = vadd.f32 %v3191_v37, %v409_v40 }
 0x16e   :  { %v449_v44 = vmax.f32 %v415_v39, 0.0 }
 0x16f   :  { %v448_v42 = vmax.f32 %v410_v41, 0.0  ;;  %v3473_v43 = vpop.f32.mrb[2].mxu0 }
 0x170   :  { %v425_v45 = vadd.f32 %v3473_v43, %v3191_v37  ;;  %v419_v46 = vpop.f32.mrb[3].mxu0 }
 0x171   :  { %v420_v47 = vadd.f32 %v3191_v37, %v419_v46  ;;  %3540 = vmatprep.mubr.msk.f32.mxu0 %vm460_vm1, %v448_v42 }
 0x172   :  { %3541 = vmatmul.mubr.msk.f32.vlgmr.msra.gmra.mrb[16].mxu0 %vm460_vm1, %v449_v44  ;;  %v451_v50 = vmax.f32 %v425_v45, 0.0 }
 0x173   :  { %v450_v48 = vmax.f32 %v420_v47, 0.0  ;;  %v3476_v49 = vpop.f32.mrb[4].mxu0 }
 0x174   :  { %v435_v51 = vadd.f32 %v3476_v49, %v3191_v37  ;;  %v429_v52 = vpop.f32.mrb[5].mxu0 }
 0x175   :  { %v430_v53 = vadd.f32 %v3191_v37, %v429_v52  ;;  %3543 = vmatprep.mubr.msk.f32.mxu0 %vm460_vm1, %v450_v48 }
 0x176   :  { %v453_v54 = vmax.f32 %v435_v51, 0.0  ;;  %3544 = vmatmul.mubr.msk.f32.gmra.mrb[18].mxu0 %vm460_vm1, %v451_v50 }
 0x177   :  { %v452_v55 = vmax.f32 %v430_v53, 0.0  ;;  %v3479_v56 = vpop.f32.mrb[6].mxu0 }
 0x178   :  { %v445_v57 = vadd.f32 %v3479_v56, %v3191_v37  ;;  %v439_v58 = vpop.f32.mrb[7].mxu0 }
 0x179   :  { %v440_v59 = vadd.f32 %v3191_v37, %v439_v58  ;;  %3546 = vmatprep.mubr.msk.f32.mxu0 %vm460_vm1, %v452_v55 }
 0x17a   :  { %v455_v60 = vmax.f32 %v445_v57, 0.0  ;;  %3547 = vmatmul.mubr.msk.f32.gmra.mrb[20].mxu0 %vm460_vm1, %v453_v54 }
 0x17b   :  { %v454_v61 = vmax.f32 %v440_v59, 0.0 }
 0x17d   :  { %3549 = vmatprep.mubr.msk.f32.mxu0 %vm460_vm1, %v454_v61 }
 0x17e   :  { %3550 = vmatmul.mubr.msk.f32.gmra.mrb[22].mxu0 %vm460_vm1, %v455_v60 }
 0x1f4   :  { %v4531_v63 = vpop.f32.mrb[8].mxu0 }
 0x1f5   :  { %v4533_v0 = vpop.f32.mrb[9].mxu0  ;;  %v1075_v59 = vmul.f32 1.442695, %v4531_v63  ;;  %vm1058_vm3 = vcmp.gt.f32.partialorder %v4531_v63, 0.0 }
 0x1f6   :  { %v1073_v58 = vmul.f32 1.442695, %v4533_v0  ;;  %v1065_v62 = vadd.f32 1.0, %v4533_v0  ;;  %vm1057_vm2 = vcmp.gt.f32.partialorder %v4533_v0, 0.0 }
 0x1f8   :  { %3870 = vpow2.f32 %v1073_v58 }
 0x1f9   :  { %3872 = vpow2.f32 %v1075_v59 }
 0x1fc   :  { %v4535_v1 = vpop.f32.mrb[10].mxu0 }
 0x1fd   :  { %v4537_v2 = vpop.f32.mrb[11].mxu0  ;;  %v1079_v61 = vmul.f32 1.442695, %v4535_v1  ;;  %vm1060_vm5 = vcmp.gt.f32.partialorder %v4535_v1, 0.0 }
 0x1fe   :  { %v1077_v60 = vmul.f32 1.442695, %v4537_v2  ;;  %vm1059_vm4 = vcmp.gt.f32.partialorder %v4537_v2, 0.0 }
 0x200   :  { %v4539_v3 = vpop.f32.mrb[12].mxu0  ;;  %3874 = vpow2.f32 %v1077_v60 }
 0x201   :  { %v4541_v4 = vpop.f32.mrb[13].mxu0  ;;  %3876 = vpow2.f32 %v1079_v61  ;;  %v1070_v23 = vadd.f32 1.0, %v4539_v3  ;;  %vm1062_vm7 = vcmp.gt.f32.partialorder %v4539_v3, 0.0 }
 0x202   :  { %vm1061_vm6 = vcmp.gt.f32.partialorder %v4541_v4, 0.0 }
 0x204   :  { %v4543_v5 = vpop.f32.mrb[14].mxu0 }
 0x205   :  { %v4545_v6 = vpop.f32.mrb[15].mxu0  ;;  %vm1064_vm9 = vcmp.gt.f32.partialorder %v4543_v5, 0.0 }
 0x206   :  { %v1071_v26 = vadd.f32 1.0, %v4545_v6  ;;  %vm1063_vm8 = vcmp.gt.f32.partialorder %v4545_v6, 0.0 }
 0x245   :  { %v3542_v7 = vpop.f32.mrb[16].mxu0 }
 0x246   :  { %930 = vrot.lane.b32.xlu1 %v3542_v7, %s4242_s4  ;;  %v881_v8 = vpop.f32.mrb[17].mxu0  ;;  %v3871_v7 = vpop.eup %3870 }
 0x247   :  { %928 = vrot.lane.b32.xlu0 %v881_v8, %s4242_s4  ;;  %v1081_v8 = vmul.f32 1.442695, %v4541_v4 }
 0x249   :  { %v3545_v9 = vpop.f32.mrb[18].mxu0  ;;  %3878 = vpow2.f32 %v1081_v8 }
 0x24a   :  { %934 = vrot.lane.b32.xlu1 %v3545_v9, %s4242_s4  ;;  %v891_v10 = vpop.f32.mrb[19].mxu0  ;;  %v1066_v9 = vadd.f32 1.0, %v4531_v63 }
 0x24d   :  { %v3548_v11 = vpop.f32.mrb[20].mxu0 }
 0x24e   :  { %932 = vrot.lane.b32.xlu1 %v891_v10, %s4242_s4  ;;  %v901_v12 = vpop.f32.mrb[21].mxu0  ;;  %v1089_v10 = vsel %vm1057_vm2, %v1065_v62, %v3871_v7 }
 0x24f   :  { %936 = vrot.lane.b32.xlu0 %v901_v12, %s4242_s4  ;;  %v1083_v12 = vmul.f32 1.442695, %v4539_v3 }
 0x251   :  { %v3551_v13 = vpop.f32.mrb[22].mxu0  ;;  %3880 = vpow2.f32 %v1083_v12 }
 0x252   :  { %938 = vrot.lane.b32.xlu1 %v3548_v11, %s4242_s4  ;;  %v911_v14 = vpop.f32.mrb[23].mxu0  ;;  %v3873_v11 = vpop.eup %3872 }
 0x253   :  { %940 = vrot.lane.b32.xlu0 %v911_v14, %s4242_s4  ;;  %v1090_v14 = vsel %vm1058_vm3, %v1066_v9, %v3873_v11 }
 0x256   :  { %942 = vrot.lane.b32.xlu1 %v3551_v13, %s4242_s4  ;;  %v1067_v13 = vadd.f32 1.0, %v4537_v2 }
 0x271   :  { %174 = vxpose.xlu0.b32.start [1/4] (short) (narrow) %v158_v15, 64  ;;  %v3875_v15 = vpop.eup %3874 }
 0x275   :  { %175 = vxpose.xlu0.b32.cont [2/4] (short) (narrow) %v159_v16, 64  ;;  %v1068_v16 = vadd.f32 1.0, %v4535_v1 }
 0x279   :  { %176 = vxpose.xlu0.b32.cont [3/4] (short) (narrow) %v160_v17, 64  ;;  %v1091_v17 = vsel %vm1059_vm4, %v1067_v13, %v3875_v15 }
 0x27d   :  { %177 = vxpose.xlu0.b32.end [4/4] (short) (narrow) %v161_v18, 64  ;;  %v3877_v18 = vpop.eup %3876 }
 0x27f   :  { %206 = vxpose.xlu1.b32.start [1/4] (short) (narrow) %v162_v19, 64  ;;  %v1087_v19 = vmul.f32 1.442695, %v4543_v5 }
 0x283   :  { %207 = vxpose.xlu1.b32.cont [2/4] (short) (narrow) %v163_v20, 64  ;;  %v1069_v20 = vadd.f32 1.0, %v4541_v4 }
 0x287   :  { %208 = vxpose.xlu1.b32.cont [3/4] (short) (narrow) %v164_v21, 64  ;;  %v3879_v21 = vpop.eup %3878 }
 0x288   :  { %v3881_v24 = vpop.eup %3880 }
 0x289   :  { %v1094_v27 = vsel %vm1062_vm7, %v1070_v23, %v3881_v24 }
 0x28b   :  { %209 = vxpose.xlu1.b32.end [4/4] (short) (narrow) %v165_v22, 64 }
 0x2b8   :  { %v931_v30 = vpop.permute.xlu1 %930 }
 0x2b9   :  { %v953_v31 = vadd.f32 %v4531_v63, %v931_v30  ;;  %v929_v32 = vpop.permute.xlu0 %928 }
 0x2ba   :  { %v952_v33 = vadd.f32 %v929_v32, %v4533_v0  ;;  %v1085_v0 = vmul.f32 1.442695, %v4545_v6 }
 0x2bb   :  { %v970_v34 = vadd.f32 %v967_v29, %v953_v31 }
 0x2bc   :  { %v969_v35 = vadd.f32 %v967_v29, %v952_v33  ;;  %v935_v36 = vpop.permute.xlu1 %934  ;;  %3882 = vpow2.f32 %v1085_v0 }
 0x2bd   :  { %v955_v38 = vadd.f32 %v4535_v1, %v935_v36  ;;  %3884 = vpow2.f32 %v1087_v19  ;;  %v1093_v1 = vsel %vm1061_vm6, %v1069_v20, %v3879_v21 }
 0x2be   :  { %v3830_v37 = vpack.i.bf16 %v970_v34, %v969_v35 }
 0x2bf   :  { %v972_v42 = vadd.f32 %v967_v29, %v955_v38 }
 0x2c0   :  { %v933_v39 = vpop.permute.xlu1 %932  ;;  %3831 = vrot.lane.b32.xlu1 %v3830_v37, %s4243_s28 }
 0x2c1   :  { %v954_v40 = vadd.f32 %v933_v39, %v4537_v2  ;;  %v937_v41 = vpop.permute.xlu0 %936  ;;  %v1092_v2 = vsel %vm1060_vm5, %v1068_v16, %v3877_v18 }
 0x2c2   :  { %v956_v44 = vadd.f32 %v937_v41, %v4541_v4 }
 0x2c3   :  { %v971_v43 = vadd.f32 %v967_v29, %v954_v40 }
 0x2c4   :  { %v939_v45 = vpop.permute.xlu1 %938  ;;  %v973_v49 = vadd.f32 %v967_v29, %v956_v44 }
 0x2c5   :  { %v957_v46 = vadd.f32 %v4539_v3, %v939_v45  ;;  %v941_v47 = vpop.permute.xlu0 %940  ;;  %v3835_v48 = vpack.i.bf16 %v972_v42, %v971_v43 }
 0x2c6   :  { %v958_v51 = vadd.f32 %v941_v47, %v4545_v6  ;;  %v3883_v28 = vpop.eup %3882 }
 0x2c7   :  { %v974_v50 = vadd.f32 %v967_v29, %v957_v46  ;;  %3836 = vrot.lane.b32.xlu1 %v3835_v48, %s4243_s28  ;;  %v1095_v30 = vsel %vm1063_vm8, %v1071_v26, %v3883_v28  ;;  %v3885_v32 = vpop.eup %3884 }
 0x2c8   :  { %v943_v52 = vpop.permute.xlu1 %942  ;;  %v975_v55 = vadd.f32 %v967_v29, %v958_v51 }
 0x2c9   :  { %v959_v53 = vadd.f32 %v4543_v5, %v943_v52  ;;  %v3840_v54 = vpack.i.bf16 %v974_v50, %v973_v49 }
 0x2cb   :  { %v976_v56 = vadd.f32 %v967_v29, %v959_v53  ;;  %3841 = vrot.lane.b32.xlu0 %v3840_v54, %s4243_s28  ;;  %v1072_v29 = vadd.f32 1.0, %v4543_v5 }
 0x2cd   :  { %v3845_v57 = vpack.i.bf16 %v976_v56, %v975_v55  ;;  %v1096_v33 = vsel %vm1064_vm9, %v1072_v29, %v3885_v32 }
 0x2cf   :  { %3846 = vrot.lane.b32.xlu1 %v3845_v57, %s4243_s28 }
 0x2e9   :  { %1101 = vxpose.xlu0.b32.start [1/4] (short) (narrow) %v1089_v10, 32 }
 0x2ed   :  { %1102 = vxpose.xlu0.b32.cont [2/4] (short) (narrow) %v1090_v14, 32 }
 0x2f1   :  { %1103 = vxpose.xlu0.b32.cont [3/4] (short) (narrow) %v1091_v17, 32  ;;  %v190_v63 = vpop.trf.xlu0 }
 0x2f2   :  { %3488 = vmatprep.mubr.msk.f32.mxu1 %vm460_vm1, %v190_v63 }
 0x2f5   :  { %1104 = vxpose.xlu0.b32.end [4/4] (short) (narrow) %v1092_v2, 32  ;;  %v191_v22 = vpop.trf.xlu0 }
 0x2f6   :  { %3489 = vmatmul.mubr.msk.f32.vlgmr.msra.gmra.mrb[0].mxu1 %vm460_vm1, %v191_v22 }
 0x2f8   :  { %1133 = vxpose.xlu1.b32.start [1/4] (short) (narrow) %v1093_v1, 32 }
 0x2f9   :  { %v192_v25 = vpop.trf.xlu0 }
 0x2fa   :  { %3491 = vmatprep.mubr.msk.f32.mxu1 %vm460_vm1, %v192_v25 }
 0x2fc   :  { %1134 = vxpose.xlu1.b32.cont [2/4] (short) (narrow) %v1094_v27, 32 }
 0x2fd   :  { %v193_v4 = vpop.trf.xlu0 }
 0x2fe   :  { %3492 = vmatmul.mubr.msk.f32.gmra.mrb[2].mxu1 %vm460_vm1, %v193_v4 }
 0x2ff   :  { %v222_v31 = vpop.trf.xlu1 }
 0x300   :  { %1135 = vxpose.xlu1.b32.cont [3/4] (short) (narrow) %v1095_v30, 32 }
 0x301   :  { %v194_v3 = vpop.trf.xlu0 }
 0x302   :  { %3494 = vmatprep.mubr.msk.f32.mxu1 %vm460_vm1, %v194_v3 }
 0x303   :  { %v223_v34 = vpop.trf.xlu1 }
 0x304   :  { %1136 = vxpose.xlu1.b32.end [4/4] (short) (narrow) %v1096_v33, 32 }
 0x305   :  { %v195_v35 = vpop.trf.xlu0 }
 0x306   :  { %3495 = vmatmul.mubr.msk.f32.gmra.mrb[4].mxu1 %vm460_vm1, %v195_v35 }
 0x307   :  { %v224_v6 = vpop.trf.xlu1 }
 0x309   :  { %v196_v36 = vpop.trf.xlu0 }
 0x30a   :  { %3497 = vmatprep.mubr.msk.f32.mxu1 %vm460_vm1, %v196_v36 }
 0x30b   :  { %v225_v37 = vpop.trf.xlu1 }
 0x30d   :  { %v197_v38 = vpop.trf.xlu0 }
 0x30e   :  { %3498 = vmatmul.mubr.msk.f32.gmra.mrb[6].mxu1 %vm460_vm1, %v197_v38 }
 0x30f   :  { %v226_v39 = vpop.trf.xlu1  ;;  %3500 = vmatprep.mubr.msk.f32.mxu1 %vm460_vm1, %v222_v31 }
 0x312   :  { %3501 = vmatmul.mubr.msk.f32.gmra.mrb[8].mxu1 %vm460_vm1, %v223_v34 }
 0x313   :  { %v227_v5 = vpop.trf.xlu1  ;;  %3503 = vmatprep.mubr.msk.f32.mxu1 %vm460_vm1, %v224_v6  ;;  %v4687_v6 = vld [vmem:[#allocation11] sm:$0xff] }
 0x316   :  { %3504 = vmatmul.mubr.msk.f32.gmra.mrb[10].mxu1 %vm460_vm1, %v225_v37  ;;  %v4689_v37 = vld [vmem:[#allocation11 + $0x8] sm:$0xff] }
 0x317   :  { %v228_v40 = vpop.trf.xlu1  ;;  %3506 = vmatprep.mubr.msk.f32.mxu1 %vm460_vm1, %v226_v39 }
 0x31a   :  { %3507 = vmatmul.mubr.msk.f32.gmra.mrb[12].mxu1 %vm460_vm1, %v227_v5 }
 0x31b   :  { %3509 = vmatprep.mubr.msk.f32.mxu1 %vm460_vm1, %v228_v40  ;;  %v229_v41 = vpop.trf.xlu1 }
 0x31e   :  { %3510 = vmatmul.mubr.msk.f32.gmra.mrb[14].mxu1 %vm460_vm1, %v229_v41 }
 0x332   :  { %v3832_v42 = vpop.permute.xlu1 %3831 }
 0x333   :  { %v3834_v43 = vunpack.i.h.bf16 %v3832_v42  ;;  %v3833_v44 = vunpack.i.l.bf16 %v3832_v42  ;;  %v4694_v42 = vld [vmem:[#allocation11 + $0x10] sm:$0xff] }
 0x335   :  { %v3748_v45 = vpack.c.bf16 %v3834_v43, %v3833_v44  ;;  %v4696_v43 = vld [vmem:[#allocation11 + $0x18] sm:$0xff] }
 0x337   :  { %3749 = vmatprep.subr.bf16.mxu1 %v3748_v45 }
 0x338   :  { %3751 = vmatpush3.bf16.msra.mxu1 %v3748_v45 }
 0x339   :  { %v3837_v46 = vpop.permute.xlu1 %3836 }
 0x33a   :  { %v3839_v47 = vunpack.i.h.bf16 %v3837_v46  ;;  %v3838_v48 = vunpack.i.l.bf16 %v3837_v46 }
 0x33c   :  { %v3752_v49 = vpack.c.bf16 %v3839_v47, %v3838_v48 }
 0x33d   :  { %v3842_v50 = vpop.permute.xlu0 %3841 }
 0x33e   :  { %v3844_v51 = vunpack.i.h.bf16 %v3842_v50  ;;  %v3843_v52 = vunpack.i.l.bf16 %v3842_v50  ;;  %3753 = vmatprep.subr.bf16.mxu1 %v3752_v49 }
 0x33f   :  { %3755 = vmatpush3.bf16.msra.mxu1 %v3752_v49 }
 0x340   :  { %v3756_v53 = vpack.c.bf16 %v3844_v51, %v3843_v52 }
 0x341   :  { %v3847_v54 = vpop.permute.xlu1 %3846 }
 0x342   :  { %3757 = vmatprep.subr.bf16.mxu1 %v3756_v53  ;;  %v3849_v56 = vunpack.i.h.bf16 %v3847_v54  ;;  %v3848_v57 = vunpack.i.l.bf16 %v3847_v54 }
 0x344   :  { %v3760_v61 = vpack.c.bf16 %v3849_v56, %v3848_v57 }
 0x369   :  { %v1117_v55 = vpop.trf.xlu0 }
 0x36a   :  { %3560 = vmatprep.mubr.msk.f32.mxu1 %vm460_vm1, %v1117_v55  ;;  %v1391_v58 = vsel %vm460_vm1, %v1117_v55, 0.0 }
 0x36b   :  { %1392 = vadd.xlane.f32.xlu0 %v1391_v58 }
 0x36d   :  { %v1118_v59 = vpop.trf.xlu0 }
 0x36e   :  { %3561 = vmatmul.mubr.msk.f32.vlgmr.msra.gmra.mrb[16].mxu1 %vm460_vm1, %v1118_v59  ;;  %v1394_v60 = vsel %vm460_vm1, %v1118_v59, 0.0 }
 0x36f   :  { %3759 = vmatpush3.bf16.msra.mxu1 %v3756_v53  ;;  %1395 = vadd.xlane.f32.xlu1 %v1394_v60 }
 0x370   :  { %3761 = vmatprep.subr.bf16.mxu1 %v3760_v61 }
 0x371   :  { %v1119_v62 = vpop.trf.xlu0 }
 0x372   :  { %3563 = vmatprep.mubr.msk.f32.mxu1 %vm460_vm1, %v1119_v62  ;;  %v1397_v7 = vsel %vm460_vm1, %v1119_v62, 0.0 }
 0x373   :  { %3763 = vmatpush3.bf16.msra.mxu1 %v3760_v61  ;;  %1398 = vadd.xlane.f32.xlu0 %v1397_v7 }
 0x375   :  { %v1120_v8 = vpop.trf.xlu0 }
 0x376   :  { %3564 = vmatmul.mubr.msk.f32.gmra.mrb[18].mxu1 %vm460_vm1, %v1120_v8  ;;  %v1400_v9 = vsel %vm460_vm1, %v1120_v8, 0.0 }
 0x377   :  { %1401 = vadd.xlane.f32.xlu0 %v1400_v9 }
 0x378   :  { %v1149_v10 = vpop.trf.xlu1 }
 0x379   :  { %v1403_v11 = vsel %vm460_vm1, %v1149_v10, 0.0  ;;  %3574 = vmatprep.mubr.msk.f32.mxu1 %vm460_vm1, %v1149_v10 }
 0x37b   :  { %1404 = vadd.xlane.f32.xlu0 %v1403_v11 }
 0x37c   :  { %v1150_v12 = vpop.trf.xlu1 }
 0x37d   :  { %v1406_v13 = vsel %vm460_vm1, %v1150_v12, 0.0  ;;  %3575 = vmatmul.mubr.msk.f32.vlgmr.msra.gmra.mrb[20].mxu1 %vm460_vm1, %v1150_v12 }
 0x37f   :  { %1407 = vadd.xlane.f32.xlu0 %v1406_v13 }
 0x380   :  { %v1151_v14 = vpop.trf.xlu1 }
 0x381   :  { %v1409_v15 = vsel %vm460_vm1, %v1151_v14, 0.0  ;;  %3577 = vmatprep.mubr.msk.f32.mxu1 %vm460_vm1, %v1151_v14 }
 0x382   :  { %1410 = vadd.xlane.f32.xlu1 %v1409_v15 }
 0x384   :  { %v1152_v0 = vpop.trf.xlu1 }
 0x385   :  { %v1412_v16 = vsel %vm460_vm1, %v1152_v0, 0.0  ;;  %3578 = vmatmul.mubr.msk.f32.gmra.mrb[22].mxu1 %vm460_vm1, %v1152_v0 }
 0x386   :  { %1413 = vadd.xlane.f32.xlu0 %v1412_v16 }
 0x3c9   :  { %v4647_v17 = vpop.f32.mrb[0].mxu1 }
 0x3ca   :  { %v4649_v18 = vpop.f32.mrb[1].mxu1  ;;  %v1011_v10 = vmul.f32 1.442695, %v4647_v17  ;;  %vm978_vm12 = vcmp.gt.f32.partialorder %v4647_v17, 0.0 }
 0x3cb   :  { %v1009_v63 = vmul.f32 1.442695, %v4649_v18  ;;  %v993_v21 = vadd.f32 1.0, %v4649_v18  ;;  %vm977_vm10 = vcmp.gt.f32.partialorder %v4649_v18, 0.0 }
 0x3cd   :  { %3886 = vpow2.f32 %v1009_v63 }
 0x3d1   :  { %v4652_v19 = vpop.f32.mrb[2].mxu1 }
 0x3d2   :  { %v4654_v20 = vpop.f32.mrb[3].mxu1  ;;  %v1015_v16 = vmul.f32 1.442695, %v4652_v19  ;;  %vm980_vm14 = vcmp.gt.f32.partialorder %v4652_v19, 0.0 }
 0x3d3   :  { %v1013_v11 = vmul.f32 1.442695, %v4654_v20  ;;  %vm979_vm13 = vcmp.gt.f32.partialorder %v4654_v20, 0.0 }
 0x3d7   :  { %v3887_v2 = vpop.eup %3886 }
 0x3d8   :  { %v1041_v22 = vsel %vm977_vm10, %v993_v21, %v3887_v2 }
 0x3d9   :  { %v4658_v23 = vpop.f32.mrb[4].mxu1  ;;  %3588 = vmatprep.mubr.msk.f32.mxu0 %vm460_vm1, %v1041_v22 }
 0x3da   :  { %v4661_v1 = vpop.f32.mrb[5].mxu1  ;;  %vm982_vm0 = vcmp.gt.f32.partialorder %v4658_v23, 0.0 }
 0x3db   :  { %v1017_v2 = vmul.f32 1.442695, %v4661_v1  ;;  %vm981_vm15 = vcmp.gt.f32.partialorder %v4661_v1, 0.0 }
 0x3e1   :  { %v4663_v24 = vpop.f32.mrb[6].mxu1 }
 0x3e2   :  { %v4665_v25 = vpop.f32.mrb[7].mxu1  ;;  %vm984_vm3 = vcmp.gt.f32.partialorder %v4663_v24, 0.0 }
 0x3e3   :  { %vm983_vm2 = vcmp.gt.f32.partialorder %v4665_v25, 0.0 }
 0x3e5   :  { %v4667_v26 = vpop.f32.mrb[8].mxu1 }
 0x3e6   :  { %v4669_v27 = vpop.f32.mrb[9].mxu1  ;;  %vm986_vm4 = vcmp.gt.f32.partialorder %v4667_v26, 0.0 }
 0x3e7   :  { %v1025_v28 = vmul.f32 1.442695, %v4669_v27  ;;  %v1001_v32 = vadd.f32 1.0, %v4669_v27  ;;  %vm985_vm11 = vcmp.gt.f32.partialorder %v4669_v27, 0.0 }
 0x3e9   :  { %3888 = vpow2.f32 %v1025_v28  ;;  %v4672_v4 = vpop.f32.mrb[10].mxu1  ;;  %v1019_v28 = vmul.f32 1.442695, %v4658_v23 }
 0x3ea   :  { %v4674_v29 = vpop.f32.mrb[11].mxu1  ;;  %3890 = vpow2.f32 %v1011_v10  ;;  %vm988_vm6 = vcmp.gt.f32.partialorder %v4672_v4, 0.0 }
 0x3eb   :  { %3892 = vpow2.f32 %v1013_v11  ;;  %vm987_vm5 = vcmp.gt.f32.partialorder %v4674_v29, 0.0 }
 0x3ec   :  { %3894 = vpow2.f32 %v1015_v16 }
 0x3ed   :  { %v4676_v30 = vpop.f32.mrb[12].mxu1  ;;  %3896 = vpow2.f32 %v1017_v2 }
 0x3ee   :  { %v4678_v31 = vpop.f32.mrb[13].mxu1  ;;  %3898 = vpow2.f32 %v1019_v28  ;;  %v1035_v16 = vmul.f32 1.442695, %v4676_v30  ;;  %vm990_vm8 = vcmp.gt.f32.partialorder %v4676_v30, 0.0 }
 0x3ef   :  { %v1033_v11 = vmul.f32 1.442695, %v4678_v31  ;;  %vm989_vm7 = vcmp.gt.f32.partialorder %v4678_v31, 0.0 }
 0x3f1   :  { %v4682_v3 = vpop.f32.mrb[14].mxu1 }
 0x3f2   :  { %v4684_v33 = vpop.f32.mrb[15].mxu1  ;;  %vm992_vm10 = vcmp.gt.f32.partialorder %v4682_v3, 0.0 }
 0x3f3   :  { %v3889_v34 = vpop.eup %3888  ;;  %vm991_vm9 = vcmp.gt.f32.partialorder %v4684_v33, 0.0 }
 0x3f4   :  { %v1049_v35 = vsel %vm985_vm11, %v1001_v32, %v3889_v34  ;;  %v1021_v32 = vmul.f32 1.442695, %v4665_v25  ;;  %vm2658_vm11 = vcmask 523264  }
 0x3f5   :  { %3608 = vmatprep.mubr.msk.f32.mxu1 %vm460_vm1, %v1049_v35 }
 0x3f6   :  { %3900 = vpow2.f32 %v1021_v32 }
 0x3f8   :  { %v1393_v36 = vpop.xlane.xlu0 %1392 }
 0x3f9   :  { %v1423_v39 = vmul.f32 %v1393_v36, %v4687_v6 }
 0x3fc   :  { %v1396_v38 = vpop.xlane.xlu1 %1395 }
 0x3fd   :  { %v1424_v5 = vmul.f32 %v1396_v38, %v4689_v37 }
 0x3ff   :  { %v3850_v40 = vpack.i.bf16 %v1424_v5, %v1423_v39 }
 0x400   :  { %v1399_v41 = vpop.xlane.xlu0 %1398 }
 0x401   :  { %3851 = vrot.lane.b32.xlu1 %v3850_v40, %s4242_s4  ;;  %v1425_v45 = vmul.f32 %v1399_v41, %v4694_v42  ;;  %v994_v41 = vadd.f32 1.0, %v4647_v17 }
 0x404   :  { %v1402_v44 = vpop.xlane.xlu0 %1401 }
 0x405   :  { %v1426_v46 = vmul.f32 %v1402_v44, %v4696_v43  ;;  %v1023_v44 = vmul.f32 1.442695, %v4663_v24 }
 0x407   :  { %v3855_v47 = vpack.i.bf16 %v1426_v46, %v1425_v45  ;;  %v3891_v46 = vpop.eup %3890  ;;  %3902 = vpow2.f32 %v1023_v44 }
 0x408   :  { %v1405_v48 = vpop.xlane.xlu0 %1404 }
 0x409   :  { %3856 = vrot.lane.b32.xlu0 %v3855_v47, %s4242_s4  ;;  %v1427_v49 = vmul.f32 %v1405_v48, %v4687_v6  ;;  %v995_v47 = vadd.f32 1.0, %v4654_v20  ;;  %v3893_v48 = vpop.eup %3892 }
 0x40b   :  { %v1043_v10 = vsel %vm979_vm13, %v995_v47, %v3893_v48  ;;  %v1004_v47 = vadd.f32 1.0, %v4672_v4 }
 0x40c   :  { %v1408_v50 = vpop.xlane.xlu0 %1407 }
 0x40d   :  { %v1428_v51 = vmul.f32 %v1408_v50, %v4689_v37  ;;  %v1027_v50 = vmul.f32 1.442695, %v4667_v26 }
 0x40f   :  { %v3860_v52 = vpack.i.bf16 %v1428_v51, %v1427_v49  ;;  %v1411_v53 = vpop.xlane.xlu1 %1410  ;;  %v996_v49 = vadd.f32 1.0, %v4652_v19  ;;  %v1042_v51 = vsel %vm978_vm12, %v994_v41, %v3891_v46  ;;  %3904 = vpow2.f32 %v1027_v50 }
 0x410   :  { %v1429_v54 = vmul.f32 %v1411_v53, %v4694_v42 }
 0x411   :  { %3861 = vrot.lane.b32.xlu1 %v3860_v52, %s4242_s4  ;;  %v1029_v52 = vmul.f32 1.442695, %v4674_v29 }
 0x413   :  { %v1414_v55 = vpop.xlane.xlu0 %1413  ;;  %3906 = vpow2.f32 %v1029_v52 }
 0x414   :  { %v1430_v56 = vmul.f32 %v1414_v55, %v4696_v43 }
 0x416   :  { %v3865_v57 = vpack.i.bf16 %v1430_v56, %v1429_v54  ;;  %v3895_v54 = vpop.eup %3894 }
 0x418   :  { %3866 = vrot.lane.b32.xlu1 %v3865_v57, %s4242_s4 }
 0x441   :  { %v3562_v58 = vpop.f32.mrb[16].mxu1 }
 0x442   :  { %v1259_v59 = vpop.f32.mrb[17].mxu1  ;;  %v1416_v13 = vmul.f32 %v3562_v58, %v4689_v37 }
 0x443   :  { %v1415_v14 = vmul.f32 %v1259_v59, %v4687_v6  ;;  %v3897_v59 = vpop.eup %3896 }
 0x449   :  { %v3565_v60 = vpop.f32.mrb[18].mxu1 }
 0x44a   :  { %v1269_v61 = vpop.f32.mrb[19].mxu1  ;;  %v1418_v35 = vmul.f32 %v3565_v60, %v4696_v43  ;;  %v997_v60 = vadd.f32 1.0, %v4661_v1 }
 0x44b   :  { %v1417_v36 = vmul.f32 %v1269_v61, %v4694_v42  ;;  %v1031_v61 = vmul.f32 1.442695, %v4672_v4 }
 0x44d   :  { %3908 = vpow2.f32 %v1031_v61 }
 0x44e   :  { %3910 = vpow2.f32 %v1033_v11  ;;  %v1858_v11 = vld [vmem:[#allocation10 + $0x8] sm:$0xff] }
 0x44f   :  { %3912 = vpow2.f32 %v1035_v16 }
 0x450   :  { %v3576_v62 = vpop.f32.mrb[20].mxu1 }
 0x451   :  { %v1372_v7 = vpop.f32.mrb[21].mxu1  ;;  %v1420_v55 = vmul.f32 %v3576_v62, %v4689_v37 }
 0x452   :  { %v1419_v56 = vmul.f32 %v1372_v7, %v4687_v6  ;;  %v998_v7 = vadd.f32 1.0, %v4658_v23 }
 0x458   :  { %v4707_v8 = vpop.f32.mrb[22].mxu1 }
 0x459   :  { %v4709_v9 = vpop.f32.mrb[23].mxu1  ;;  %v1422_v2 = vmul.f32 %v4707_v8, %v4696_v43  ;;  %v1039_v43 = vmul.f32 1.442695, %v4682_v3  ;;  %v1002_v8 = vadd.f32 1.0, %v4667_v26 }
 0x473   :  { %v3852_v12 = vpop.permute.xlu1 %3851 }
 0x474   :  { %v3854_v15 = vunpack.i.h.bf16 %v3852_v12  ;;  %v3853_v0 = vunpack.i.l.bf16 %v3852_v12  ;;  %v1044_v12 = vsel %vm980_vm14, %v996_v49, %v3895_v54  ;;  %v1005_v49 = vadd.f32 1.0, %v4678_v31 }
 0x475   :  { %v1007_v54 = vadd.f32 1.0, %v4684_v33 }
 0x476   :  { %v1463_v63 = vsel %vm460_vm1, %v1415_v14, %v3853_v0  ;;  %v1464_v21 = vsel %vm460_vm1, %v1416_v13, %v3854_v15  ;;  %v3899_v13 = vpop.eup %3898  ;;  %v999_v14 = vadd.f32 1.0, %v4665_v25  ;;  %v1045_v15 = vsel %vm981_vm15, %v997_v60, %v3897_v59 }
 0x477   :  { %v3764_v22 = vpack.c.bf16 %v1464_v21, %v1463_v63  ;;  %v3901_v0 = vpop.eup %3900  ;;  %v1037_v63 = vmul.f32 1.442695, %v4684_v33 }
 0x479   :  { %3765 = vmatprep.subr.bf16.mxu0 %v3764_v22  ;;  %3914 = vpow2.f32 %v1037_v63 }
 0x47a   :  { %3767 = vmatpush3.bf16.msra.mxu0 %v3764_v22  ;;  %v1421_v22 = vmul.f32 %v4709_v9, %v4694_v42  ;;  %3916 = vpow2.f32 %v1039_v43 }
 0x47b   :  { %v3857_v34 = vpop.permute.xlu0 %3856 }
 0x47c   :  { %v3859_v38 = vunpack.i.h.bf16 %v3857_v34  ;;  %v3858_v39 = vunpack.i.l.bf16 %v3857_v34  ;;  %v1000_v34 = vadd.f32 1.0, %v4663_v24 }
 0x47e   :  { %v1465_v5 = vsel %vm460_vm1, %v1417_v36, %v3858_v39  ;;  %v1466_v40 = vsel %vm460_vm1, %v1418_v35, %v3859_v38  ;;  %v1046_v35 = vsel %vm982_vm0, %v998_v7, %v3899_v13  ;;  %v3903_v36 = vpop.eup %3902  ;;  %v1047_v38 = vsel %vm983_vm2, %v999_v14, %v3901_v0 }
 0x47f   :  { %v3768_v45 = vpack.c.bf16 %v1466_v40, %v1465_v5  ;;  %v3905_v9 = vpop.eup %3904  ;;  %v1003_v40 = vadd.f32 1.0, %v4674_v29  ;;  %v1048_v41 = vsel %vm984_vm3, %v1000_v34, %v3903_v36 }
 0x480   :  { %v3907_v44 = vpop.eup %3906  ;;  %v1050_v46 = vsel %vm986_vm4, %v1002_v8, %v3905_v9 }
 0x481   :  { %3769 = vmatprep.subr.bf16.mxu0 %v3768_v45  ;;  %v1051_v50 = vsel %vm987_vm5, %v1003_v40, %v3907_v44 }
 0x482   :  { %3771 = vmatpush3.bf16.msra.mxu0 %v3768_v45  ;;  %v3909_v45 = vpop.eup %3908 }
 0x483   :  { %v3862_v53 = vpop.permute.xlu1 %3861  ;;  %v3911_v48 = vpop.eup %3910  ;;  %v1052_v52 = vsel %vm988_vm6, %v1004_v47, %v3909_v45 }
 0x484   :  { %v3864_v57 = vunpack.i.h.bf16 %v3862_v53  ;;  %v3863_v58 = vunpack.i.l.bf16 %v3862_v53  ;;  %v3913_v53 = vpop.eup %3912 }
 0x485   :  { %3589 = vmatmul.mubr.msk.f32.vlgmr.msra.gmra.mrb[24].mxu0 %vm460_vm1, %v1042_v51  ;;  %v1006_v51 = vadd.f32 1.0, %v4676_v30 }
 0x486   :  { %3591 = vmatprep.mubr.msk.f32.mxu0 %vm460_vm1, %v1043_v10  ;;  %v1467_v37 = vsel %vm460_vm1, %v1419_v56, %v3863_v58  ;;  %v1468_v6 = vsel %vm460_vm1, %v1420_v55, %v3864_v57  ;;  %v1053_v55 = vsel %vm989_vm7, %v1005_v49, %v3911_v48  ;;  %v3915_v56 = vpop.eup %3914  ;;  %v1008_v57 = vadd.f32 1.0, %v4682_v3  ;;  %v1857_v10 = vld [vmem:[#allocation10] sm:$0xff] }
 0x487   :  { %v3772_v62 = vpack.c.bf16 %v1468_v6, %v1467_v37  ;;  %v1054_v58 = vsel %vm990_vm8, %v1006_v51, %v3913_v53  ;;  %v3917_v59 = vpop.eup %3916  ;;  %v1055_v60 = vsel %vm991_vm9, %v1007_v54, %v3915_v56  ;;  %v3780_v37 = vpack.c.bf16 %v1858_v11, %v1857_v10  ;;  %v1859_v6 = vld [vmem:[#allocation10 + $0x10] sm:$0xff] }
 0x488   :  { %v1056_v61 = vsel %vm992_vm10, %v1008_v57, %v3917_v59 }
 0x489   :  { %3592 = vmatmul.mubr.msk.f32.gmra.mrb[26].mxu0 %vm460_vm1, %v1044_v12  ;;  %3773 = vmatprep.subr.bf16.mxu1 %v3772_v62 }
 0x48a   :  { %v3867_v21 = vpop.permute.xlu1 %3866  ;;  %3594 = vmatprep.mubr.msk.f32.mxu0 %vm460_vm1, %v1045_v15  ;;  %3775 = vmatpush3.bf16.msra.mxu1 %v3772_v62  ;;  %v1860_v62 = vld [vmem:[#allocation10 + $0x18] sm:$0xff] }
 0x48b   :  { %v3869_v28 = vunpack.i.h.bf16 %v3867_v21  ;;  %v3868_v32 = vunpack.i.l.bf16 %v3867_v21  ;;  %3781 = vmatprep.subr.bf16.mxu0 %v3780_v37  ;;  %v3784_v12 = vpack.c.bf16 %v1860_v62, %v1859_v6 }
 0x48c   :  { %3783 = vmatpush3.bf16.msra.mxu0 %v3780_v37 }
 0x48d   :  { %3595 = vmatmul.mubr.msk.f32.gmra.mrb[28].mxu0 %vm460_vm1, %v1046_v35  ;;  %v1469_v39 = vsel %vm460_vm1, %v1421_v22, %v3868_v32  ;;  %v1470_v5 = vsel %vm460_vm1, %v1422_v2, %v3869_v28  ;;  %3785 = vmatprep.subr.bf16.mxu0 %v3784_v12 }
 0x48e   :  { %3597 = vmatprep.mubr.msk.f32.mxu0 %vm460_vm1, %v1047_v38  ;;  %v3776_v42 = vpack.c.bf16 %v1470_v5, %v1469_v39 }
 0x490   :  { %3777 = vmatprep.subr.bf16.mxu1 %v3776_v42  ;;  %3787 = vmatpush3.bf16.msra.mxu0 %v3784_v12 }
 0x491   :  { %3598 = vmatmul.mubr.msk.f32.gmra.mrb[30].mxu0 %vm460_vm1, %v1048_v41  ;;  %3779 = vmatpush3.bf16.msra.mxu1 %v3776_v42 }
 0x492   :  { %3812 = vmatprep.subr.bf16.mxu1 %v3780_v37 }
 0x494   :  { %3609 = vmatmul.mubr.msk.f32.vlgmr.msra.gmra.mrb[24].mxu1 %vm460_vm1, %v1050_v46 }
 0x495   :  { %3611 = vmatprep.mubr.msk.f32.mxu1 %vm460_vm1, %v1051_v50  ;;  %3814 = vmatpush3.bf16.msra.mxu1 %v3780_v37 }
 0x496   :  { %3813 = vmatprep.subr.bf16.mxu1 %v3784_v12 }
 0x498   :  { %3612 = vmatmul.mubr.msk.f32.gmra.mrb[26].mxu1 %vm460_vm1, %v1052_v52 }
 0x499   :  { %3614 = vmatprep.mubr.msk.f32.mxu1 %vm460_vm1, %v1053_v55  ;;  %3815 = vmatpush3.bf16.msra.mxu1 %v3784_v12 }
 0x49c   :  { %3615 = vmatmul.mubr.msk.f32.gmra.mrb[28].mxu1 %vm460_vm1, %v1054_v58 }
 0x49d   :  { %3617 = vmatprep.mubr.msk.f32.mxu1 %vm460_vm1, %v1055_v60 }
 0x4a0   :  { %3618 = vmatmul.mubr.msk.f32.gmra.mrb[30].mxu1 %vm460_vm1, %v1056_v61 }
 0x558   :  { %v4787_v7 = vpop.f32.mrb[24].mxu0 }
 0x559   :  { %v1730_v13 = vadd.f32 1e-06, %v4787_v7  ;;  %v4790_v14 = vpop.f32.mrb[25].mxu0 }
 0x55a   :  { %v1729_v15 = vadd.f32 1e-06, %v4790_v14 }
 0x55b   :  { %3918 = vrcp.f32 %v1730_v13 }
 0x55c   :  { %3920 = vrcp.f32 %v1729_v15  ;;  %v4793_v0 = vpop.f32.mrb[26].mxu0 }
 0x55d   :  { %v1732_v16 = vadd.f32 1e-06, %v4793_v0  ;;  %v4796_v63 = vpop.f32.mrb[27].mxu0 }
 0x55e   :  { %v1731_v21 = vadd.f32 1e-06, %v4796_v63 }
 0x55f   :  { %3922 = vrcp.f32 %v1732_v16 }
 0x560   :  { %3924 = vrcp.f32 %v1731_v21  ;;  %v4799_v2 = vpop.f32.mrb[28].mxu0 }
 0x561   :  { %v1734_v22 = vadd.f32 1e-06, %v4799_v2  ;;  %v4802_v28 = vpop.f32.mrb[29].mxu0 }
 0x562   :  { %v1733_v32 = vadd.f32 1e-06, %v4802_v28 }
 0x563   :  { %3926 = vrcp.f32 %v1734_v22 }
 0x564   :  { %3928 = vrcp.f32 %v1733_v32  ;;  %v4805_v34 = vpop.f32.mrb[30].mxu0 }
 0x565   :  { %v3919_v35 = vpop.eup %3918  ;;  %v1736_v36 = vadd.f32 1e-06, %v4805_v34  ;;  %v4808_v38 = vpop.f32.mrb[31].mxu0 }
 0x566   :  { %v3921_v39 = vpop.eup %3920  ;;  %v1735_v5 = vadd.f32 1e-06, %v4808_v38  ;;  %1795 = vrot.lane.b32.xlu1 %v3919_v35, %s4243_s28 }
 0x567   :  { %3930 = vrcp.f32 %v1736_v36  ;;  %1793 = vrot.lane.b32.xlu0 %v3921_v39, %s4243_s28  ;;  %v4813_v43 = vpop.f32.mrb[24].mxu1 }
 0x568   :  { %3932 = vrcp.f32 %v1735_v5  ;;  %v1738_v42 = vadd.f32 1e-06, %v4813_v43  ;;  %v4816_v8 = vpop.f32.mrb[25].mxu1 }
 0x569   :  { %v3923_v9 = vpop.eup %3922  ;;  %v1737_v40 = vadd.f32 1e-06, %v4816_v8 }
 0x56a   :  { %v3925_v41 = vpop.eup %3924  ;;  %3934 = vrcp.f32 %v1738_v42  ;;  %1799 = vrot.lane.b32.xlu1 %v3923_v9, %s4243_s28 }
 0x56b   :  { %3936 = vrcp.f32 %v1737_v40  ;;  %1797 = vrot.lane.b32.xlu0 %v3925_v41, %s4243_s28  ;;  %v4821_v44 = vpop.f32.mrb[26].mxu1 }
 0x56c   :  { %v1740_v45 = vadd.f32 1e-06, %v4821_v44  ;;  %v4824_v46 = vpop.f32.mrb[27].mxu1 }
 0x56d   :  { %v3927_v47 = vpop.eup %3926  ;;  %v1739_v48 = vadd.f32 1e-06, %v4824_v46 }
 0x56e   :  { %v3929_v49 = vpop.eup %3928  ;;  %3938 = vrcp.f32 %v1740_v45  ;;  %1803 = vrot.lane.b32.xlu1 %v3927_v47, %s4243_s28 }
 0x56f   :  { %3940 = vrcp.f32 %v1739_v48  ;;  %1801 = vrot.lane.b32.xlu0 %v3929_v49, %s4243_s28  ;;  %v4829_v50 = vpop.f32.mrb[28].mxu1 }
 0x570   :  { %v1742_v51 = vadd.f32 1e-06, %v4829_v50  ;;  %v4832_v52 = vpop.f32.mrb[29].mxu1 }
 0x571   :  { %v3931_v53 = vpop.eup %3930  ;;  %v1741_v54 = vadd.f32 1e-06, %v4832_v52 }
 0x572   :  { %v3933_v55 = vpop.eup %3932  ;;  %3942 = vrcp.f32 %v1742_v51  ;;  %1807 = vrot.lane.b32.xlu1 %v3931_v53, %s4243_s28 }
 0x573   :  { %3944 = vrcp.f32 %v1741_v54  ;;  %1805 = vrot.lane.b32.xlu0 %v3933_v55, %s4243_s28  ;;  %v4837_v56 = vpop.f32.mrb[30].mxu1 }
 0x574   :  { %v3935_v57 = vpop.eup %3934  ;;  %v1744_v58 = vadd.f32 1e-06, %v4837_v56  ;;  %v4840_v59 = vpop.f32.mrb[31].mxu1 }
 0x575   :  { %v3937_v60 = vpop.eup %3936  ;;  %v1743_v61 = vadd.f32 1e-06, %v4840_v59 }
 0x576   :  { %3946 = vrcp.f32 %v1744_v58  ;;  %1811 = vrot.lane.b32.xlu1 %v3935_v57, %s4243_s28 }
 0x577   :  { %3948 = vrcp.f32 %v1743_v61  ;;  %1809 = vrot.lane.b32.xlu0 %v3937_v60, %s4243_s28 }
 0x578   :  { %v3939_v10 = vpop.eup %3938 }
 0x579   :  { %v3941_v11 = vpop.eup %3940 }
 0x57a   :  { %1815 = vrot.lane.b32.xlu1 %v3939_v10, %s4243_s28 }
 0x57b   :  { %1813 = vrot.lane.b32.xlu0 %v3941_v11, %s4243_s28 }
 0x57c   :  { %v3943_v37 = vpop.eup %3942 }
 0x57d   :  { %v3945_v6 = vpop.eup %3944 }
 0x57e   :  { %1819 = vrot.lane.b32.xlu1 %v3943_v37, %s4243_s28 }
 0x57f   :  { %1817 = vrot.lane.b32.xlu0 %v3945_v6, %s4243_s28 }
 0x580   :  { %v3947_v62 = vpop.eup %3946 }
 0x581   :  { %v3949_v12 = vpop.eup %3948 }
 0x582   :  { %1823 = vrot.lane.b32.xlu1 %v3947_v62, %s4243_s28 }
 0x583   :  { %1821 = vrot.lane.b32.xlu0 %v3949_v12, %s4243_s28 }
 0x5d8   :  { %v1796_v13 = vpop.permute.xlu1 %1795 }
 0x5d9   :  { %v1794_v15 = vpop.permute.xlu0 %1793  ;;  %v1842_v21 = vmul.f32 %v4787_v7, %v1796_v13 }
 0x5da   :  { %v1841_v16 = vmul.f32 %v1794_v15, %v4790_v14 }
 0x5dc   :  { %3628 = vmatprep.mubr.msk.f32.mxu0 %vm460_vm1, %v1841_v16  ;;  %v1800_v22 = vpop.permute.xlu1 %1799 }
 0x5dd   :  { %3629 = vmatmul.mubr.msk.f32.vlgmr.msra.gmra.mrb[32].mxu0 %vm460_vm1, %v1842_v21  ;;  %v1798_v32 = vpop.permute.xlu0 %1797  ;;  %v1844_v36 = vmul.f32 %v4793_v0, %v1800_v22 }
 0x5de   :  { %v1843_v35 = vmul.f32 %v1798_v32, %v4796_v63 }
 0x5e0   :  { %3631 = vmatprep.mubr.msk.f32.mxu0 %vm460_vm1, %v1843_v35  ;;  %v1804_v39 = vpop.permute.xlu1 %1803 }
 0x5e1   :  { %3632 = vmatmul.mubr.msk.f32.gmra.mrb[34].mxu0 %vm460_vm1, %v1844_v36  ;;  %v1802_v5 = vpop.permute.xlu0 %1801  ;;  %v1846_v7 = vmul.f32 %v4799_v2, %v1804_v39 }
 0x5e2   :  { %v1845_v14 = vmul.f32 %v1802_v5, %v4802_v28 }
 0x5e4   :  { %3634 = vmatprep.mubr.msk.f32.mxu0 %vm460_vm1, %v1845_v14  ;;  %v1808_v42 = vpop.permute.xlu1 %1807 }
 0x5e5   :  { %3635 = vmatmul.mubr.msk.f32.gmra.mrb[36].mxu0 %vm460_vm1, %v1846_v7  ;;  %v1806_v9 = vpop.permute.xlu0 %1805  ;;  %v1848_v0 = vmul.f32 %v4805_v34, %v1808_v42 }
 0x5e6   :  { %v1847_v63 = vmul.f32 %v1806_v9, %v4808_v38 }
 0x5e8   :  { %3637 = vmatprep.mubr.msk.f32.mxu0 %vm460_vm1, %v1847_v63  ;;  %v1812_v40 = vpop.permute.xlu1 %1811 }
 0x5e9   :  { %3638 = vmatmul.mubr.msk.f32.gmra.mrb[38].mxu0 %vm460_vm1, %v1848_v0  ;;  %v1810_v41 = vpop.permute.xlu0 %1809  ;;  %v1850_v2 = vmul.f32 %v4813_v43, %v1812_v40 }
 0x5ea   :  { %v1849_v28 = vmul.f32 %v1810_v41, %v4816_v8 }
 0x5ec   :  { %3640 = vmatprep.mubr.msk.f32.mxu0 %vm460_vm1, %v1849_v28  ;;  %v1816_v45 = vpop.permute.xlu1 %1815 }
 0x5ed   :  { %3641 = vmatmul.mubr.msk.f32.gmra.mrb[40].mxu0 %vm460_vm1, %v1850_v2  ;;  %v1814_v47 = vpop.permute.xlu0 %1813  ;;  %v1852_v34 = vmul.f32 %v4821_v44, %v1816_v45 }
 0x5ee   :  { %v1851_v38 = vmul.f32 %v1814_v47, %v4824_v46 }
 0x5f0   :  { %3643 = vmatprep.mubr.msk.f32.mxu1 %vm460_vm1, %v1851_v38  ;;  %v1820_v48 = vpop.permute.xlu1 %1819 }
 0x5f1   :  { %3644 = vmatmul.mubr.msk.f32.vlgmr.msra.gmra.mrb[32].mxu1 %vm460_vm1, %v1852_v34  ;;  %v1818_v49 = vpop.permute.xlu0 %1817  ;;  %v1854_v43 = vmul.f32 %v4829_v50, %v1820_v48 }
 0x5f2   :  { %v1853_v8 = vmul.f32 %v1818_v49, %v4832_v52 }
 0x5f4   :  { %3646 = vmatprep.mubr.msk.f32.mxu1 %vm460_vm1, %v1853_v8  ;;  %v1824_v51 = vpop.permute.xlu1 %1823 }
 0x5f5   :  { %3647 = vmatmul.mubr.msk.f32.gmra.mrb[34].mxu1 %vm460_vm1, %v1854_v43  ;;  %v1822_v53 = vpop.permute.xlu0 %1821  ;;  %v1856_v44 = vmul.f32 %v4837_v56, %v1824_v51 }
 0x5f6   :  { %v1855_v46 = vmul.f32 %v1822_v53, %v4840_v59 }
 0x5f8   :  { %3649 = vmatprep.mubr.msk.f32.mxu1 %vm460_vm1, %v1855_v46 }
 0x5f9   :  { %3650 = vmatmul.mubr.msk.f32.gmra.mrb[36].mxu1 %vm460_vm1, %v1856_v44 }
 0x6b0   :  { %v3630_v54 = vpop.f32.mrb[32].mxu0 }
 0x6b1   :  { %v1975_v55 = vpop.f32.mrb[33].mxu0  ;;  %v2059_v52 = vsel %vm460_vm1, %v3630_v54, 0.0 }
 0x6b2   :  { %2060 = vadd.xlane.f32.xlu1 %v2059_v52  ;;  %v2056_v50 = vsel %vm460_vm1, %v1975_v55, 0.0 }
 0x6b3   :  { %2057 = vadd.xlane.f32.xlu0 %v2056_v50 }
 0x6b4   :  { %v4885_v57 = vpop.f32.mrb[34].mxu0 }
 0x6b5   :  { %v1985_v58 = vpop.f32.mrb[35].mxu0  ;;  %v2065_v10 = vsel %vm460_vm1, %v4885_v57, 0.0 }
 0x6b6   :  { %v2062_v60 = vsel %vm460_vm1, %v1985_v58, 0.0 }
 0x6b7   :  { %2063 = vadd.xlane.f32.xlu0 %v2062_v60 }
 0x6b8   :  { %v4888_v59 = vpop.f32.mrb[36].mxu0 }
 0x6b9   :  { %v1995_v56 = vpop.f32.mrb[37].mxu0  ;;  %v2071_v62 = vsel %vm460_vm1, %v4888_v59, 0.0 }
 0x6ba   :  { %v2068_v61 = vsel %vm460_vm1, %v1995_v56, 0.0 }
 0x6bb   :  { %2069 = vadd.xlane.f32.xlu1 %v2068_v61  ;;  %2066 = vadd.xlane.f32.xlu0 %v2065_v10 }
 0x6bc   :  { %v4893_v11 = vpop.f32.mrb[38].mxu0 }
 0x6bd   :  { %v2005_v37 = vpop.f32.mrb[39].mxu0  ;;  %v2077_v16 = vsel %vm460_vm1, %v4893_v11, 0.0 }
 0x6be   :  { %v2074_v6 = vsel %vm460_vm1, %v2005_v37, 0.0 }
 0x6bf   :  { %2075 = vadd.xlane.f32.xlu1 %v2074_v6  ;;  %2072 = vadd.xlane.f32.xlu0 %v2071_v62 }
 0x6c0   :  { %v4898_v12 = vpop.f32.mrb[40].mxu0 }
 0x6c1   :  { %v4900_v13 = vpop.f32.mrb[41].mxu0  ;;  %v2083_v35 = vsel %vm460_vm1, %v4898_v12, 0.0 }
 0x6c2   :  { %v2080_v15 = vsel %vm460_vm1, %v4900_v13, 0.0 }
 0x6c3   :  { %2081 = vadd.xlane.f32.xlu1 %v2080_v15  ;;  %2078 = vadd.xlane.f32.xlu0 %v2077_v16 }
 0x6c4   :  { %v4906_v21 = vpop.f32.mrb[32].mxu1 }
 0x6c5   :  { %v4908_v22 = vpop.f32.mrb[33].mxu1  ;;  %v2089_v14 = vsel %vm460_vm1, %v4906_v21, 0.0 }
 0x6c6   :  { %v2086_v32 = vsel %vm460_vm1, %v4908_v22, 0.0 }
 0x6c7   :  { %2087 = vadd.xlane.f32.xlu1 %v2086_v32  ;;  %2084 = vadd.xlane.f32.xlu0 %v2083_v35 }
 0x6c8   :  { %v4914_v36 = vpop.f32.mrb[34].mxu1 }
 0x6c9   :  { %v4916_v39 = vpop.f32.mrb[35].mxu1  ;;  %v2095_v9 = vsel %vm460_vm1, %v4914_v36, 0.0 }
 0x6ca   :  { %v2092_v5 = vsel %vm460_vm1, %v4916_v39, 0.0 }
 0x6cb   :  { %2093 = vadd.xlane.f32.xlu1 %v2092_v5  ;;  %2090 = vadd.xlane.f32.xlu0 %v2089_v14 }
 0x6cc   :  { %v4922_v7 = vpop.f32.mrb[36].mxu1 }
 0x6cd   :  { %v4924_v42 = vpop.f32.mrb[37].mxu1  ;;  %v2101_v0 = vsel %vm460_vm1, %v4922_v7, 0.0 }
 0x6ce   :  { %v2098_v63 = vsel %vm460_vm1, %v4924_v42, 0.0 }
 0x6cf   :  { %2096 = vadd.xlane.f32.xlu0 %v2095_v9  ;;  %2099 = vadd.xlane.f32.xlu1 %v2098_v63 }
 0x6d3   :  { %2102 = vadd.xlane.f32.xlu0 %v2101_v0 }
 0x73f   :  { %v2061_v40 = vpop.xlane.xlu1 %2060 }
 0x740   :  { %v2106_v41 = vmul.f32 0.03125, %v2061_v40  ;;  %v2058_v28 = vpop.xlane.xlu0 %2057 }
 0x741   :  { %v2105_v2 = vmul.f32 0.03125, %v2058_v28 }
 0x742   :  { %v4932_v45 = vsub.f32 %v3630_v54, %v2106_v41 }
 0x743   :  { %v4934_v47 = vsub.f32 %v1975_v55, %v2105_v2 }
 0x744   :  { %v2064_v38 = vpop.xlane.xlu0 %2063  ;;  %v2138_v34 = vmul.f32 %v4932_v45, %v4932_v45 }
 0x745   :  { %v2107_v48 = vmul.f32 0.03125, %v2064_v38  ;;  %v2137_v49 = vmul.f32 %v4934_v47, %v4934_v47 }
 0x746   :  { %v2156_v8 = vsel %vm460_vm1, %v2138_v34, 0.0 }
 0x747   :  { %v4941_v43 = vsub.f32 %v1985_v58, %v2107_v48  ;;  %2157 = vadd.xlane.f32.xlu0 %v2156_v8  ;;  %v2153_v51 = vsel %vm460_vm1, %v2137_v49, 0.0 }
 0x748   :  { %v2070_v53 = vpop.xlane.xlu1 %2069  ;;  %2154 = vadd.xlane.f32.xlu1 %v2153_v51  ;;  %v2067_v46 = vpop.xlane.xlu0 %2066 }
 0x749   :  { %v2109_v44 = vmul.f32 0.03125, %v2070_v53  ;;  %v2108_v54 = vmul.f32 0.03125, %v2067_v46  ;;  %v2139_v55 = vmul.f32 %v4941_v43, %v4941_v43 }
 0x74b   :  { %v4946_v52 = vsub.f32 %v1995_v56, %v2109_v44  ;;  %v4949_v50 = vsub.f32 %v4885_v57, %v2108_v54  ;;  %v2159_v60 = vsel %vm460_vm1, %v2139_v55, 0.0 }
 0x74c   :  { %v2076_v58 = vpop.xlane.xlu1 %2075  ;;  %2160 = vadd.xlane.f32.xlu1 %v2159_v60  ;;  %v2073_v61 = vpop.xlane.xlu0 %2072 }
 0x74d   :  { %v2111_v10 = vmul.f32 0.03125, %v2076_v58  ;;  %v2110_v6 = vmul.f32 0.03125, %v2073_v61  ;;  %v2141_v62 = vmul.f32 %v4946_v52, %v4946_v52  ;;  %v2140_v15 = vmul.f32 %v4949_v50, %v4949_v50 }
 0x74f   :  { %v4956_v16 = vsub.f32 %v2005_v37, %v2111_v10  ;;  %v4959_v56 = vsub.f32 %v4888_v59, %v2110_v6  ;;  %v2165_v57 = vsel %vm460_vm1, %v2141_v62, 0.0  ;;  %v2162_v32 = vsel %vm460_vm1, %v2140_v15, 0.0 }
 0x750   :  { %v2082_v35 = vpop.xlane.xlu1 %2081  ;;  %2166 = vadd.xlane.f32.xlu1 %v2165_v57  ;;  %2163 = vadd.xlane.f32.xlu0 %v2162_v32  ;;  %v2079_v5 = vpop.xlane.xlu0 %2078 }
 0x751   :  { %v2113_v14 = vmul.f32 0.03125, %v2082_v35  ;;  %v2112_v9 = vmul.f32 0.03125, %v2079_v5  ;;  %v2143_v63 = vmul.f32 %v4956_v16, %v4956_v16  ;;  %v2142_v37 = vmul.f32 %v4959_v56, %v4959_v56 }
 0x753   :  { %v4968_v0 = vsub.f32 %v4900_v13, %v2113_v14  ;;  %v4971_v59 = vsub.f32 %v4893_v11, %v2112_v9  ;;  %v2171_v40 = vsel %vm460_vm1, %v2143_v63, 0.0  ;;  %v2168_v41 = vsel %vm460_vm1, %v2142_v37, 0.0 }
 0x754   :  { %v2088_v28 = vpop.xlane.xlu1 %2087  ;;  %2172 = vadd.xlane.f32.xlu1 %v2171_v40  ;;  %2169 = vadd.xlane.f32.xlu0 %v2168_v41  ;;  %v2085_v2 = vpop.xlane.xlu0 %2084 }
 0x755   :  { %v2115_v38 = vmul.f32 0.03125, %v2088_v28  ;;  %v2114_v34 = vmul.f32 0.03125, %v2085_v2  ;;  %v2145_v48 = vmul.f32 %v4968_v0, %v4968_v0  ;;  %v2144_v13 = vmul.f32 %v4971_v59, %v4971_v59 }
 0x757   :  { %v4980_v49 = vsub.f32 %v4908_v22, %v2115_v38  ;;  %v4983_v11 = vsub.f32 %v4898_v12, %v2114_v34  ;;  %v2177_v8 = vsel %vm460_vm1, %v2145_v48, 0.0  ;;  %v2174_v51 = vsel %vm460_vm1, %v2144_v13, 0.0  ;;  %v2311_v34 = vld [vmem:[%s5441_s13 + $0x10] sm:$0xff] }
 0x758   :  { %v2094_v53 = vpop.xlane.xlu1 %2093  ;;  %2178 = vadd.xlane.f32.xlu1 %v2177_v8  ;;  %2175 = vadd.xlane.f32.xlu0 %v2174_v51  ;;  %v2091_v46 = vpop.xlane.xlu0 %2090 }
 0x759   :  { %v2117_v44 = vmul.f32 0.03125, %v2094_v53  ;;  %v2116_v54 = vmul.f32 0.03125, %v2091_v46  ;;  %v2147_v55 = vmul.f32 %v4980_v49, %v4980_v49  ;;  %v2146_v22 = vmul.f32 %v4983_v11, %v4983_v11 }
 0x75b   :  { %v4992_v60 = vsub.f32 %v4916_v39, %v2117_v44  ;;  %v4995_v12 = vsub.f32 %v4906_v21, %v2116_v54  ;;  %v2183_v58 = vsel %vm460_vm1, %v2147_v55, 0.0  ;;  %v2180_v61 = vsel %vm460_vm1, %v2146_v22, 0.0 }
 0x75c   :  { %v2100_v10 = vpop.xlane.xlu1 %2099  ;;  %2184 = vadd.xlane.f32.xlu1 %v2183_v58  ;;  %2181 = vadd.xlane.f32.xlu0 %v2180_v61  ;;  %v2097_v6 = vpop.xlane.xlu0 %2096 }
 0x75d   :  { %v2119_v62 = vmul.f32 0.03125, %v2100_v10  ;;  %v2118_v15 = vmul.f32 0.03125, %v2097_v6  ;;  %v2149_v57 = vmul.f32 %v4992_v60, %v4992_v60  ;;  %v2148_v39 = vmul.f32 %v4995_v12, %v4995_v12 }
 0x75f   :  { %v5004_v32 = vsub.f32 %v4924_v42, %v2119_v62  ;;  %v5007_v21 = vsub.f32 %v4914_v36, %v2118_v15  ;;  %v2189_v35 = vsel %vm460_vm1, %v2149_v57, 0.0  ;;  %v2186_v5 = vsel %vm460_vm1, %v2148_v39, 0.0  ;;  %v2309_v42 = vld [vmem:[%s5441_s13] sm:$0xff]  ;;  %v2310_v36 = vld [vmem:[%s5441_s13 + $0x8] sm:$0xff] }
 0x760   :  { %2190 = vadd.xlane.f32.xlu1 %v2189_v35  ;;  %2187 = vadd.xlane.f32.xlu0 %v2186_v5  ;;  %v2103_v14 = vpop.xlane.xlu0 %2102  ;;  %v3788_v2 = vpack.c.bf16 %v2310_v36, %v2309_v42 }
 0x761   :  { %v2120_v9 = vmul.f32 0.03125, %v2103_v14  ;;  %v2151_v63 = vmul.f32 %v5004_v32, %v5004_v32  ;;  %v2150_v37 = vmul.f32 %v5007_v21, %v5007_v21 }
 0x762   :  { %3789 = vmatprep.subr.bf16.mxu1 %v3788_v2 }
 0x763   :  { %v5022_v40 = vsub.f32 %v4922_v7, %v2120_v9  ;;  %v2195_v41 = vsel %vm460_vm1, %v2151_v63, 0.0  ;;  %v2192_v28 = vsel %vm460_vm1, %v2150_v37, 0.0  ;;  %3791 = vmatpush3.bf16.msra.mxu1 %v3788_v2  ;;  %v2312_v7 = vld [vmem:[%s5441_s13 + $0x18] sm:$0xff]  ;;  %v5035_v63 = vld [vmem:[#allocation13] ss:$0 sm:$0xff] }
 0x764   :  { %2196 = vadd.xlane.f32.xlu1 %v2195_v41  ;;  %2193 = vadd.xlane.f32.xlu0 %v2192_v28  ;;  %v3792_v13 = vpack.c.bf16 %v2312_v7, %v2311_v34  ;;  %v5039_v34 = vld [vmem:[#allocation14] ss:$0 sm:$0xff] }
 0x765   :  { %v2152_v38 = vmul.f32 %v5022_v40, %v5022_v40 }
 0x766   :  { %3793 = vmatprep.subr.bf16.mxu1 %v3792_v13 }
 0x767   :  { %v2198_v48 = vsel %vm460_vm1, %v2152_v38, 0.0  ;;  %3795 = vmatpush3.bf16.msra.mxu1 %v3792_v13 }
 0x768   :  { %2199 = vadd.xlane.f32.xlu0 %v2198_v48 }
 0x7d4   :  { %v2158_v8 = vpop.xlane.xlu0 %2157 }
 0x7d5   :  { %v2202_v51 = vmul.f32 0.03125, %v2158_v8  ;;  %v2155_v53 = vpop.xlane.xlu1 %2154 }
 0x7d6   :  { %v2201_v46 = vmul.f32 0.03125, %v2155_v53 }
 0x7d7   :  { %v2218_v44 = vadd.f32 1e-05, %v2202_v51 }
 0x7d8   :  { %v2217_v54 = vadd.f32 1e-05, %v2201_v46 }
 0x7d9   :  { %3950 = vrsqrt.f32 %v2218_v44  ;;  %v2161_v55 = vpop.xlane.xlu1 %2160 }
 0x7da   :  { %3952 = vrsqrt.f32 %v2217_v54  ;;  %v2203_v22 = vmul.f32 0.03125, %v2161_v55 }
 0x7dc   :  { %v2219_v58 = vadd.f32 1e-05, %v2203_v22 }
 0x7dd   :  { %v2167_v61 = vpop.xlane.xlu1 %2166  ;;  %v2164_v10 = vpop.xlane.xlu0 %2163 }
 0x7de   :  { %3954 = vrsqrt.f32 %v2219_v58  ;;  %v2205_v6 = vmul.f32 0.03125, %v2167_v61  ;;  %v2204_v62 = vmul.f32 0.03125, %v2164_v10 }
 0x7e0   :  { %v2221_v15 = vadd.f32 1e-05, %v2205_v6  ;;  %v2220_v57 = vadd.f32 1e-05, %v2204_v62 }
 0x7e1   :  { %v2173_v39 = vpop.xlane.xlu1 %2172  ;;  %v2170_v35 = vpop.xlane.xlu0 %2169 }
 0x7e2   :  { %3956 = vrsqrt.f32 %v2221_v15  ;;  %v2207_v5 = vmul.f32 0.03125, %v2173_v39  ;;  %v2206_v14 = vmul.f32 0.03125, %v2170_v35 }
 0x7e3   :  { %v3951_v9 = vpop.eup %3950  ;;  %3958 = vrsqrt.f32 %v2220_v57 }
 0x7e4   :  { %v3953_v37 = vpop.eup %3952  ;;  %v2250_v42 = vmul.f32 %v3951_v9, %v4932_v45  ;;  %v2223_v36 = vadd.f32 1e-05, %v2207_v5  ;;  %v2222_v41 = vadd.f32 1e-05, %v2206_v14 }
 0x7e5   :  { %v2179_v28 = vpop.xlane.xlu1 %2178  ;;  %v2176_v2 = vpop.xlane.xlu0 %2175  ;;  %v2249_v38 = vmul.f32 %v3953_v37, %v4934_v47 }
 0x7e6   :  { %v2272_v7 = vmul.f32 %v5035_v63, %v2250_v42  ;;  %3960 = vrsqrt.f32 %v2223_v36  ;;  %v2209_v48 = vmul.f32 0.03125, %v2179_v28  ;;  %v2208_v13 = vmul.f32 0.03125, %v2176_v2 }
 0x7e7   :  { %3962 = vrsqrt.f32 %v2222_v41  ;;  %v2271_v8 = vmul.f32 %v5035_v63, %v2249_v38 }
 0x7e8   :  { %v3955_v51 = vpop.eup %3954  ;;  %v2225_v53 = vadd.f32 1e-05, %v2209_v48  ;;  %v2224_v46 = vadd.f32 1e-05, %v2208_v13  ;;  %v2294_v47 = vadd.f32 %v5039_v34, %v2272_v7 }
 0x7e9   :  { %v2185_v45 = vpop.xlane.xlu1 %2184  ;;  %v2182_v44 = vpop.xlane.xlu0 %2181  ;;  %v2293_v54 = vadd.f32 %v5039_v34, %v2271_v8  ;;  %v2251_v55 = vmul.f32 %v3955_v51, %v4941_v43 }
 0x7ea   :  { %3964 = vrsqrt.f32 %v2225_v53  ;;  %v2211_v22 = vmul.f32 0.03125, %v2185_v45  ;;  %v2210_v58 = vmul.f32 0.03125, %v2182_v44 }
 0x7eb   :  { %3966 = vrsqrt.f32 %v2224_v46  ;;  %3660 = vmatprep.mubr.msk.f32.mxu1 %vm460_vm1, %v2293_v54  ;;  %v2273_v61 = vmul.f32 %v5035_v63, %v2251_v55 }
 0x7ec   :  { %v3957_v10 = vpop.eup %3956  ;;  %v2227_v6 = vadd.f32 1e-05, %v2211_v22  ;;  %v2226_v62 = vadd.f32 1e-05, %v2210_v58  ;;  %3661 = vmatmul.mubr.msk.f32.vlgmr.msra.gmra.mrb[38].mxu1 %vm460_vm1, %v2294_v47 }
 0x7ed   :  { %v3959_v15 = vpop.eup %3958  ;;  %v2191_v57 = vpop.xlane.xlu1 %2190  ;;  %v2295_v43 = vadd.f32 %v5039_v34, %v2273_v61  ;;  %v2253_v35 = vmul.f32 %v3957_v10, %v4946_v52 }
 0x7ee   :  { %v2188_v39 = vpop.xlane.xlu0 %2187  ;;  %3968 = vrsqrt.f32 %v2227_v6  ;;  %v2213_v5 = vmul.f32 0.03125, %v2191_v57  ;;  %v2252_v9 = vmul.f32 %v3959_v15, %v4949_v50 }
 0x7ef   :  { %v2212_v14 = vmul.f32 0.03125, %v2188_v39  ;;  %3970 = vrsqrt.f32 %v2226_v62  ;;  %3663 = vmatprep.mubr.msk.f32.mxu1 %vm460_vm1, %v2295_v43  ;;  %v2275_v37 = vmul.f32 %v5035_v63, %v2253_v35 }
 0x7f0   :  { %v3961_v42 = vpop.eup %3960  ;;  %v2229_v36 = vadd.f32 1e-05, %v2213_v5  ;;  %v2274_v28 = vmul.f32 %v5035_v63, %v2252_v9 }
 0x7f1   :  { %v2228_v41 = vadd.f32 1e-05, %v2212_v14  ;;  %v3963_v2 = vpop.eup %3962  ;;  %v2197_v38 = vpop.xlane.xlu1 %2196  ;;  %v2297_v52 = vadd.f32 %v5039_v34, %v2275_v37  ;;  %v2255_v48 = vmul.f32 %v3961_v42, %v4956_v16 }
 0x7f2   :  { %v2194_v7 = vpop.xlane.xlu0 %2193  ;;  %3972 = vrsqrt.f32 %v2229_v36  ;;  %v2215_v13 = vmul.f32 0.03125, %v2197_v38  ;;  %v2296_v8 = vadd.f32 %v5039_v34, %v2274_v28  ;;  %v2254_v51 = vmul.f32 %v3963_v2, %v4959_v56 }
 0x7f3   :  { %v2214_v50 = vmul.f32 0.03125, %v2194_v7  ;;  %3974 = vrsqrt.f32 %v2228_v41  ;;  %v2277_v53 = vmul.f32 %v5035_v63, %v2255_v48 }
 0x7f4   :  { %v3965_v46 = vpop.eup %3964  ;;  %v2231_v45 = vadd.f32 1e-05, %v2215_v13  ;;  %3664 = vmatmul.mubr.msk.f32.gmra.mrb[40].mxu1 %vm460_vm1, %v2296_v8  ;;  %v2276_v16 = vmul.f32 %v5035_v63, %v2254_v51 }
 0x7f5   :  { %v2230_v44 = vadd.f32 1e-05, %v2214_v50  ;;  %v3967_v54 = vpop.eup %3966  ;;  %3666 = vmatprep.mubr.msk.f32.mxu1 %vm460_vm1, %v2297_v52  ;;  %v2257_v47 = vmul.f32 %v3965_v46, %v4968_v0  ;;  %v2299_v58 = vadd.f32 %v5039_v34, %v2277_v53 }
 0x7f6   :  { %v2200_v55 = vpop.xlane.xlu0 %2199  ;;  %3976 = vrsqrt.f32 %v2231_v45  ;;  %v2256_v56 = vmul.f32 %v3967_v54, %v4971_v59  ;;  %v2298_v61 = vadd.f32 %v5039_v34, %v2276_v16 }
 0x7f7   :  { %v2216_v22 = vmul.f32 0.03125, %v2200_v55  ;;  %3978 = vrsqrt.f32 %v2230_v44  ;;  %v2279_v10 = vmul.f32 %v5035_v63, %v2257_v47 }
 0x7f8   :  { %v3969_v6 = vpop.eup %3968  ;;  %v2278_v15 = vmul.f32 %v5035_v63, %v2256_v56  ;;  %3667 = vmatmul.mubr.msk.f32.gmra.mrb[42].mxu1 %vm460_vm1, %v2298_v61  ;;  %v2602_v56 = vld [vmem:[%s5442_s14] sm:$0xff]  ;;  %v2603_v61 = vld [vmem:[%s5442_s14 + $0x8] sm:$0xff] }
 0x7f9   :  { %v2232_v62 = vadd.f32 1e-05, %v2216_v22  ;;  %v3971_v57 = vpop.eup %3970  ;;  %v2259_v0 = vmul.f32 %v3969_v6, %v4980_v49  ;;  %3669 = vmatprep.mubr.msk.f32.mxu1 %vm460_vm1, %v2299_v58  ;;  %v2301_v59 = vadd.f32 %v5039_v34, %v2279_v10  ;;  %v2604_v10 = vld [vmem:[%s5442_s14 + $0x10] sm:$0xff] }
 0x7fa   :  { %v2300_v39 = vadd.f32 %v5039_v34, %v2278_v15  ;;  %v2258_v43 = vmul.f32 %v3971_v57, %v4983_v11  ;;  %v2605_v15 = vld [vmem:[%s5442_s14 + $0x18] sm:$0xff] }
 0x7fb   :  { %3980 = vrsqrt.f32 %v2232_v62  ;;  %v2281_v35 = vmul.f32 %v5035_v63, %v2259_v0  ;;  %v3796_v62 = vpack.c.bf16 %v2603_v61, %v2602_v56  ;;  %v3800_v57 = vpack.c.bf16 %v2605_v15, %v2604_v10  ;;  %v2606_v0 = vld [vmem:[%s5442_s14 + $0x20] sm:$0xff] }
 0x7fc   :  { %v3973_v5 = vpop.eup %3972  ;;  %v2280_v14 = vmul.f32 %v5035_v63, %v2258_v43  ;;  %3670 = vmatmul.mubr.msk.f32.gmra.mrb[44].mxu1 %vm460_vm1, %v2300_v39  ;;  %v2607_v39 = vld [vmem:[%s5442_s14 + $0x28] sm:$0xff] }
 0x7fd   :  { %v3975_v9 = vpop.eup %3974  ;;  %v2261_v37 = vmul.f32 %v3973_v5, %v4992_v60  ;;  %3672 = vmatprep.mubr.msk.f32.mxu1 %vm460_vm1, %v2301_v59  ;;  %v2303_v42 = vadd.f32 %v5039_v34, %v2281_v35  ;;  %3797 = vmatprep.subr.bf16.mxu0 %v3796_v62  ;;  %v3804_v35 = vpack.c.bf16 %v2607_v39, %v2606_v0  ;;  %v2608_v5 = vld [vmem:[%s5442_s14 + $0x30] sm:$0xff] }
 0x7fe   :  { %v2302_v49 = vadd.f32 %v5039_v34, %v2280_v14  ;;  %v2260_v36 = vmul.f32 %v3975_v9, %v4995_v12  ;;  %3799 = vmatpush3.bf16.msra.mxu0 %v3796_v62  ;;  %v2609_v14 = vld [vmem:[%s5442_s14 + $0x38] sm:$0xff] }
 0x7ff   :  { %v2283_v11 = vmul.f32 %v5035_v63, %v2261_v37  ;;  %3801 = vmatprep.subr.bf16.mxu0 %v3800_v57  ;;  %v3808_v9 = vpack.c.bf16 %v2609_v14, %v2608_v5 }
 0x800   :  { %v3977_v41 = vpop.eup %3976  ;;  %v2282_v28 = vmul.f32 %v5035_v63, %v2260_v36  ;;  %3673 = vmatmul.mubr.msk.f32.gmra.mrb[46].mxu1 %vm460_vm1, %v2302_v49 }
 0x801   :  { %v3979_v2 = vpop.eup %3978  ;;  %v2263_v38 = vmul.f32 %v3977_v41, %v5004_v32  ;;  %3675 = vmatprep.mubr.msk.f32.mxu1 %vm460_vm1, %v2303_v42  ;;  %v2305_v7 = vadd.f32 %v5039_v34, %v2283_v11 }
 0x802   :  { %v2304_v60 = vadd.f32 %v5039_v34, %v2282_v28  ;;  %v2262_v52 = vmul.f32 %v3979_v2, %v5007_v21  ;;  %3803 = vmatpush3.bf16.msra.mxu0 %v3800_v57 }
 0x803   :  { %v2285_v12 = vmul.f32 %v5035_v63, %v2263_v38  ;;  %3805 = vmatprep.subr.bf16.mxu0 %v3804_v35 }
 0x804   :  { %v2284_v13 = vmul.f32 %v5035_v63, %v2262_v52  ;;  %3676 = vmatmul.mubr.msk.f32.gmra.mrb[48].mxu1 %vm460_vm1, %v2304_v60 }
 0x805   :  { %v3981_v48 = vpop.eup %3980  ;;  %3678 = vmatprep.mubr.msk.f32.mxu1 %vm460_vm1, %v2305_v7  ;;  %v2307_v8 = vadd.f32 %v5039_v34, %v2285_v12 }
 0x806   :  { %v2264_v50 = vmul.f32 %v3981_v48, %v5022_v40  ;;  %v2306_v32 = vadd.f32 %v5039_v34, %v2284_v13  ;;  %3807 = vmatpush3.bf16.msra.mxu0 %v3804_v35 }
 0x807   :  { %3809 = vmatprep.subr.bf16.mxu0 %v3808_v9 }
 0x808   :  { %v2286_v51 = vmul.f32 %v5035_v63, %v2264_v50  ;;  %3679 = vmatmul.mubr.msk.f32.gmra.mrb[50].mxu1 %vm460_vm1, %v2306_v32 }
 0x809   :  { %3681 = vmatprep.mubr.msk.f32.mxu1 %vm460_vm1, %v2307_v8 }
 0x80a   :  { %v2308_v21 = vadd.f32 %v5039_v34, %v2286_v51  ;;  %3811 = vmatpush3.bf16.msra.mxu0 %v3808_v9 }
 0x80c   :  { %3682 = vmatmul.mubr.msk.f32.gmra.mrb[52].mxu1 %vm460_vm1, %v2308_v21 }
 0x8bf   :  { %v3662_v53 = vpop.f32.mrb[38].mxu1 }
 0x8c0   :  { %2524 = vrot.lane.b32.xlu0 %v3662_v53, %s4242_s4  ;;  %v2427_v40 = vpop.f32.mrb[39].mxu1 }
 0x8c1   :  { %2522 = vrot.lane.b32.xlu1 %v2427_v40, %s4242_s4 }
 0x8c7   :  { %v3665_v46 = vpop.f32.mrb[40].mxu1 }
 0x8c8   :  { %v2437_v45 = vpop.f32.mrb[41].mxu1 }
 0x8c9   :  { %2526 = vrot.lane.b32.xlu1 %v2437_v45, %s4242_s4 }
 0x8cb   :  { %v3668_v44 = vpop.f32.mrb[42].mxu1 }
 0x8cc   :  { %v2447_v63 = vpop.f32.mrb[43].mxu1 }
 0x8cd   :  { %2528 = vrot.lane.b32.xlu1 %v3665_v46, %s4242_s4  ;;  %2530 = vrot.lane.b32.xlu0 %v2447_v63, %s4242_s4 }
 0x8cf   :  { %v3671_v34 = vpop.f32.mrb[44].mxu1 }
 0x8d0   :  { %v2457_v54 = vpop.f32.mrb[45].mxu1 }
 0x8d1   :  { %2532 = vrot.lane.b32.xlu1 %v3668_v44, %s4242_s4  ;;  %2534 = vrot.lane.b32.xlu0 %v2457_v54, %s4242_s4 }
 0x8d3   :  { %v3674_v55 = vpop.f32.mrb[46].mxu1 }
 0x8d4   :  { %v2467_v16 = vpop.f32.mrb[47].mxu1 }
 0x8d5   :  { %2536 = vrot.lane.b32.xlu1 %v3671_v34, %s4242_s4  ;;  %2538 = vrot.lane.b32.xlu0 %v2467_v16, %s4242_s4 }
 0x8d7   :  { %v3677_v47 = vpop.f32.mrb[48].mxu1 }
 0x8d8   :  { %v2477_v22 = vpop.f32.mrb[49].mxu1 }
 0x8d9   :  { %2540 = vrot.lane.b32.xlu1 %v3674_v55, %s4242_s4  ;;  %2542 = vrot.lane.b32.xlu0 %v2477_v22, %s4242_s4 }
 0x8db   :  { %v3680_v58 = vpop.f32.mrb[50].mxu1 }
 0x8dc   :  { %v2487_v6 = vpop.f32.mrb[51].mxu1 }
 0x8dd   :  { %2544 = vrot.lane.b32.xlu1 %v3677_v47, %s4242_s4  ;;  %2546 = vrot.lane.b32.xlu0 %v2487_v6, %s4242_s4 }
 0x8df   :  { %v3683_v59 = vpop.f32.mrb[52].mxu1 }
 0x8e0   :  { %v2497_v43 = vpop.f32.mrb[53].mxu1 }
 0x8e1   :  { %2548 = vrot.lane.b32.xlu1 %v3680_v58, %s4242_s4  ;;  %2550 = vrot.lane.b32.xlu0 %v2497_v43, %s4242_s4 }
 0x8e5   :  { %2552 = vrot.lane.b32.xlu1 %v3683_v59, %s4242_s4 }
 0x932   :  { %v2525_v37 = vpop.permute.xlu0 %2524 }
 0x933   :  { %v2571_v49 = vadd.f32 %v4647_v17, %v2525_v37  ;;  %v2523_v42 = vpop.permute.xlu1 %2522 }
 0x934   :  { %v2570_v36 = vadd.f32 %v2523_v42, %v4649_v18 }
 0x935   :  { %v2587_v11 = vmax.f32 %v2571_v49, 0.0 }
 0x936   :  { %v2586_v41 = vmax.f32 %v2570_v36, 0.0 }
 0x937   :  { %2628 = vrot.lane.b32.xlu1 %v2587_v11, %s4243_s28 }
 0x938   :  { %2626 = vrot.lane.b32.xlu0 %v2586_v41, %s4243_s28 }
 0x93b   :  { %v2527_v28 = vpop.permute.xlu1 %2526 }
 0x93c   :  { %v2572_v2 = vadd.f32 %v2527_v28, %v4654_v20 }
 0x93e   :  { %v2588_v38 = vmax.f32 %v2572_v2, 0.0 }
 0x93f   :  { %v2529_v60 = vpop.permute.xlu1 %2528  ;;  %v2531_v52 = vpop.permute.xlu0 %2530 }
 0x940   :  { %v2573_v7 = vadd.f32 %v4652_v19, %v2529_v60  ;;  %2630 = vrot.lane.b32.xlu0 %v2588_v38, %s4243_s28  ;;  %v2574_v17 = vadd.f32 %v2531_v52, %v4661_v1 }
 0x942   :  { %v2589_v12 = vmax.f32 %v2573_v7, 0.0  ;;  %v2590_v18 = vmax.f32 %v2574_v17, 0.0 }
 0x943   :  { %v2533_v48 = vpop.permute.xlu1 %2532  ;;  %v2535_v50 = vpop.permute.xlu0 %2534 }
 0x944   :  { %v2575_v13 = vadd.f32 %v4658_v23, %v2533_v48  ;;  %2632 = vrot.lane.b32.xlu1 %v2589_v12, %s4243_s28  ;;  %v2576_v32 = vadd.f32 %v2535_v50, %v4665_v25  ;;  %2634 = vrot.lane.b32.xlu0 %v2590_v18, %s4243_s28 }
 0x946   :  { %v2591_v20 = vmax.f32 %v2575_v13, 0.0  ;;  %v2592_v8 = vmax.f32 %v2576_v32, 0.0 }
 0x947   :  { %v2537_v19 = vpop.permute.xlu1 %2536  ;;  %v2539_v21 = vpop.permute.xlu0 %2538 }
 0x948   :  { %v2577_v51 = vadd.f32 %v4663_v24, %v2537_v19  ;;  %2636 = vrot.lane.b32.xlu1 %v2591_v20, %s4243_s28  ;;  %v2578_v1 = vadd.f32 %v2539_v21, %v4669_v27  ;;  %2638 = vrot.lane.b32.xlu0 %v2592_v8, %s4243_s28 }
 0x94a   :  { %v2593_v23 = vmax.f32 %v2577_v51, 0.0  ;;  %v2594_v53 = vmax.f32 %v2578_v1, 0.0 }
 0x94b   :  { %v2541_v40 = vpop.permute.xlu1 %2540  ;;  %v2543_v25 = vpop.permute.xlu0 %2542 }
 0x94c   :  { %v2579_v46 = vadd.f32 %v4667_v26, %v2541_v40  ;;  %2640 = vrot.lane.b32.xlu1 %v2593_v23, %s4243_s28  ;;  %v2580_v45 = vadd.f32 %v2543_v25, %v4674_v29  ;;  %2642 = vrot.lane.b32.xlu0 %v2594_v53, %s4243_s28 }
 0x94e   :  { %v2595_v24 = vmax.f32 %v2579_v46, 0.0  ;;  %v2596_v44 = vmax.f32 %v2580_v45, 0.0 }
 0x94f   :  { %v2545_v63 = vpop.permute.xlu1 %2544  ;;  %v2547_v27 = vpop.permute.xlu0 %2546 }
 0x950   :  { %v2581_v34 = vadd.f32 %v4672_v4, %v2545_v63  ;;  %2644 = vrot.lane.b32.xlu1 %v2595_v24, %s4243_s28  ;;  %v2582_v54 = vadd.f32 %v2547_v27, %v4678_v31  ;;  %2646 = vrot.lane.b32.xlu0 %v2596_v44, %s4243_s28 }
 0x952   :  { %v2597_v26 = vmax.f32 %v2581_v34, 0.0  ;;  %v2598_v55 = vmax.f32 %v2582_v54, 0.0 }
 0x953   :  { %v2549_v16 = vpop.permute.xlu1 %2548  ;;  %v2551_v29 = vpop.permute.xlu0 %2550 }
 0x954   :  { %v2583_v47 = vadd.f32 %v4676_v30, %v2549_v16  ;;  %2648 = vrot.lane.b32.xlu1 %v2597_v26, %s4243_s28  ;;  %v2584_v22 = vadd.f32 %v2551_v29, %v4684_v33  ;;  %2650 = vrot.lane.b32.xlu0 %v2598_v55, %s4243_s28 }
 0x956   :  { %v2599_v4 = vmax.f32 %v2583_v47, 0.0  ;;  %v2600_v58 = vmax.f32 %v2584_v22, 0.0 }
 0x957   :  { %v2553_v56 = vpop.permute.xlu1 %2552 }
 0x958   :  { %v2585_v61 = vadd.f32 %v4682_v3, %v2553_v56  ;;  %2652 = vrot.lane.b32.xlu1 %v2599_v4, %s4243_s28  ;;  %2654 = vrot.lane.b32.xlu0 %v2600_v58, %s4243_s28 }
 0x95a   :  { %v2601_v31 = vmax.f32 %v2585_v61, 0.0 }
 0x95c   :  { %2656 = vrot.lane.b32.xlu1 %v2601_v31, %s4243_s28 }
 0x9a9   :  { %v2629_v10 = vpop.permute.xlu1 %2628 }
 0x9aa   :  { %v2627_v30 = vpop.permute.xlu0 %2626 }
 0x9ab   :  { %3700 = vmatprep.mubr.msk.f32.mxu0 %vm2658_vm11, %v2627_v30 }
 0x9ac   :  { %3701 = vmatmul.mubr.msk.f32.vlgmr.msra.gmra.mrb[42].mxu0 %vm2658_vm11, %v2629_v10 }
 0x9b2   :  { %v2631_v33 = vpop.permute.xlu0 %2630 }
 0x9b3   :  { %3703 = vmatprep.mubr.msk.f32.mxu0 %vm2658_vm11, %v2631_v33 }
 0x9b6   :  { %v2633_v6 = vpop.permute.xlu1 %2632  ;;  %v2635_v62 = vpop.permute.xlu0 %2634 }
 0x9b7   :  { %3704 = vmatmul.mubr.msk.f32.gmra.mrb[44].mxu0 %vm2658_vm11, %v2633_v6 }
 0x9b8   :  { %3706 = vmatprep.mubr.msk.f32.mxu0 %vm2658_vm11, %v2635_v62 }
 0x9ba   :  { %v2637_v3 = vpop.permute.xlu1 %2636  ;;  %v2639_v15 = vpop.permute.xlu0 %2638 }
 0x9bb   :  { %3707 = vmatmul.mubr.msk.f32.gmra.mrb[46].mxu0 %vm2658_vm11, %v2637_v3 }
 0x9bc   :  { %3709 = vmatprep.mubr.msk.f32.mxu0 %vm2658_vm11, %v2639_v15 }
 0x9be   :  { %v2641_v57 = vpop.permute.xlu1 %2640  ;;  %v2643_v0 = vpop.permute.xlu0 %2642 }
 0x9bf   :  { %3710 = vmatmul.mubr.msk.f32.gmra.mrb[48].mxu0 %vm2658_vm11, %v2641_v57 }
 0x9c0   :  { %3712 = vmatprep.mubr.msk.f32.mxu0 %vm2658_vm11, %v2643_v0 }
 0x9c2   :  { %v2645_v39 = vpop.permute.xlu1 %2644  ;;  %v2647_v59 = vpop.permute.xlu0 %2646 }
 0x9c3   :  { %3713 = vmatmul.mubr.msk.f32.gmra.mrb[50].mxu0 %vm2658_vm11, %v2645_v39 }
 0x9c4   :  { %3715 = vmatprep.mubr.msk.f32.mxu0 %vm2658_vm11, %v2647_v59 }
 0x9c6   :  { %v2649_v43 = vpop.permute.xlu1 %2648  ;;  %v2651_v35 = vpop.permute.xlu0 %2650 }
 0x9c7   :  { %3716 = vmatmul.mubr.msk.f32.gmra.mrb[52].mxu0 %vm2658_vm11, %v2649_v43 }
 0x9c8   :  { %3718 = vmatprep.mubr.msk.f32.mxu0 %vm2658_vm11, %v2651_v35 }
 0x9ca   :  { %v2653_v5 = vpop.permute.xlu1 %2652  ;;  %v2655_v14 = vpop.permute.xlu0 %2654 }
 0x9cb   :  { %3719 = vmatmul.mubr.msk.f32.gmra.mrb[54].mxu0 %vm2658_vm11, %v2653_v5 }
 0x9cc   :  { %3721 = vmatprep.mubr.msk.f32.mxu0 %vm2658_vm11, %v2655_v14 }
 0x9ce   :  { %v2657_v9 = vpop.permute.xlu1 %2656 }
 0x9cf   :  { %3722 = vmatmul.mubr.msk.f32.gmra.mrb[56].mxu0 %vm2658_vm11, %v2657_v9 }
 0xa7f   :  { %v3702_v37 = vpop.f32.mrb[42].mxu0 }
 0xa80   :  { %v2757_v49 = vpop.f32.mrb[43].mxu0  ;;  %v2841_v42 = vsel %vm460_vm1, %v3702_v37, 0.0 }
 0xa81   :  { %2842 = vadd.xlane.f32.xlu0 %v2841_v42  ;;  %v2838_v36 = vsel %vm460_vm1, %v2757_v49, 0.0 }
 0xa85   :  { %2839 = vadd.xlane.f32.xlu0 %v2838_v36 }
 0xa8a   :  { %v3705_v11 = vpop.f32.mrb[44].mxu0 }
 0xa8b   :  { %v2767_v41 = vpop.f32.mrb[45].mxu0  ;;  %v2847_v28 = vsel %vm460_vm1, %v3705_v11, 0.0 }
 0xa8c   :  { %2848 = vadd.xlane.f32.xlu1 %v2847_v28  ;;  %v2844_v60 = vsel %vm460_vm1, %v2767_v41, 0.0 }
 0xa8e   :  { %v5194_v2 = vpop.f32.mrb[46].mxu0 }
 0xa8f   :  { %v5196_v38 = vpop.f32.mrb[47].mxu0  ;;  %v2853_v21 = vsel %vm460_vm1, %v5194_v2, 0.0 }
 0xa90   :  { %2845 = vadd.xlane.f32.xlu1 %v2844_v60  ;;  %v2850_v20 = vsel %vm460_vm1, %v5196_v38, 0.0 }
 0xa92   :  { %v5199_v7 = vpop.f32.mrb[48].mxu0 }
 0xa93   :  { %v5201_v52 = vpop.f32.mrb[49].mxu0  ;;  %v2859_v25 = vsel %vm460_vm1, %v5199_v7, 0.0 }
 0xa94   :  { %v2856_v40 = vsel %vm460_vm1, %v5201_v52, 0.0 }
 0xa96   :  { %v3714_v17 = vpop.f32.mrb[50].mxu0 }
 0xa97   :  { %v2797_v12 = vpop.f32.mrb[51].mxu0  ;;  %v2865_v18 = vsel %vm460_vm1, %v3714_v17, 0.0 }
 0xa98   :  { %2866 = vadd.xlane.f32.xlu0 %v2865_v18  ;;  %v2862_v48 = vsel %vm460_vm1, %v2797_v12, 0.0 }
 0xa99   :  { %2863 = vadd.xlane.f32.xlu1 %v2862_v48 }
 0xa9a   :  { %v3717_v13 = vpop.f32.mrb[52].mxu0 }
 0xa9b   :  { %v5205_v50 = vpop.f32.mrb[53].mxu0  ;;  %v2871_v32 = vsel %vm460_vm1, %v3717_v13, 0.0 }
 0xa9c   :  { %2872 = vadd.xlane.f32.xlu0 %v2871_v32  ;;  %v2868_v51 = vsel %vm460_vm1, %v5205_v50, 0.0 }
 0xa9d   :  { %2851 = vadd.xlane.f32.xlu1 %v2850_v20 }
 0xa9e   :  { %v5210_v8 = vpop.f32.mrb[54].mxu0 }
 0xa9f   :  { %v5212_v19 = vpop.f32.mrb[55].mxu0  ;;  %v2877_v53 = vsel %vm460_vm1, %v5210_v8, 0.0 }
 0xaa0   :  { %2869 = vadd.xlane.f32.xlu0 %v2868_v51  ;;  %v2874_v46 = vsel %vm460_vm1, %v5212_v19, 0.0 }
 0xaa1   :  { %2854 = vadd.xlane.f32.xlu1 %v2853_v21 }
 0xaa2   :  { %v5218_v1 = vpop.f32.mrb[56].mxu0 }
 0xaa3   :  { %v5220_v23 = vpop.f32.mrb[57].mxu0  ;;  %v2883_v24 = vsel %vm460_vm1, %v5218_v1, 0.0 }
 0xaa4   :  { %2878 = vadd.xlane.f32.xlu0 %v2877_v53  ;;  %v2880_v45 = vsel %vm460_vm1, %v5220_v23, 0.0 }
 0xaa5   :  { %2857 = vadd.xlane.f32.xlu1 %v2856_v40 }
 0xaa8   :  { %2875 = vadd.xlane.f32.xlu0 %v2874_v46 }
 0xaa9   :  { %2860 = vadd.xlane.f32.xlu1 %v2859_v25 }
 0xaac   :  { %2881 = vadd.xlane.f32.xlu0 %v2880_v45 }
 0xab0   :  { %2884 = vadd.xlane.f32.xlu0 %v2883_v24 }
 0xb0e   :  { %v2843_v44 = vpop.xlane.xlu0 %2842 }
 0xb0f   :  { %v2887_v63 = vmul.f32 0.03125, %v2843_v44 }
 0xb11   :  { %v5234_v34 = vsub.f32 %v3702_v37, %v2887_v63 }
 0xb12   :  { %v2840_v27 = vpop.xlane.xlu0 %2839 }
 0xb13   :  { %v2886_v54 = vmul.f32 0.03125, %v2840_v27  ;;  %v2919_v26 = vmul.f32 %v5234_v34, %v5234_v34 }
 0xb15   :  { %v5238_v55 = vsub.f32 %v2757_v49, %v2886_v54  ;;  %v2937_v16 = vsel %vm460_vm1, %v2919_v26, 0.0 }
 0xb16   :  { %2938 = vadd.xlane.f32.xlu1 %v2937_v16 }
 0xb17   :  { %v2918_v47 = vmul.f32 %v5238_v55, %v5238_v55 }
 0xb19   :  { %v2849_v29 = vpop.xlane.xlu1 %2848  ;;  %v2934_v22 = vsel %vm460_vm1, %v2918_v47, 0.0 }
 0xb1a   :  { %v2889_v4 = vmul.f32 0.03125, %v2849_v29  ;;  %2935 = vadd.xlane.f32.xlu1 %v2934_v22 }
 0xb1c   :  { %v5244_v58 = vsub.f32 %v3705_v11, %v2889_v4 }
 0xb1d   :  { %v2846_v56 = vpop.xlane.xlu1 %2845 }
 0xb1e   :  { %v2888_v61 = vmul.f32 0.03125, %v2846_v56  ;;  %v2921_v31 = vmul.f32 %v5244_v58, %v5244_v58 }
 0xb20   :  { %v5248_v30 = vsub.f32 %v2767_v41, %v2888_v61  ;;  %v2943_v10 = vsel %vm460_vm1, %v2921_v31, 0.0 }
 0xb21   :  { %2944 = vadd.xlane.f32.xlu1 %v2943_v10 }
 0xb22   :  { %v2920_v33 = vmul.f32 %v5248_v30, %v5248_v30 }
 0xb24   :  { %v2940_v6 = vsel %vm460_vm1, %v2920_v33, 0.0 }
 0xb25   :  { %2941 = vadd.xlane.f32.xlu1 %v2940_v6  ;;  %v2867_v62 = vpop.xlane.xlu0 %2866 }
 0xb26   :  { %v2895_v3 = vmul.f32 0.03125, %v2867_v62  ;;  %v2864_v15 = vpop.xlane.xlu1 %2863 }
 0xb27   :  { %v2894_v57 = vmul.f32 0.03125, %v2864_v15 }
 0xb28   :  { %v5254_v0 = vsub.f32 %v3714_v17, %v2895_v3 }
 0xb29   :  { %v5256_v39 = vsub.f32 %v2797_v12, %v2894_v57  ;;  %v2873_v59 = vpop.xlane.xlu0 %2872 }
 0xb2a   :  { %v2897_v43 = vmul.f32 0.03125, %v2873_v59  ;;  %v2852_v35 = vpop.xlane.xlu1 %2851  ;;  %v2927_v5 = vmul.f32 %v5254_v0, %v5254_v0 }
 0xb2b   :  { %v2926_v37 = vmul.f32 %v5256_v39, %v5256_v39  ;;  %v2890_v49 = vmul.f32 0.03125, %v2852_v35 }
 0xb2c   :  { %v5260_v14 = vsub.f32 %v3717_v13, %v2897_v43  ;;  %v2961_v9 = vsel %vm460_vm1, %v2927_v5, 0.0 }
 0xb2d   :  { %2962 = vadd.xlane.f32.xlu0 %v2961_v9  ;;  %v2870_v42 = vpop.xlane.xlu0 %2869  ;;  %v2958_v60 = vsel %vm460_vm1, %v2926_v37, 0.0  ;;  %v5272_v12 = vsub.f32 %v5196_v38, %v2890_v49 }
 0xb2e   :  { %v2896_v36 = vmul.f32 0.03125, %v2870_v42  ;;  %v2855_v11 = vpop.xlane.xlu1 %2854  ;;  %v2929_v17 = vmul.f32 %v5260_v14, %v5260_v14 }
 0xb2f   :  { %v2891_v41 = vmul.f32 0.03125, %v2855_v11  ;;  %v2922_v46 = vmul.f32 %v5272_v12, %v5272_v12 }
 0xb30   :  { %v5266_v28 = vsub.f32 %v5205_v50, %v2896_v36  ;;  %v2967_v21 = vsel %vm460_vm1, %v2929_v17, 0.0  ;;  %v5328_v17 = vld [vmem:[%s5443_s15] ss:$0 sm:$0xff] }
 0xb31   :  { %v5275_v18 = vsub.f32 %v5194_v2, %v2891_v41  ;;  %2959 = vadd.xlane.f32.xlu0 %v2958_v60  ;;  %v2879_v48 = vpop.xlane.xlu0 %2878  ;;  %v2946_v54 = vsel %vm460_vm1, %v2922_v46, 0.0 }
 0xb32   :  { %v2899_v13 = vmul.f32 0.03125, %v2879_v48  ;;  %v2858_v32 = vpop.xlane.xlu1 %2857  ;;  %v2928_v38 = vmul.f32 %v5266_v28, %v5266_v28 }
 0xb33   :  { %v2892_v20 = vmul.f32 0.03125, %v2858_v32  ;;  %v2923_v50 = vmul.f32 %v5275_v18, %v5275_v18  ;;  %v5334_v32 = vld [vmem:[%s5444_s16] ss:$0 sm:$0xff] }
 0xb34   :  { %v5280_v51 = vsub.f32 %v5210_v8, %v2899_v13  ;;  %v2964_v44 = vsel %vm460_vm1, %v2928_v38, 0.0 }
 0xb35   :  { %v5286_v53 = vsub.f32 %v5201_v52, %v2892_v20  ;;  %2968 = vadd.xlane.f32.xlu0 %v2967_v21  ;;  %v2876_v2 = vpop.xlane.xlu0 %2875  ;;  %v2949_v40 = vsel %vm460_vm1, %v2923_v50, 0.0 }
 0xb36   :  { %v2898_v25 = vmul.f32 0.03125, %v2876_v2  ;;  %v2861_v45 = vpop.xlane.xlu1 %2860  ;;  %2950 = vadd.xlane.f32.xlu1 %v2949_v40  ;;  %v2931_v52 = vmul.f32 %v5280_v51, %v5280_v51 }
 0xb37   :  { %v2893_v8 = vmul.f32 0.03125, %v2861_v45  ;;  %v2924_v26 = vmul.f32 %v5286_v53, %v5286_v53 }
 0xb38   :  { %v5292_v24 = vsub.f32 %v5212_v19, %v2898_v25  ;;  %v2973_v47 = vsel %vm460_vm1, %v2931_v52, 0.0 }
 0xb39   :  { %v5298_v63 = vsub.f32 %v5199_v7, %v2893_v8  ;;  %2965 = vadd.xlane.f32.xlu0 %v2964_v44  ;;  %v2882_v27 = vpop.xlane.xlu0 %2881  ;;  %v2952_v22 = vsel %vm460_vm1, %v2924_v26, 0.0 }
 0xb3a   :  { %v2900_v16 = vmul.f32 0.03125, %v2882_v27  ;;  %2947 = vadd.xlane.f32.xlu1 %v2946_v54  ;;  %v2930_v29 = vmul.f32 %v5292_v24, %v5292_v24 }
 0xb3b   :  { %v2925_v4 = vmul.f32 %v5298_v63, %v5298_v63 }
 0xb3c   :  { %v5304_v19 = vsub.f32 %v5220_v23, %v2900_v16  ;;  %v2970_v23 = vsel %vm460_vm1, %v2930_v29, 0.0 }
 0xb3d   :  { %2974 = vadd.xlane.f32.xlu0 %v2973_v47  ;;  %v2885_v7 = vpop.xlane.xlu0 %2884  ;;  %v2955_v10 = vsel %vm460_vm1, %v2925_v4, 0.0 }
 0xb3e   :  { %v2901_v56 = vmul.f32 0.03125, %v2885_v7  ;;  %2953 = vadd.xlane.f32.xlu1 %v2952_v22  ;;  %v2932_v31 = vmul.f32 %v5304_v19, %v5304_v19 }
 0xb40   :  { %v5313_v61 = vsub.f32 %v5218_v1, %v2901_v56  ;;  %v2976_v33 = vsel %vm460_vm1, %v2932_v31, 0.0 }
 0xb41   :  { %2971 = vadd.xlane.f32.xlu0 %v2970_v23 }
 0xb42   :  { %2956 = vadd.xlane.f32.xlu1 %v2955_v10  ;;  %v2933_v6 = vmul.f32 %v5313_v61, %v5313_v61 }
 0xb44   :  { %v2979_v62 = vsel %vm460_vm1, %v2933_v6, 0.0 }
 0xb45   :  { %2977 = vadd.xlane.f32.xlu0 %v2976_v33 }
 0xb49   :  { %2980 = vadd.xlane.f32.xlu0 %v2979_v62 }
 0xba3   :  { %v2939_v1 = vpop.xlane.xlu1 %2938 }
 0xba4   :  { %v2983_v3 = vmul.f32 0.03125, %v2939_v1 }
 0xba6   :  { %v2999_v15 = vadd.f32 1e-05, %v2983_v3 }
 0xba7   :  { %v2936_v57 = vpop.xlane.xlu1 %2935 }
 0xba8   :  { %v2982_v59 = vmul.f32 0.03125, %v2936_v57  ;;  %3982 = vrsqrt.f32 %v2999_v15 }
 0xbaa   :  { %v2998_v43 = vadd.f32 1e-05, %v2982_v59 }
 0xbac   :  { %3984 = vrsqrt.f32 %v2998_v43 }
 0xbae   :  { %v2945_v35 = vpop.xlane.xlu1 %2944 }
 0xbaf   :  { %v2985_v5 = vmul.f32 0.03125, %v2945_v35 }
 0xbb1   :  { %v3001_v9 = vadd.f32 1e-05, %v2985_v5 }
 0xbb2   :  { %v2942_v37 = vpop.xlane.xlu1 %2941  ;;  %v3983_v42 = vpop.eup %3982 }
 0xbb3   :  { %v2984_v49 = vmul.f32 0.03125, %v2942_v37  ;;  %3986 = vrsqrt.f32 %v3001_v9  ;;  %v3031_v60 = vmul.f32 %v3983_v42, %v5234_v34 }
 0xbb5   :  { %v3000_v36 = vadd.f32 1e-05, %v2984_v49 }
 0xbb6   :  { %v3985_v11 = vpop.eup %3984 }
 0xbb7   :  { %3988 = vrsqrt.f32 %v3000_v36  ;;  %v3030_v41 = vmul.f32 %v3985_v11, %v5238_v55  ;;  %v3053_v55 = vmul.f32 %v5328_v17, %v3031_v60 }
 0xbb9   :  { %v3052_v48 = vmul.f32 %v5328_v17, %v3030_v41  ;;  %v3075_v40 = vadd.f32 %v5334_v32, %v3053_v55 }
 0xbba   :  { %v2963_v13 = vpop.xlane.xlu0 %2962 }
 0xbbb   :  { %v2991_v20 = vmul.f32 0.03125, %v2963_v13  ;;  %v3074_v50 = vadd.f32 %v5334_v32, %v3052_v48 }
 0xbbd   :  { %v3007_v21 = vadd.f32 1e-05, %v2991_v20  ;;  %3090 = vxpose.xlu1.b32.start [1/8] (short) (narrow) %v3074_v50, 32  ;;  %v3987_v38 = vpop.eup %3986 }
 0xbbe   :  { %v2960_v34 = vpop.xlane.xlu0 %2959  ;;  %v3033_v44 = vmul.f32 %v3987_v38, %v5244_v58 }
 0xbbf   :  { %v2990_v2 = vmul.f32 0.03125, %v2960_v34  ;;  %3990 = vrsqrt.f32 %v3007_v21 }
 0xbc0   :  { %v3055_v22 = vmul.f32 %v5328_v17, %v3033_v44 }
 0xbc1   :  { %v3989_v46 = vpop.eup %3988  ;;  %v3006_v25 = vadd.f32 1e-05, %v2990_v2  ;;  %3091 = vxpose.xlu1.b32.cont [2/8] (short) (narrow) %v3075_v40, 32 }
 0xbc2   :  { %v2969_v45 = vpop.xlane.xlu0 %2968  ;;  %v3032_v8 = vmul.f32 %v3989_v46, %v5248_v30  ;;  %v3077_v10 = vadd.f32 %v5334_v32, %v3055_v22 }
 0xbc3   :  { %3992 = vrsqrt.f32 %v3006_v25  ;;  %v2993_v52 = vmul.f32 0.03125, %v2969_v45  ;;  %v2951_v27 = vpop.xlane.xlu1 %2950 }
 0xbc4   :  { %v2987_v54 = vmul.f32 0.03125, %v2951_v27  ;;  %v3054_v26 = vmul.f32 %v5328_v17, %v3032_v8 }
 0xbc5   :  { %v3009_v16 = vadd.f32 1e-05, %v2993_v52 }
 0xbc6   :  { %v3003_v47 = vadd.f32 1e-05, %v2987_v54  ;;  %v2966_v29 = vpop.xlane.xlu0 %2965  ;;  %v3076_v7 = vadd.f32 %v5334_v32, %v3054_v26 }
 0xbc7   :  { %v2992_v4 = vmul.f32 0.03125, %v2966_v29  ;;  %v2948_v56 = vpop.xlane.xlu1 %2947  ;;  %3994 = vrsqrt.f32 %v3009_v16 }
 0xbc8   :  { %v2986_v23 = vmul.f32 0.03125, %v2948_v56  ;;  %3092 = vxpose.xlu1.b32.cont [3/8] (short) (narrow) %v3076_v7, 32  ;;  %3996 = vrsqrt.f32 %v3003_v47 }
 0xbc9   :  { %v3008_v30 = vadd.f32 1e-05, %v2992_v4  ;;  %v3991_v33 = vpop.eup %3990 }
 0xbca   :  { %v3002_v58 = vadd.f32 1e-05, %v2986_v23  ;;  %v2975_v31 = vpop.xlane.xlu0 %2974  ;;  %v3039_v35 = vmul.f32 %v3991_v33, %v5254_v0 }
 0xbcb   :  { %3998 = vrsqrt.f32 %v3008_v30  ;;  %v2995_v6 = vmul.f32 0.03125, %v2975_v31  ;;  %v2954_v62 = vpop.xlane.xlu1 %2953 }
 0xbcc   :  { %4000 = vrsqrt.f32 %v3002_v58  ;;  %v2988_v1 = vmul.f32 0.03125, %v2954_v62  ;;  %3093 = vxpose.xlu1.b32.cont [4/8] (short) (narrow) %v3077_v10, 32  ;;  %v3061_v60 = vmul.f32 %v5328_v17, %v3039_v35 }
 0xbcd   :  { %v3993_v3 = vpop.eup %3992  ;;  %v3011_v15 = vadd.f32 1e-05, %v2995_v6 }
 0xbce   :  { %v3004_v57 = vadd.f32 1e-05, %v2988_v1  ;;  %v2972_v59 = vpop.xlane.xlu0 %2971  ;;  %v3038_v43 = vmul.f32 %v3993_v3, %v5256_v39  ;;  %v3083_v21 = vadd.f32 %v5334_v32, %v3061_v60 }
 0xbcf   :  { %v2994_v5 = vmul.f32 0.03125, %v2972_v59  ;;  %v2957_v9 = vpop.xlane.xlu1 %2956  ;;  %v4015_v59 = vld [vmem:[%s5451_s30 + $0x8] sm:$0xff] }
 0xbd0   :  { %4002 = vrsqrt.f32 %v3004_v57  ;;  %v2989_v37 = vmul.f32 0.03125, %v2957_v9  ;;  %v3060_v49 = vmul.f32 %v5328_v17, %v3038_v43  ;;  %v4017_v9 = vld [vmem:[%s5451_s30 + $0x10] sm:$0xff] }
 0xbd1   :  { %4004 = vrsqrt.f32 %v3011_v15  ;;  %v3010_v42 = vadd.f32 1e-05, %v2994_v5  ;;  %v3995_v48 = vpop.eup %3994  ;;  %v4014_v15 = vld [vmem:[%s5451_s30] sm:$0xff] }
 0xbd2   :  { %v3005_v36 = vadd.f32 1e-05, %v2989_v37  ;;  %v2978_v11 = vpop.xlane.xlu0 %2977  ;;  %v3082_v41 = vadd.f32 %v5334_v32, %v3060_v49  ;;  %v3997_v39 = vpop.eup %3996  ;;  %v3041_v38 = vmul.f32 %v3995_v48, %v5260_v14 }
 0xbd3   :  { %4006 = vrsqrt.f32 %v3010_v42  ;;  %v2996_v13 = vmul.f32 0.03125, %v2978_v11  ;;  %v3035_v46 = vmul.f32 %v3997_v39, %v5275_v18  ;;  %v4018_v42 = vld [vmem:[%s5451_s30 + $0x28] sm:$0xff] }
 0xbd4   :  { %4008 = vrsqrt.f32 %v3005_v36  ;;  %3122 = vxpose.xlu0.b32.start [1/8] (short) (narrow) %v3082_v41, 32  ;;  %v3063_v27 = vmul.f32 %v5328_v17, %v3041_v38  ;;  %v4019_v41 = vld [vmem:[%s5451_s30 + $0x18] sm:$0xff] }
 0xbd5   :  { %v3999_v0 = vpop.eup %3998  ;;  %v3012_v20 = vadd.f32 1e-05, %v2996_v13  ;;  %v3057_v54 = vmul.f32 %v5328_v17, %v3035_v46  ;;  %v4020_v13 = vld [vmem:[%s5451_s30 + $0x30] sm:$0xff] }
 0xbd6   :  { %v4001_v50 = vpop.eup %4000  ;;  %v2981_v55 = vpop.xlane.xlu0 %2980  ;;  %v3040_v34 = vmul.f32 %v3999_v0, %v5266_v28  ;;  %v3085_v16 = vadd.f32 %v5334_v32, %v3063_v27 }
 0xbd7   :  { %4010 = vrsqrt.f32 %v3012_v20  ;;  %v2997_v2 = vmul.f32 0.03125, %v2981_v55  ;;  %v3034_v40 = vmul.f32 %v4001_v50, %v5272_v12  ;;  %v3079_v7 = vadd.f32 %v5334_v32, %v3057_v54  ;;  %v4021_v20 = vld [vmem:[%s5451_s30 + $0x38] sm:$0xff] }
 0xbd8   :  { %3123 = vxpose.xlu0.b32.cont [2/8] (short) (narrow) %v3083_v21, 32  ;;  %v3062_v25 = vmul.f32 %v5328_v17, %v3040_v34 }
 0xbd9   :  { %v3013_v45 = vadd.f32 1e-05, %v2997_v2  ;;  %v3056_v8 = vmul.f32 %v5328_v17, %v3034_v40 }
 0xbda   :  { %v4003_v44 = vpop.eup %4002  ;;  %v3084_v52 = vadd.f32 %v5334_v32, %v3062_v25 }
 0xbdb   :  { %v4005_v28 = vpop.eup %4004  ;;  %4012 = vrsqrt.f32 %v3013_v45  ;;  %v3078_v14 = vadd.f32 %v5334_v32, %v3056_v8  ;;  %v3036_v12 = vmul.f32 %v4003_v44, %v5286_v53 }
 0xbdc   :  { %3124 = vxpose.xlu0.b32.cont [3/8] (short) (narrow) %v3084_v52, 32  ;;  %v3043_v29 = vmul.f32 %v4005_v28, %v5280_v51 }
 0xbdd   :  { %v4007_v18 = vpop.eup %4006  ;;  %3094 = vxpose.xlu1.b32.cont [5/8] (short) (narrow) %v3078_v14, 32  ;;  %v3058_v22 = vmul.f32 %v5328_v17, %v3036_v12 }
 0xbde   :  { %v4009_v26 = vpop.eup %4008  ;;  %v3042_v47 = vmul.f32 %v4007_v18, %v5292_v24  ;;  %v3065_v30 = vmul.f32 %v5328_v17, %v3043_v29 }
 0xbdf   :  { %v3037_v4 = vmul.f32 %v4009_v26, %v5298_v63  ;;  %v3080_v24 = vadd.f32 %v5334_v32, %v3058_v22 }
 0xbe0   :  { %3125 = vxpose.xlu0.b32.cont [4/8] (short) (narrow) %v3085_v16, 32  ;;  %v3064_v56 = vmul.f32 %v5328_v17, %v3042_v47  ;;  %v3087_v63 = vadd.f32 %v5334_v32, %v3065_v30 }
 0xbe1   :  { %v4011_v53 = vpop.eup %4010  ;;  %3095 = vxpose.xlu1.b32.cont [6/8] (short) (narrow) %v3079_v7, 32  ;;  %v3059_v51 = vmul.f32 %v5328_v17, %v3037_v4 }
 0xbe2   :  { %v3086_v23 = vadd.f32 %v5334_v32, %v3064_v56  ;;  %v3044_v58 = vmul.f32 %v4011_v53, %v5304_v19 }
 0xbe3   :  { %v3081_v6 = vadd.f32 %v5334_v32, %v3059_v51 }
 0xbe4   :  { %3126 = vxpose.xlu0.b32.cont [5/8] (short) (narrow) %v3086_v23, 32  ;;  %v3066_v10 = vmul.f32 %v5328_v17, %v3044_v58 }
 0xbe5   :  { %v4013_v31 = vpop.eup %4012  ;;  %3096 = vxpose.xlu1.b32.cont [7/8] (short) (narrow) %v3080_v24, 32 }
 0xbe6   :  { %v3045_v33 = vmul.f32 %v4013_v31, %v5313_v61  ;;  %v3088_v62 = vadd.f32 %v5334_v32, %v3066_v10 }
 0xbe8   :  { %3127 = vxpose.xlu0.b32.cont [6/8] (short) (narrow) %v3087_v63, 32  ;;  %v3067_v19 = vmul.f32 %v5328_v17, %v3045_v33  ;;  %v4016_v17 = vld [vmem:[%s5451_s30 + $0x20] sm:$0xff] }
 0xbe9   :  { %3097 = vxpose.xlu1.b32.end [8/8] (short) (narrow) %v3081_v6, 32 }
 0xbea   :  { %v3089_v1 = vadd.f32 %v5334_v32, %v3067_v19 }
 0xbec   :  { %3128 = vxpose.xlu0.b32.cont [7/8] (short) (narrow) %v3088_v62, 32 }
 0xbf0   :  { %3129 = vxpose.xlu0.b32.end [8/8] (short) (narrow) %v3089_v1, 32 }
 0xc4d   :  { %v3106_v3 = vpop.trf.xlu1 }
 0xc4e   :  { %v3154_v57 = vadd.f32 %v4014_v15, %v3106_v3 }
 0xc50   :  { %3162 = vst.msk [vmem:[#allocation16] sm:$0xff] %vm2658_vm11, %v3154_v57 }
 0xc51   :  { %v3107_v61 = vpop.trf.xlu1 }
 0xc52   :  { %v3155_v43 = vadd.f32 %v4015_v59, %v3107_v61 }
 0xc54   :  { %v3138_v35 = vpop.trf.xlu0  ;;  %3163 = vst.msk [vmem:[#allocation16 + $0x8] sm:$0xff] %vm2658_vm11, %v3155_v43 }
 0xc55   :  { %v3158_v32 = vadd.f32 %v4016_v17, %v3138_v35  ;;  %v3108_v5 = vpop.trf.xlu1 }
 0xc56   :  { %v3156_v37 = vadd.f32 %v4017_v9, %v3108_v5 }
 0xc57   :  { %3166 = vst.msk [vmem:[#allocation16 + $0x20] sm:$0xff] %vm2658_vm11, %v3158_v32 }
 0xc58   :  { %v3139_v49 = vpop.trf.xlu0  ;;  %3164 = vst.msk [vmem:[#allocation16 + $0x10] sm:$0xff] %vm2658_vm11, %v3156_v37 }
 0xc59   :  { %v3159_v36 = vadd.f32 %v4018_v42, %v3139_v49  ;;  %v3109_v11 = vpop.trf.xlu1 }
 0xc5a   :  { %v3157_v60 = vadd.f32 %v4019_v41, %v3109_v11 }
 0xc5b   :  { %3167 = vst.msk [vmem:[#allocation16 + $0x28] sm:$0xff] %vm2658_vm11, %v3159_v36 }
 0xc5c   :  { %v3140_v48 = vpop.trf.xlu0  ;;  %3165 = vst.msk [vmem:[#allocation16 + $0x18] sm:$0xff] %vm2658_vm11, %v3157_v60 }
 0xc5d   :  { %v3160_v39 = vadd.f32 %v4020_v13, %v3140_v48 }
 0xc5f   :  { %3168 = vst.msk [vmem:[#allocation16 + $0x30] sm:$0xff] %vm2658_vm11, %v3160_v39 }
 0xc60   :  { %v3141_v0 = vpop.trf.xlu0 }
 0xc61   :  { %v3161_v50 = vadd.f32 %v4021_v20, %v3141_v0 }
 0xc63   :  { %3169 = vst.msk [vmem:[#allocation16 + $0x38] sm:$0xff] %vm2658_vm11, %v3161_v50 }
 0xc64   :  { %4209 = shalt.err (!%p4206_p12)
}
 0xc65   :  { %s4210_s3 = scalar_lea.hbm %s5445_s17, 1024 }
 0xc66   :  { %p4211_p13 = scmp.ne.s32.totalorder %s5445_s17, %s4210_s3  ;;  %p4214_p0 = scmp.lt.u32.totalorder %s4210_s3, %s5445_s17 }
 0xc68   :  { %p4216_p1 = pnand %p4214_p0, %p4211_p13 }
 0xc6a   :  { %4219 = shalt.err (!%p4216_p1)
}
 0xc6b   :  { %3181 = dma.vmem_to_hbm [thread:$0]  %s3176_s22, 1024, %s5445_s17, [#allocation4], %s4235_s25, %s4235_s25, %s4236_s1  }
 0xc6c   :  { %4230 = dma.done.wait [#allocation4], 1024  }
 0xc6d   :  { %4231 = vsyncadd [#allocation4], 4294966272 }
 0xc6e   :  { %3185 = vsyncpa [#allocation3], 1 }
 0xc6f   :  { %3186 = vsyncpa [#allocation6], 1 }
 0xc70   :  { %3187 = vsyncpa [#allocation9], 1 }
 0xc71   :  { %3188 = vsyncpa [#allocation12], 1 }
 0xc72   :  { %3189 = vsyncpa [#allocation15], 1 }
 0xc73   :  { %3190 = vsyncpa [#allocation4], 1 }

</bundles_post_ra>
